<compile_context>
chip_gen: v6e
topology: v6e:2x2x1
jax: 0.10.0
libtpu: 0.0.40
codegen_flags: <defaults>
</compile_context>

<pallas_src>
import jax
import jax.numpy as jnp
from jax.experimental import pallas as pl
from jax.experimental.pallas import tpu as pltpu


_BN_EPS = 1e-3
_DILATIONS = (1, 2, 4, 8, 16)
_ESP_PAD = 16


def _build_union_taps():
    offs, idx = [], {}
    for d in _DILATIONS:
        for kh in range(3):
            for kw in range(3):
                o = (_ESP_PAD + (kh - 1) * d, _ESP_PAD + (kw - 1) * d)
                if o not in idx:
                    idx[o] = len(offs)
                    offs.append(o)
    return offs, idx


_UNION_OFFSETS, _UNION_INDEX = _build_union_taps()
_T_UNION = len(_UNION_OFFSETS)          # 41


# ----------------------------------------------------------------------------
# Generation-aware tiling configuration
# ----------------------------------------------------------------------------
_CHIP_CFG = None


def _chip_config():
    """Returns (vmem_limit_bytes, max_tile_m) for the local TPU generation."""
    global _CHIP_CFG
    if _CHIP_CFG is None:
        vmem_phys = 64 * 1024 * 1024
        try:
            info = pltpu.get_tpu_info()
            for attr in ("vmem_capacity_bytes", "vmem_size_bytes", "vmem_bytes"):
                v = getattr(info, attr, None)
                if v:
                    vmem_phys = int(v)
                    break
        except Exception:
            pass
        if vmem_phys >= 100 * 1024 * 1024:      # v5e / v6e: 128 MiB physical VMEM
            _CHIP_CFG = (64 * 1024 * 1024, 4096)
        else:                                   # v7x: 64 MiB physical VMEM
            _CHIP_CFG = (32 * 1024 * 1024, 2048)
    return _CHIP_CFG


def _round_up(v, m):
    return ((v + m - 1) // m) * m


def _tile_and_grid(M, row_bytes):
    """Pick a row tile: as large as VMEM allows, but always >= 2 grid steps."""
    vmem_limit, max_tile = _chip_config()
    cap = (vmem_limit // 2) // max(2 * row_bytes, 1)   # 2x for double buffering
    cap = max(8, (cap // 8) * 8)
    tile = min(max_tile, cap)
    Mp = _round_up(M, 8)
    tile = min(tile, Mp)
    if 16 <= Mp <= 2 * tile:
        # Guarantee grid >= 2 so the "parallel" axis can shard across both
        # TensorCores on v7x (harmless single extra step elsewhere).
        tile = _round_up((Mp + 1) // 2, 8)
    Mp = _round_up(Mp, tile)
    return Mp, tile, Mp // tile, vmem_limit


# ----------------------------------------------------------------------------
# Pallas kernels
# ----------------------------------------------------------------------------
def _make_mm_prelu_kernel(k):
    """kernel(x_1..x_k, w_1..w_k, bp, out): out = PReLU(sum_j x_j@w_j + bias)."""

    def kernel(*refs):
        xs = refs[:k]
        ws = refs[k:2 * k]
        bp_ref = refs[2 * k]
        o_ref = refs[2 * k + 1]
        acc = jnp.dot(xs[0][...], ws[0][...], preferred_element_type=jnp.float32)
        for j in range(1, k):
            acc = acc + jnp.dot(xs[j][...], ws[j][...],
                                preferred_element_type=jnp.float32)
        y = acc + bp_ref[0:1, :]
        o_ref[...] = jnp.where(y > 0, y, bp_ref[1:2, :] * y).astype(o_ref.dtype)

    return kernel


def _b3_cls_kernel(x1_ref, x2_ref, w1_ref, w2_ref, bp_ref, wcls_ref, o_ref):
    """Fused b3 (2-input 1x1 CBR) + classifier 1x1 conv; emits logits only."""
    acc = jnp.dot(x1_ref[...], w1_ref[...], preferred_element_type=jnp.float32)
    acc = acc + jnp.dot(x2_ref[...], w2_ref[...], preferred_element_type=jnp.float32)
    y = acc + bp_ref[0:1, :]
    y = jnp.where(y > 0, y, bp_ref[1:2, :] * y)
    o_ref[...] = jnp.dot(y.astype(jnp.bfloat16), wcls_ref[...],
                         preferred_element_type=jnp.float32).astype(o_ref.dtype)


# ----------------------------------------------------------------------------
# pallas_call wrappers
# ----------------------------------------------------------------------------
def _mm_prelu_multi(xs, ws, bp, out_dtype=jnp.bfloat16):
    M = xs[0].shape[0]
    Cout = ws[0].shape[1]
    row_bytes = sum(x.shape[1] * 2 for x in xs) + Cout * jnp.dtype(out_dtype).itemsize
    Mp, tile_m, g, vmem_limit = _tile_and_grid(M, row_bytes)
    xs = [x.astype(jnp.bfloat16) for x in xs]
    if Mp != M:
        xs = [jnp.pad(x, ((0, Mp - M), (0, 0))) for x in xs]
    in_specs = [pl.BlockSpec((tile_m, x.shape[1]), lambda i: (i, 0)) for x in xs]
    in_specs += [pl.BlockSpec(w.shape, lambda i: (0, 0)) for w in ws]
    in_specs += [pl.BlockSpec((2, Cout), lambda i: (0, 0))]
    out = pl.pallas_call(
        _make_mm_prelu_kernel(len(xs)),
        out_shape=jax.ShapeDtypeStruct((Mp, Cout), out_dtype),
        grid_spec=pltpu.PrefetchScalarGridSpec(
            num_scalar_prefetch=0,
            grid=(g,),
            in_specs=in_specs,
            out_specs=pl.BlockSpec((tile_m, Cout), lambda i: (i, 0)),
        ),
        compiler_params=pltpu.CompilerParams(
            dimension_semantics=("parallel",),
            vmem_limit_bytes=vmem_limit),
    )(*xs, *ws, bp)
    return out[:M] if Mp != M else out


def _b3_classifier(x1, x2, w1, w2, bp, wcls):
    M = x1.shape[0]
    Cmid = w1.shape[1]
    classes = wcls.shape[1]
    row_bytes = (x1.shape[1] + x2.shape[1]) * 2 + classes * 4
    Mp, tile_m, g, vmem_limit = _tile_and_grid(M, row_bytes)
    x1 = x1.astype(jnp.bfloat16)
    x2 = x2.astype(jnp.bfloat16)
    if Mp != M:
        x1 = jnp.pad(x1, ((0, Mp - M), (0, 0)))
        x2 = jnp.pad(x2, ((0, Mp - M), (0, 0)))
    out = pl.pallas_call(
        _b3_cls_kernel,
        out_shape=jax.ShapeDtypeStruct((Mp, classes), jnp.float32),
        grid_spec=pltpu.PrefetchScalarGridSpec(
            num_scalar_prefetch=0,
            grid=(g,),
            in_specs=[
                pl.BlockSpec((tile_m, x1.shape[1]), lambda i: (i, 0)),
                pl.BlockSpec((tile_m, x2.shape[1]), lambda i: (i, 0)),
                pl.BlockSpec(w1.shape, lambda i: (0, 0)),
                pl.BlockSpec(w2.shape, lambda i: (0, 0)),
                pl.BlockSpec((2, Cmid), lambda i: (0, 0)),
                pl.BlockSpec(wcls.shape, lambda i: (0, 0)),
            ],
            out_specs=pl.BlockSpec((tile_m, classes), lambda i: (i, 0)),
        ),
        compiler_params=pltpu.CompilerParams(
            dimension_semantics=("parallel",),
            vmem_limit_bytes=vmem_limit),
    )(x1, x2, w1, w2, bp, wcls)
    return out[:M] if Mp != M else out


# ----------------------------------------------------------------------------
# Layout glue (plain JAX)
# ----------------------------------------------------------------------------
def _im2col(x, offsets, stride, pad, Ho, Wo):
    """x: (N,H,W,C). Returns (N*Ho*Wo, len(offsets)*C), taps along channels."""
    N, H, W, C = x.shape
    xp = jnp.pad(x, ((0, 0), (pad, pad), (pad, pad), (0, 0)))
    cols = []
    for (dh, dw) in offsets:
        sl = jax.lax.slice(
            xp, (0, dh, dw, 0),
            (N, dh + (Ho - 1) * stride + 1, dw + (Wo - 1) * stride + 1, C),
            (1, stride, stride, 1))
        cols.append(sl.reshape(N * Ho * Wo, C))
    return jnp.concatenate(cols, axis=-1)


def avgpool_3x3_s2(x):
    """AvgPool2d(3, stride=2, padding=1), count_include_pad=True (plain XLA:
    C=3 pyramid inputs give a Pallas kernel no advantage, per review)."""
    s = jax.lax.reduce_window(
        x, jnp.array(0.0, x.dtype), jax.lax.add,
        (1, 3, 3, 1), (1, 2, 2, 1),
        [(0, 0), (1, 1), (1, 1), (0, 0)])
    return s * (1.0 / 9.0)


# ----------------------------------------------------------------------------
# Layer wrappers
# ----------------------------------------------------------------------------
def conv_call(x, lp, K, stride=1, out_dtype=jnp.bfloat16):
    """Conv2d (+ optional folded BN + PReLU) as one matmul kernel."""
    N, H, W, Cin = x.shape
    pad = (K - 1) // 2
    Ho = (H + 2 * pad - K) // stride + 1
    Wo = (W + 2 * pad - K) // stride + 1
    if K == 1 and stride == 1:
        cols = x.reshape(N * H * W, Cin)
    else:
        offsets = [(kh, kw) for kh in range(K) for kw in range(K)]
        cols = _im2col(x, offsets, stride, pad, Ho, Wo)
    out = _mm_prelu_multi([cols], [lp['W']], lp['bp'], out_dtype)
    return out.reshape(N, Ho, Wo, -1)


def _cbr_multi(xs, pp, out_dtype=jnp.bfloat16):
    """1x1 CBR on an implicit channel-concat of xs (no HBM concat)."""
    N, H, W = xs[0].shape[:3]
    xs2 = []
    for x in xs:
        x2 = x.reshape(N * H * W, x.shape[-1])
        if x2.shape[-1] < 8:                      # 3-ch pyramid input -> 8 lanes
            x2 = jnp.pad(x2, ((0, 0), (0, 8 - x2.shape[-1])))
        xs2.append(x2)
    out = _mm_prelu_multi(xs2, pp['Ws'], pp['bp'], out_dtype)
    return out.reshape(N, H, W, -1)


def esp_block(x, pp, down):
    """DilatedParllelResidualBlockB (down=False) / DownSamplerB (down=True)."""
    if down:
        o1 = conv_call(x, pp['c1'], K=3, stride=2)       # C(nIn, n, 3, 2)
    else:
        o1 = conv_call(x, pp['c1'], K=1, stride=1)       # C(nIn, n, 1, 1)
    N, Ho, Wo, _ = o1.shape
    nOut = pp['bp'].shape[1]
    M = N * Ho * Wo
    # TODO(synk): HBM im2col of the 41 union taps (see module docstring).
    taps = _im2col(o1, _UNION_OFFSETS, 1, _ESP_PAD, Ho, Wo)   # (M, 41*n)
    if down:
        out = _mm_prelu_multi([taps], [pp['wbig']], pp['bp'])
    else:
        res = x.reshape(M, nOut)                          # identity skip
        out = _mm_prelu_multi([taps, res], [pp['wbig'], pp['wres']], pp['bp'])
    return out.reshape(N, Ho, Wo, nOut)


# ----------------------------------------------------------------------------
# Deterministic raw parameter initialization (synthetic, shapes from __init__)
# ----------------------------------------------------------------------------
def _make_keygen(seed):
    base = jax.random.PRNGKey(seed)
    counter = [100]

    def nxt():
        counter[0] += 1
        return jax.random.fold_in(base, counter[0])
    return nxt


def _init_C(nxt, cin, cout, k):
    fan = cin * k * k
    w = jax.random.normal(nxt(), (cout, cin, k, k), jnp.float32) / jnp.sqrt(fan)
    return {'w': w}


def _init_CBR(nxt, cin, cout, k):
    p = _init_C(nxt, cin, cout, k)
    p['gamma'] = 1.0 + 0.1 * jax.random.normal(nxt(), (cout,), jnp.float32)
    p['beta'] = 0.1 * jax.random.normal(nxt(), (cout,), jnp.float32)
    p['mean'] = 0.1 * jax.random.normal(nxt(), (cout,), jnp.float32)
    p['var'] = 1.0 + 0.1 * jnp.abs(jax.random.normal(nxt(), (cout,), jnp.float32))
    p['alpha'] = 0.25 * jnp.ones((cout,), jnp.float32)
    return p


def _init_esp(nxt, n_in, n_out, down):
    n = n_out // 5
    n1 = n_out - 4 * n
    return {
        'c1': _init_C(nxt, n_in, n, 3 if down else 1),
        'd1': _init_C(nxt, n, n1, 3),
        'd2': _init_C(nxt, n, n, 3),
        'd4': _init_C(nxt, n, n, 3),
        'd8': _init_C(nxt, n, n, 3),
        'd16': _init_C(nxt, n, n, 3),
        'cbr': _init_CBR(nxt, n_out, n_out, 1),
    }


def init_espnet_encoder(seed=0, classes=20, p=5, q=3):
    nxt = _make_keygen(seed)
    P = {}
    P['level1'] = _init_CBR(nxt, 3, 16, 3)
    P['b1'] = _init_CBR(nxt, 16 + 3, 16 + 3, 1)
    P['level2_0'] = _init_esp(nxt, 16 + 3, 64, down=True)
    P['level2'] = [_init_esp(nxt, 64, 64, down=False) for _ in range(p)]
    P['b2'] = _init_CBR(nxt, 128 + 3, 128 + 3, 1)
    P['level3_0'] = _init_esp(nxt, 128 + 3, 128, down=True)
    P['level3'] = [_init_esp(nxt, 128, 128, down=False) for _ in range(q)]
    P['b3'] = _init_CBR(nxt, 256, 256, 1)
    P['classifier'] = _init_C(nxt, 256, classes, 1)
    return P


# ----------------------------------------------------------------------------
# Parameter prep: BN folding, bf16 cast, ESP branch-weight packing
# ----------------------------------------------------------------------------
def _wmat(w):
    """(Cout,Cin,K,K) PyTorch layout -> (K*K*Cin, Cout), tap-major rows."""
    Cout, Cin, K, _ = w.shape
    return jnp.transpose(w, (2, 3, 1, 0)).reshape(K * K * Cin, Cout)


def _prep_c(p):
    Wm = _wmat(p['w'])
    Cout = Wm.shape[1]
    bp = jnp.stack([jnp.zeros((Cout,), jnp.float32),
                    jnp.ones((Cout,), jnp.float32)])     # alpha=1 => identity
    return {'W': Wm.astype(jnp.bfloat16), 'bp': bp}


def _prep_cbr(p):
    scale = p['gamma'] / jnp.sqrt(p['var'] + _BN_EPS)
    Wm = _wmat(p['w']) * scale[None, :]
    bias = p['beta'] - p['mean'] * scale
    bp = jnp.stack([bias, p['alpha']]).astype(jnp.float32)
    return {'W': Wm.astype(jnp.bfloat16), 'bp': bp}


def _prep_cbr_split(p, splits):
    """1x1 CBR whose input is a channel concat: split weight rows per operand."""
    scale = p['gamma'] / jnp.sqrt(p['var'] + _BN_EPS)
    Wm = _wmat(p['w']) * scale[None, :]
    bias = p['beta'] - p['mean'] * scale
    bp = jnp.stack([bias, p['alpha']]).astype(jnp.float32)
    Ws, r = [], 0
    for s in splits:
        Wg = Wm[r:r + s]
        if s < 8:                                  # match lane-padded 3-ch inputs
            Wg = jnp.pad(Wg, ((0, 8 - s), (0, 0)))
        Ws.append(Wg.astype(jnp.bfloat16))
        r += s
    return {'Ws': Ws, 'bp': bp}


def _pack_esp_branches(p, nOut):
    """Pack d1..d16 + cascading adds + concat into one (41*n, nOut) f32 matrix."""
    n = nOut // 5
    n1 = nOut - 4 * n
    Wpack = jnp.zeros((_T_UNION * n, nOut), jnp.float32)

    def place(Wp, w, d, col0):
        cout_b = w.shape[0]
        for kh in range(3):
            for kw in range(3):
                t = _UNION_INDEX[(_ESP_PAD + (kh - 1) * d, _ESP_PAD + (kw - 1) * d)]
                Wp = Wp.at[t * n:(t + 1) * n, col0:col0 + cout_b].add(
                    jnp.transpose(w[:, :, kh, kw]))
        return Wp

    # output columns: [d1 | add1 | add2 | add3 | add4]
    Wpack = place(Wpack, p['d1']['w'], 1, 0)
    for rep in range(4):                                  # d2 -> add1..add4
        Wpack = place(Wpack, p['d2']['w'], 2, n1 + rep * n)
    for rep in range(1, 4):                               # d4 -> add2..add4
        Wpack = place(Wpack, p['d4']['w'], 4, n1 + rep * n)
    for rep in range(2, 4):                               # d8 -> add3..add4
        Wpack = place(Wpack, p['d8']['w'], 8, n1 + rep * n)
    Wpack = place(Wpack, p['d16']['w'], 16, n1 + 3 * n)   # d16 -> add4
    return Wpack


def _prep_esp(p, nOut, down):
    wpack = _pack_esp_branches(p, nOut)                   # (41*n, nOut) f32
    scale = p['cbr']['gamma'] / jnp.sqrt(p['cbr']['var'] + _BN_EPS)
    Wc = _wmat(p['cbr']['w']) * scale[None, :]            # (nOut, nOut) f32, BN folded
    bias = p['cbr']['beta'] - p['cbr']['mean'] * scale
    bp = jnp.stack([bias, p['cbr']['alpha']]).astype(jnp.float32)
    out = {
        'c1': _prep_c(p['c1']),
        # branches + cascading adds + concat + cbr 1x1 conv folded into one matmul
        'wbig': jnp.dot(wpack, Wc).astype(jnp.bfloat16),
        'bp': bp,
    }
    if not down:
        out['wres'] = Wc.astype(jnp.bfloat16)             # residual through cbr conv
    return out


def prepare_params(P, p=5, q=3):
    PP = {}
    PP['level1'] = _prep_cbr(P['level1'])
    PP['b1'] = _prep_cbr_split(P['b1'], (16, 3))
    PP['level2_0'] = _prep_esp(P['level2_0'], 64, down=True)
    PP['level2'] = [_prep_esp(P['level2'][i], 64, down=False) for i in range(p)]
    PP['b2'] = _prep_cbr_split(P['b2'], (64, 64, 3))
    PP['level3_0'] = _prep_esp(P['level3_0'], 128, down=True)
    PP['level3'] = [_prep_esp(P['level3'][i], 128, down=False) for i in range(q)]
    PP['b3'] = _prep_cbr_split(P['b3'], (128, 128))
    PP['classifier'] = _prep_c(P['classifier'])
    return PP


# ----------------------------------------------------------------------------
# ESPNet_Encoder forward
# ----------------------------------------------------------------------------
def espnet_encoder_forward(x_nchw, PP, p=5, q=3):
    x = jnp.transpose(x_nchw, (0, 2, 3, 1)).astype(jnp.float32)   # NCHW -> NHWC

    output0 = conv_call(x.astype(jnp.bfloat16), PP['level1'], K=3, stride=2)
    inp1 = avgpool_3x3_s2(x)                                      # sample1 (f32)
    inp2 = avgpool_3x3_s2(inp1)                                   # sample2

    # b1 on cat([output0, inp1]) without materializing the concat
    output0_cat = _cbr_multi([output0, inp1], PP['b1'])

    output1_0 = esp_block(output0_cat, PP['level2_0'], down=True)
    output1 = output1_0
    for i in range(p):
        output1 = esp_block(output1, PP['level2'][i], down=False)

    # b2 on cat([output1, output1_0, inp2]) without materializing the concat
    output1_cat = _cbr_multi([output1, output1_0, inp2], PP['b2'])

    output2_0 = esp_block(output1_cat, PP['level3_0'], down=True)
    output2 = output2_0
    for i in range(q):
        output2 = esp_block(output2, PP['level3'][i], down=False)

    # b3 (on cat([output2_0, output2])) + classifier fused: output2_cat is
    # consumed only by the classifier, so it never hits HBM.
    N, Ho, Wo, _ = output2.shape
    M = N * Ho * Wo
    logits = _b3_classifier(
        output2_0.reshape(M, -1), output2.reshape(M, -1),
        PP['b3']['Ws'][0], PP['b3']['Ws'][1], PP['b3']['bp'],
        PP['classifier']['W'])
    logits = logits.reshape(N, Ho, Wo, -1)
    return jnp.transpose(logits, (0, 3, 1, 2))                    # NHWC -> NCHW


# ----------------------------------------------------------------------------
if __name__ == "__main__":
    CLASSES, Pm, Qm = 20, 5, 3
    key = jax.random.PRNGKey(0)
    x = jax.random.normal(jax.random.fold_in(key, 1), (2, 3, 32, 32), jnp.float32)

    raw_params = init_espnet_encoder(seed=0, classes=CLASSES, p=Pm, q=Qm)
    params = prepare_params(raw_params, p=Pm, q=Qm)

    fwd = jax.jit(lambda xx, pp: espnet_encoder_forward(xx, pp, p=Pm, q=Qm))
    out = jax.block_until_ready(fwd(x, params))

    # input 32x32 -> output spatial 1/8 => 4x4, channels == classes
    assert out.shape == (2, CLASSES, 4, 4), out.shape
    assert bool(jnp.all(jnp.isfinite(out)))
    print("KERNEL_OK")
</pallas_src>

<mosaic_0001>
module attributes {stable_mosaic.version = 11 : i64} {
  func.func @kernel(%arg0: i32, %arg1: memref<256x27xbf16, #tpu.memory_space<vmem>>, %arg2: memref<27x16xbf16, #tpu.memory_space<vmem>>, %arg3: memref<2x16xf32, #tpu.memory_space<vmem>>, %arg4: memref<256x16xbf16, #tpu.memory_space<vmem>>) attributes {dimension_semantics = [#tpu.dimension_semantics<parallel>], iteration_bounds = array<i64: 2>, scalar_prefetch = 0 : i64, scratch_operands = 0 : i64, tpu.core_type = #tpu.core_type<tc>, window_params = [{transform_indices = @transform_0, window_bounds = array<i64: 256, 27>}, {pipeline_mode = #tpu.pipeline_mode<synchronous>, transform_indices = @transform_1, window_bounds = array<i64: 27, 16>}, {pipeline_mode = #tpu.pipeline_mode<synchronous>, transform_indices = @transform_2, window_bounds = array<i64: 2, 16>}, {transform_indices = @transform_3, window_bounds = array<i64: 256, 16>}]} {
    %c0 = arith.constant 0 : index
    %c0_0 = arith.constant 0 : index
    %0 = vector.load %arg1[%c0, %c0_0] : memref<256x27xbf16, #tpu.memory_space<vmem>>, vector<256x27xbf16>
    %c0_1 = arith.constant 0 : index
    %c0_2 = arith.constant 0 : index
    %1 = vector.load %arg2[%c0_1, %c0_2] : memref<27x16xbf16, #tpu.memory_space<vmem>>, vector<27x16xbf16>
    %cst = arith.constant dense<0.000000e+00> : vector<256x16xf32>
    %2 = tpu.matmul %0, %1, %cst {dimension_numbers = #tpu.dot_dimension_numbers<[1], [0], [0], [1], [0, 0, 1, 1], [], []>} : vector<256x27xbf16>, vector<27x16xbf16>, vector<256x16xf32> -> vector<256x16xf32>
    %c0_3 = arith.constant 0 : index
    %c0_4 = arith.constant 0 : index
    %3 = vector.load %arg3[%c0_3, %c0_4] : memref<2x16xf32, #tpu.memory_space<vmem>>, vector<1x16xf32>
    %4 = vector.broadcast %3 : vector<1x16xf32> to vector<256x16xf32>
    %5 = arith.addf %2, %4 : vector<256x16xf32>
    %cst_5 = arith.constant 0.000000e+00 : f32
    %6 = vector.broadcast %cst_5 : f32 to vector<256x16xf32>
    %7 = arith.cmpf ogt, %5, %6 : vector<256x16xf32>
    %c1 = arith.constant 1 : index
    %c0_6 = arith.constant 0 : index
    %8 = vector.load %arg3[%c1, %c0_6] : memref<2x16xf32, #tpu.memory_space<vmem>>, vector<1x16xf32>
    %9 = vector.broadcast %8 : vector<1x16xf32> to vector<256x16xf32>
    %10 = arith.mulf %9, %5 : vector<256x16xf32>
    %11 = arith.select %7, %5, %10 : vector<256x16xi1>, vector<256x16xf32>
    %12 = arith.truncf %11 : vector<256x16xf32> to vector<256x16xbf16>
    %c0_7 = arith.constant 0 : index
    %c0_8 = arith.constant 0 : index
    %13 = vector.load %arg4[%c0_7, %c0_8] : memref<256x16xbf16, #tpu.memory_space<vmem>>, vector<256x16xbf16>
    tpu.vector_store %arg4[%c0_7, %c0_8], %12 {strides = array<i32>} : memref<256x16xbf16, #tpu.memory_space<vmem>>, vector<256x16xbf16>,
    return
  }
  func.func @transform_0(%arg0: i32) -> (i32, i32) {
    %c0_i32 = arith.constant 0 : i32
    %c0_i32_0 = arith.constant 0 : i32
    return %arg0, %c0_i32 : i32, i32
  }
  func.func @transform_1(%arg0: i32) -> (i32, i32) {
    %c0_i32 = arith.constant 0 : i32
    %c0_i32_0 = arith.constant 0 : i32
    %c0_i32_1 = arith.constant 0 : i32
    return %c0_i32, %c0_i32_0 : i32, i32
  }
  func.func @transform_2(%arg0: i32) -> (i32, i32) {
    %c0_i32 = arith.constant 0 : i32
    %c0_i32_0 = arith.constant 0 : i32
    %c0_i32_1 = arith.constant 0 : i32
    return %c0_i32, %c0_i32_0 : i32, i32
  }
  func.func @transform_3(%arg0: i32) -> (i32, i32) {
    %c0_i32 = arith.constant 0 : i32
    %c0_i32_0 = arith.constant 0 : i32
    return %arg0, %c0_i32 : i32, i32
  }
}

module attributes {stable_mosaic.version = 11 : i64} {
  func.func @kernel(%arg0: i32, %arg1: memref<256x16xbf16, #tpu.memory_space<vmem>>, %arg2: memref<256x8xbf16, #tpu.memory_space<vmem>>, %arg3: memref<16x19xbf16, #tpu.memory_space<vmem>>, %arg4: memref<8x19xbf16, #tpu.memory_space<vmem>>, %arg5: memref<2x19xf32, #tpu.memory_space<vmem>>, %arg6: memref<256x19xbf16, #tpu.memory_space<vmem>>) attributes {dimension_semantics = [#tpu.dimension_semantics<parallel>], iteration_bounds = array<i64: 2>, scalar_prefetch = 0 : i64, scratch_operands = 0 : i64, tpu.core_type = #tpu.core_type<tc>, window_params = [{transform_indices = @transform_0, window_bounds = array<i64: 256, 16>}, {transform_indices = @transform_1, window_bounds = array<i64: 256, 8>}, {pipeline_mode = #tpu.pipeline_mode<synchronous>, transform_indices = @transform_2, window_bounds = array<i64: 16, 19>}, {pipeline_mode = #tpu.pipeline_mode<synchronous>, transform_indices = @transform_3, window_bounds = array<i64: 8, 19>}, {pipeline_mode = #tpu.pipeline_mode<synchronous>, transform_indices = @transform_4, window_bounds = array<i64: 2, 19>}, {transform_indices = @transform_5, window_bounds = array<i64: 256, 19>}]} {
    %c0 = arith.constant 0 : index
    %c0_0 = arith.constant 0 : index
    %0 = vector.load %arg1[%c0, %c0_0] : memref<256x16xbf16, #tpu.memory_space<vmem>>, vector<256x16xbf16>
    %c0_1 = arith.constant 0 : index
    %c0_2 = arith.constant 0 : index
    %1 = vector.load %arg3[%c0_1, %c0_2] : memref<16x19xbf16, #tpu.memory_space<vmem>>, vector<16x19xbf16>
    %cst = arith.constant dense<0.000000e+00> : vector<256x19xf32>
    %2 = tpu.matmul %0, %1, %cst {dimension_numbers = #tpu.dot_dimension_numbers<[1], [0], [0], [1], [0, 0, 1, 1], [], []>} : vector<256x16xbf16>, vector<16x19xbf16>, vector<256x19xf32> -> vector<256x19xf32>
    %c0_3 = arith.constant 0 : index
    %c0_4 = arith.constant 0 : index
    %3 = vector.load %arg2[%c0_3, %c0_4] : memref<256x8xbf16, #tpu.memory_space<vmem>>, vector<256x8xbf16>
    %c0_5 = arith.constant 0 : index
    %c0_6 = arith.constant 0 : index
    %4 = vector.load %arg4[%c0_5, %c0_6] : memref<8x19xbf16, #tpu.memory_space<vmem>>, vector<8x19xbf16>
    %cst_7 = arith.constant dense<0.000000e+00> : vector<256x19xf32>
    %5 = tpu.matmul %3, %4, %cst_7 {dimension_numbers = #tpu.dot_dimension_numbers<[1], [0], [0], [1], [0, 0, 1, 1], [], []>} : vector<256x8xbf16>, vector<8x19xbf16>, vector<256x19xf32> -> vector<256x19xf32>
    %6 = arith.addf %2, %5 : vector<256x19xf32>
    %c0_8 = arith.constant 0 : index
    %c0_9 = arith.constant 0 : index
    %7 = vector.load %arg5[%c0_8, %c0_9] : memref<2x19xf32, #tpu.memory_space<vmem>>, vector<1x19xf32>
    %8 = vector.broadcast %7 : vector<1x19xf32> to vector<256x19xf32>
    %9 = arith.addf %6, %8 : vector<256x19xf32>
    %cst_10 = arith.constant 0.000000e+00 : f32
    %10 = vector.broadcast %cst_10 : f32 to vector<256x19xf32>
    %11 = arith.cmpf ogt, %9, %10 : vector<256x19xf32>
    %c1 = arith.constant 1 : index
    %c0_11 = arith.constant 0 : index
    %12 = vector.load %arg5[%c1, %c0_11] : memref<2x19xf32, #tpu.memory_space<vmem>>, vector<1x19xf32>
    %13 = vector.broadcast %12 : vector<1x19xf32> to vector<256x19xf32>
    %14 = arith.mulf %13, %9 : vector<256x19xf32>
    %15 = arith.select %11, %9, %14 : vector<256x19xi1>, vector<256x19xf32>
    %16 = arith.truncf %15 : vector<256x19xf32> to vector<256x19xbf16>
    %c0_12 = arith.constant 0 : index
    %c0_13 = arith.constant 0 : index
    %17 = vector.load %arg6[%c0_12, %c0_13] : memref<256x19xbf16, #tpu.memory_space<vmem>>, vector<256x19xbf16>
    tpu.vector_store %arg6[%c0_12, %c0_13], %16 {strides = array<i32>} : memref<256x19xbf16, #tpu.memory_space<vmem>>, vector<256x19xbf16>,
    return
  }
  func.func @transform_0(%arg0: i32) -> (i32, i32) {
    %c0_i32 = arith.constant 0 : i32
    %c0_i32_0 = arith.constant 0 : i32
    return %arg0, %c0_i32 : i32, i32
  }
  func.func @transform_1(%arg0: i32) -> (i32, i32) {
    %c0_i32 = arith.constant 0 : i32
    %c0_i32_0 = arith.constant 0 : i32
    return %arg0, %c0_i32 : i32, i32
  }
  func.func @transform_2(%arg0: i32) -> (i32, i32) {
    %c0_i32 = arith.constant 0 : i32
    %c0_i32_0 = arith.constant 0 : i32
    %c0_i32_1 = arith.constant 0 : i32
    return %c0_i32, %c0_i32_0 : i32, i32
  }
  func.func @transform_3(%arg0: i32) -> (i32, i32) {
    %c0_i32 = arith.constant 0 : i32
    %c0_i32_0 = arith.constant 0 : i32
    %c0_i32_1 = arith.constant 0 : i32
    return %c0_i32, %c0_i32_0 : i32, i32
  }
  func.func @transform_4(%arg0: i32) -> (i32, i32) {
    %c0_i32 = arith.constant 0 : i32
    %c0_i32_0 = arith.constant 0 : i32
    %c0_i32_1 = arith.constant 0 : i32
    return %c0_i32, %c0_i32_0 : i32, i32
  }
  func.func @transform_5(%arg0: i32) -> (i32, i32) {
    %c0_i32 = arith.constant 0 : i32
    %c0_i32_0 = arith.constant 0 : i32
    return %arg0, %c0_i32 : i32, i32
  }
}

module attributes {stable_mosaic.version = 11 : i64} {
  func.func @kernel(%arg0: i32, %arg1: memref<64x171xbf16, #tpu.memory_space<vmem>>, %arg2: memref<171x12xbf16, #tpu.memory_space<vmem>>, %arg3: memref<2x12xf32, #tpu.memory_space<vmem>>, %arg4: memref<64x12xbf16, #tpu.memory_space<vmem>>) attributes {dimension_semantics = [#tpu.dimension_semantics<parallel>], iteration_bounds = array<i64: 2>, scalar_prefetch = 0 : i64, scratch_operands = 0 : i64, tpu.core_type = #tpu.core_type<tc>, window_params = [{transform_indices = @transform_0, window_bounds = array<i64: 64, 171>}, {pipeline_mode = #tpu.pipeline_mode<synchronous>, transform_indices = @transform_1, window_bounds = array<i64: 171, 12>}, {pipeline_mode = #tpu.pipeline_mode<synchronous>, transform_indices = @transform_2, window_bounds = array<i64: 2, 12>}, {transform_indices = @transform_3, window_bounds = array<i64: 64, 12>}]} {
    %c0 = arith.constant 0 : index
    %c0_0 = arith.constant 0 : index
    %0 = vector.load %arg1[%c0, %c0_0] : memref<64x171xbf16, #tpu.memory_space<vmem>>, vector<64x171xbf16>
    %c0_1 = arith.constant 0 : index
    %c0_2 = arith.constant 0 : index
    %1 = vector.load %arg2[%c0_1, %c0_2] : memref<171x12xbf16, #tpu.memory_space<vmem>>, vector<171x12xbf16>
    %cst = arith.constant dense<0.000000e+00> : vector<64x12xf32>
    %2 = tpu.matmul %0, %1, %cst {dimension_numbers = #tpu.dot_dimension_numbers<[1], [0], [0], [1], [0, 0, 1, 1], [], []>} : vector<64x171xbf16>, vector<171x12xbf16>, vector<64x12xf32> -> vector<64x12xf32>
    %c0_3 = arith.constant 0 : index
    %c0_4 = arith.constant 0 : index
    %3 = vector.load %arg3[%c0_3, %c0_4] : memref<2x12xf32, #tpu.memory_space<vmem>>, vector<1x12xf32>
    %4 = vector.broadcast %3 : vector<1x12xf32> to vector<64x12xf32>
    %5 = arith.addf %2, %4 : vector<64x12xf32>
    %cst_5 = arith.constant 0.000000e+00 : f32
    %6 = vector.broadcast %cst_5 : f32 to vector<64x12xf32>
    %7 = arith.cmpf ogt, %5, %6 : vector<64x12xf32>
    %c1 = arith.constant 1 : index
    %c0_6 = arith.constant 0 : index
    %8 = vector.load %arg3[%c1, %c0_6] : memref<2x12xf32, #tpu.memory_space<vmem>>, vector<1x12xf32>
    %9 = vector.broadcast %8 : vector<1x12xf32> to vector<64x12xf32>
    %10 = arith.mulf %9, %5 : vector<64x12xf32>
    %11 = arith.select %7, %5, %10 : vector<64x12xi1>, vector<64x12xf32>
    %12 = arith.truncf %11 : vector<64x12xf32> to vector<64x12xbf16>
    %c0_7 = arith.constant 0 : index
    %c0_8 = arith.constant 0 : index
    %13 = vector.load %arg4[%c0_7, %c0_8] : memref<64x12xbf16, #tpu.memory_space<vmem>>, vector<64x12xbf16>
    tpu.vector_store %arg4[%c0_7, %c0_8], %12 {strides = array<i32>} : memref<64x12xbf16, #tpu.memory_space<vmem>>, vector<64x12xbf16>,
    return
  }
  func.func @transform_0(%arg0: i32) -> (i32, i32) {
    %c0_i32 = arith.constant 0 : i32
    %c0_i32_0 = arith.constant 0 : i32
    return %arg0, %c0_i32 : i32, i32
  }
  func.func @transform_1(%arg0: i32) -> (i32, i32) {
    %c0_i32 = arith.constant 0 : i32
    %c0_i32_0 = arith.constant 0 : i32
    %c0_i32_1 = arith.constant 0 : i32
    return %c0_i32, %c0_i32_0 : i32, i32
  }
  func.func @transform_2(%arg0: i32) -> (i32, i32) {
    %c0_i32 = arith.constant 0 : i32
    %c0_i32_0 = arith.constant 0 : i32
    %c0_i32_1 = arith.constant 0 : i32
    return %c0_i32, %c0_i32_0 : i32, i32
  }
  func.func @transform_3(%arg0: i32) -> (i32, i32) {
    %c0_i32 = arith.constant 0 : i32
    %c0_i32_0 = arith.constant 0 : i32
    return %arg0, %c0_i32 : i32, i32
  }
}

module attributes {stable_mosaic.version = 11 : i64} {
  func.func @kernel(%arg0: i32, %arg1: memref<64x64xbf16, #tpu.memory_space<vmem>>, %arg2: memref<64x12xbf16, #tpu.memory_space<vmem>>, %arg3: memref<2x12xf32, #tpu.memory_space<vmem>>, %arg4: memref<64x12xbf16, #tpu.memory_space<vmem>>) attributes {dimension_semantics = [#tpu.dimension_semantics<parallel>], iteration_bounds = array<i64: 2>, scalar_prefetch = 0 : i64, scratch_operands = 0 : i64, tpu.core_type = #tpu.core_type<tc>, window_params = [{transform_indices = @transform_0, window_bounds = array<i64: 64, 64>}, {pipeline_mode = #tpu.pipeline_mode<synchronous>, transform_indices = @transform_1, window_bounds = array<i64: 64, 12>}, {pipeline_mode = #tpu.pipeline_mode<synchronous>, transform_indices = @transform_2, window_bounds = array<i64: 2, 12>}, {transform_indices = @transform_3, window_bounds = array<i64: 64, 12>}]} {
    %c0 = arith.constant 0 : index
    %c0_0 = arith.constant 0 : index
    %0 = vector.load %arg1[%c0, %c0_0] : memref<64x64xbf16, #tpu.memory_space<vmem>>, vector<64x64xbf16>
    %c0_1 = arith.constant 0 : index
    %c0_2 = arith.constant 0 : index
    %1 = vector.load %arg2[%c0_1, %c0_2] : memref<64x12xbf16, #tpu.memory_space<vmem>>, vector<64x12xbf16>
    %cst = arith.constant dense<0.000000e+00> : vector<64x12xf32>
    %2 = tpu.matmul %0, %1, %cst {dimension_numbers = #tpu.dot_dimension_numbers<[1], [0], [0], [1], [0, 0, 1, 1], [], []>} : vector<64x64xbf16>, vector<64x12xbf16>, vector<64x12xf32> -> vector<64x12xf32>
    %c0_3 = arith.constant 0 : index
    %c0_4 = arith.constant 0 : index
    %3 = vector.load %arg3[%c0_3, %c0_4] : memref<2x12xf32, #tpu.memory_space<vmem>>, vector<1x12xf32>
    %4 = vector.broadcast %3 : vector<1x12xf32> to vector<64x12xf32>
    %5 = arith.addf %2, %4 : vector<64x12xf32>
    %cst_5 = arith.constant 0.000000e+00 : f32
    %6 = vector.broadcast %cst_5 : f32 to vector<64x12xf32>
    %7 = arith.cmpf ogt, %5, %6 : vector<64x12xf32>
    %c1 = arith.constant 1 : index
    %c0_6 = arith.constant 0 : index
    %8 = vector.load %arg3[%c1, %c0_6] : memref<2x12xf32, #tpu.memory_space<vmem>>, vector<1x12xf32>
    %9 = vector.broadcast %8 : vector<1x12xf32> to vector<64x12xf32>
    %10 = arith.mulf %9, %5 : vector<64x12xf32>
    %11 = arith.select %7, %5, %10 : vector<64x12xi1>, vector<64x12xf32>
    %12 = arith.truncf %11 : vector<64x12xf32> to vector<64x12xbf16>
    %c0_7 = arith.constant 0 : index
    %c0_8 = arith.constant 0 : index
    %13 = vector.load %arg4[%c0_7, %c0_8] : memref<64x12xbf16, #tpu.memory_space<vmem>>, vector<64x12xbf16>
    tpu.vector_store %arg4[%c0_7, %c0_8], %12 {strides = array<i32>} : memref<64x12xbf16, #tpu.memory_space<vmem>>, vector<64x12xbf16>,
    return
  }
  func.func @transform_0(%arg0: i32) -> (i32, i32) {
    %c0_i32 = arith.constant 0 : i32
    %c0_i32_0 = arith.constant 0 : i32
    return %arg0, %c0_i32 : i32, i32
  }
  func.func @transform_1(%arg0: i32) -> (i32, i32) {
    %c0_i32 = arith.constant 0 : i32
    %c0_i32_0 = arith.constant 0 : i32
    %c0_i32_1 = arith.constant 0 : i32
    return %c0_i32, %c0_i32_0 : i32, i32
  }
  func.func @transform_2(%arg0: i32) -> (i32, i32) {
    %c0_i32 = arith.constant 0 : i32
    %c0_i32_0 = arith.constant 0 : i32
    %c0_i32_1 = arith.constant 0 : i32
    return %c0_i32, %c0_i32_0 : i32, i32
  }
  func.func @transform_3(%arg0: i32) -> (i32, i32) {
    %c0_i32 = arith.constant 0 : i32
    %c0_i32_0 = arith.constant 0 : i32
    return %arg0, %c0_i32 : i32, i32
  }
}

module attributes {stable_mosaic.version = 11 : i64} {
  func.func @kernel(%arg0: i32, %arg1: memref<64x492xbf16, #tpu.memory_space<vmem>>, %arg2: memref<492x64xbf16, #tpu.memory_space<vmem>>, %arg3: memref<2x64xf32, #tpu.memory_space<vmem>>, %arg4: memref<64x64xbf16, #tpu.memory_space<vmem>>) attributes {dimension_semantics = [#tpu.dimension_semantics<parallel>], iteration_bounds = array<i64: 2>, scalar_prefetch = 0 : i64, scratch_operands = 0 : i64, tpu.core_type = #tpu.core_type<tc>, window_params = [{transform_indices = @transform_0, window_bounds = array<i64: 64, 492>}, {pipeline_mode = #tpu.pipeline_mode<synchronous>, transform_indices = @transform_1, window_bounds = array<i64: 492, 64>}, {pipeline_mode = #tpu.pipeline_mode<synchronous>, transform_indices = @transform_2, window_bounds = array<i64: 2, 64>}, {transform_indices = @transform_3, window_bounds = array<i64: 64, 64>}]} {
    %c0 = arith.constant 0 : index
    %c0_0 = arith.constant 0 : index
    %0 = vector.load %arg1[%c0, %c0_0] : memref<64x492xbf16, #tpu.memory_space<vmem>>, vector<64x492xbf16>
    %c0_1 = arith.constant 0 : index
    %c0_2 = arith.constant 0 : index
    %1 = vector.load %arg2[%c0_1, %c0_2] : memref<492x64xbf16, #tpu.memory_space<vmem>>, vector<492x64xbf16>
    %cst = arith.constant dense<0.000000e+00> : vector<64x64xf32>
    %2 = tpu.matmul %0, %1, %cst {dimension_numbers = #tpu.dot_dimension_numbers<[1], [0], [0], [1], [0, 0, 1, 1], [], []>} : vector<64x492xbf16>, vector<492x64xbf16>, vector<64x64xf32> -> vector<64x64xf32>
    %c0_3 = arith.constant 0 : index
    %c0_4 = arith.constant 0 : index
    %3 = vector.load %arg3[%c0_3, %c0_4] : memref<2x64xf32, #tpu.memory_space<vmem>>, vector<1x64xf32>
    %4 = vector.broadcast %3 : vector<1x64xf32> to vector<64x64xf32>
    %5 = arith.addf %2, %4 : vector<64x64xf32>
    %cst_5 = arith.constant 0.000000e+00 : f32
    %6 = vector.broadcast %cst_5 : f32 to vector<64x64xf32>
    %7 = arith.cmpf ogt, %5, %6 : vector<64x64xf32>
    %c1 = arith.constant 1 : index
    %c0_6 = arith.constant 0 : index
    %8 = vector.load %arg3[%c1, %c0_6] : memref<2x64xf32, #tpu.memory_space<vmem>>, vector<1x64xf32>
    %9 = vector.broadcast %8 : vector<1x64xf32> to vector<64x64xf32>
    %10 = arith.mulf %9, %5 : vector<64x64xf32>
    %11 = arith.select %7, %5, %10 : vector<64x64xi1>, vector<64x64xf32>
    %12 = arith.truncf %11 : vector<64x64xf32> to vector<64x64xbf16>
    %c0_7 = arith.constant 0 : index
    %c0_8 = arith.constant 0 : index
    %13 = vector.load %arg4[%c0_7, %c0_8] : memref<64x64xbf16, #tpu.memory_space<vmem>>, vector<64x64xbf16>
    tpu.vector_store %arg4[%c0_7, %c0_8], %12 {strides = array<i32>} : memref<64x64xbf16, #tpu.memory_space<vmem>>, vector<64x64xbf16>,
    return
  }
  func.func @transform_0(%arg0: i32) -> (i32, i32) {
    %c0_i32 = arith.constant 0 : i32
    %c0_i32_0 = arith.constant 0 : i32
    return %arg0, %c0_i32 : i32, i32
  }
  func.func @transform_1(%arg0: i32) -> (i32, i32) {
    %c0_i32 = arith.constant 0 : i32
    %c0_i32_0 = arith.constant 0 : i32
    %c0_i32_1 = arith.constant 0 : i32
    return %c0_i32, %c0_i32_0 : i32, i32
  }
  func.func @transform_2(%arg0: i32) -> (i32, i32) {
    %c0_i32 = arith.constant 0 : i32
    %c0_i32_0 = arith.constant 0 : i32
    %c0_i32_1 = arith.constant 0 : i32
    return %c0_i32, %c0_i32_0 : i32, i32
  }
  func.func @transform_3(%arg0: i32) -> (i32, i32) {
    %c0_i32 = arith.constant 0 : i32
    %c0_i32_0 = arith.constant 0 : i32
    return %arg0, %c0_i32 : i32, i32
  }
}

module attributes {stable_mosaic.version = 11 : i64} {
  func.func @kernel(%arg0: i32, %arg1: memref<64x492xbf16, #tpu.memory_space<vmem>>, %arg2: memref<64x64xbf16, #tpu.memory_space<vmem>>, %arg3: memref<492x64xbf16, #tpu.memory_space<vmem>>, %arg4: memref<64x64xbf16, #tpu.memory_space<vmem>>, %arg5: memref<2x64xf32, #tpu.memory_space<vmem>>, %arg6: memref<64x64xbf16, #tpu.memory_space<vmem>>) attributes {dimension_semantics = [#tpu.dimension_semantics<parallel>], iteration_bounds = array<i64: 2>, scalar_prefetch = 0 : i64, scratch_operands = 0 : i64, tpu.core_type = #tpu.core_type<tc>, window_params = [{transform_indices = @transform_0, window_bounds = array<i64: 64, 492>}, {transform_indices = @transform_1, window_bounds = array<i64: 64, 64>}, {pipeline_mode = #tpu.pipeline_mode<synchronous>, transform_indices = @transform_2, window_bounds = array<i64: 492, 64>}, {pipeline_mode = #tpu.pipeline_mode<synchronous>, transform_indices = @transform_3, window_bounds = array<i64: 64, 64>}, {pipeline_mode = #tpu.pipeline_mode<synchronous>, transform_indices = @transform_4, window_bounds = array<i64: 2, 64>}, {transform_indices = @transform_5, window_bounds = array<i64: 64, 64>}]} {
    %c0 = arith.constant 0 : index
    %c0_0 = arith.constant 0 : index
    %0 = vector.load %arg1[%c0, %c0_0] : memref<64x492xbf16, #tpu.memory_space<vmem>>, vector<64x492xbf16>
    %c0_1 = arith.constant 0 : index
    %c0_2 = arith.constant 0 : index
    %1 = vector.load %arg3[%c0_1, %c0_2] : memref<492x64xbf16, #tpu.memory_space<vmem>>, vector<492x64xbf16>
    %cst = arith.constant dense<0.000000e+00> : vector<64x64xf32>
    %2 = tpu.matmul %0, %1, %cst {dimension_numbers = #tpu.dot_dimension_numbers<[1], [0], [0], [1], [0, 0, 1, 1], [], []>} : vector<64x492xbf16>, vector<492x64xbf16>, vector<64x64xf32> -> vector<64x64xf32>
    %c0_3 = arith.constant 0 : index
    %c0_4 = arith.constant 0 : index
    %3 = vector.load %arg2[%c0_3, %c0_4] : memref<64x64xbf16, #tpu.memory_space<vmem>>, vector<64x64xbf16>
    %c0_5 = arith.constant 0 : index
    %c0_6 = arith.constant 0 : index
    %4 = vector.load %arg4[%c0_5, %c0_6] : memref<64x64xbf16, #tpu.memory_space<vmem>>, vector<64x64xbf16>
    %cst_7 = arith.constant dense<0.000000e+00> : vector<64x64xf32>
    %5 = tpu.matmul %3, %4, %cst_7 {dimension_numbers = #tpu.dot_dimension_numbers<[1], [0], [0], [1], [0, 0, 1, 1], [], []>} : vector<64x64xbf16>, vector<64x64xbf16>, vector<64x64xf32> -> vector<64x64xf32>
    %6 = arith.addf %2, %5 : vector<64x64xf32>
    %c0_8 = arith.constant 0 : index
    %c0_9 = arith.constant 0 : index
    %7 = vector.load %arg5[%c0_8, %c0_9] : memref<2x64xf32, #tpu.memory_space<vmem>>, vector<1x64xf32>
    %8 = vector.broadcast %7 : vector<1x64xf32> to vector<64x64xf32>
    %9 = arith.addf %6, %8 : vector<64x64xf32>
    %cst_10 = arith.constant 0.000000e+00 : f32
    %10 = vector.broadcast %cst_10 : f32 to vector<64x64xf32>
    %11 = arith.cmpf ogt, %9, %10 : vector<64x64xf32>
    %c1 = arith.constant 1 : index
    %c0_11 = arith.constant 0 : index
    %12 = vector.load %arg5[%c1, %c0_11] : memref<2x64xf32, #tpu.memory_space<vmem>>, vector<1x64xf32>
    %13 = vector.broadcast %12 : vector<1x64xf32> to vector<64x64xf32>
    %14 = arith.mulf %13, %9 : vector<64x64xf32>
    %15 = arith.select %11, %9, %14 : vector<64x64xi1>, vector<64x64xf32>
    %16 = arith.truncf %15 : vector<64x64xf32> to vector<64x64xbf16>
    %c0_12 = arith.constant 0 : index
    %c0_13 = arith.constant 0 : index
    %17 = vector.load %arg6[%c0_12, %c0_13] : memref<64x64xbf16, #tpu.memory_space<vmem>>, vector<64x64xbf16>
    tpu.vector_store %arg6[%c0_12, %c0_13], %16 {strides = array<i32>} : memref<64x64xbf16, #tpu.memory_space<vmem>>, vector<64x64xbf16>,
    return
  }
  func.func @transform_0(%arg0: i32) -> (i32, i32) {
    %c0_i32 = arith.constant 0 : i32
    %c0_i32_0 = arith.constant 0 : i32
    return %arg0, %c0_i32 : i32, i32
  }
  func.func @transform_1(%arg0: i32) -> (i32, i32) {
    %c0_i32 = arith.constant 0 : i32
    %c0_i32_0 = arith.constant 0 : i32
    return %arg0, %c0_i32 : i32, i32
  }
  func.func @transform_2(%arg0: i32) -> (i32, i32) {
    %c0_i32 = arith.constant 0 : i32
    %c0_i32_0 = arith.constant 0 : i32
    %c0_i32_1 = arith.constant 0 : i32
    return %c0_i32, %c0_i32_0 : i32, i32
  }
  func.func @transform_3(%arg0: i32) -> (i32, i32) {
    %c0_i32 = arith.constant 0 : i32
    %c0_i32_0 = arith.constant 0 : i32
    %c0_i32_1 = arith.constant 0 : i32
    return %c0_i32, %c0_i32_0 : i32, i32
  }
  func.func @transform_4(%arg0: i32) -> (i32, i32) {
    %c0_i32 = arith.constant 0 : i32
    %c0_i32_0 = arith.constant 0 : i32
    %c0_i32_1 = arith.constant 0 : i32
    return %c0_i32, %c0_i32_0 : i32, i32
  }
  func.func @transform_5(%arg0: i32) -> (i32, i32) {
    %c0_i32 = arith.constant 0 : i32
    %c0_i32_0 = arith.constant 0 : i32
    return %arg0, %c0_i32 : i32, i32
  }
}

module attributes {stable_mosaic.version = 11 : i64} {
  func.func @kernel(%arg0: i32, %arg1: memref<64x64xbf16, #tpu.memory_space<vmem>>, %arg2: memref<64x64xbf16, #tpu.memory_space<vmem>>, %arg3: memref<64x8xbf16, #tpu.memory_space<vmem>>, %arg4: memref<64x131xbf16, #tpu.memory_space<vmem>>, %arg5: memref<64x131xbf16, #tpu.memory_space<vmem>>, %arg6: memref<8x131xbf16, #tpu.memory_space<vmem>>, %arg7: memref<2x131xf32, #tpu.memory_space<vmem>>, %arg8: memref<64x131xbf16, #tpu.memory_space<vmem>>) attributes {dimension_semantics = [#tpu.dimension_semantics<parallel>], iteration_bounds = array<i64: 2>, scalar_prefetch = 0 : i64, scratch_operands = 0 : i64, tpu.core_type = #tpu.core_type<tc>, window_params = [{transform_indices = @transform_0, window_bounds = array<i64: 64, 64>}, {transform_indices = @transform_1, window_bounds = array<i64: 64, 64>}, {transform_indices = @transform_2, window_bounds = array<i64: 64, 8>}, {pipeline_mode = #tpu.pipeline_mode<synchronous>, transform_indices = @transform_3, window_bounds = array<i64: 64, 131>}, {pipeline_mode = #tpu.pipeline_mode<synchronous>, transform_indices = @transform_4, window_bounds = array<i64: 64, 131>}, {pipeline_mode = #tpu.pipeline_mode<synchronous>, transform_indices = @transform_5, window_bounds = array<i64: 8, 131>}, {pipeline_mode = #tpu.pipeline_mode<synchronous>, transform_indices = @transform_6, window_bounds = array<i64: 2, 131>}, {transform_indices = @transform_7, window_bounds = array<i64: 64, 131>}]} {
    %c0 = arith.constant 0 : index
    %c0_0 = arith.constant 0 : index
    %0 = vector.load %arg1[%c0, %c0_0] : memref<64x64xbf16, #tpu.memory_space<vmem>>, vector<64x64xbf16>
    %c0_1 = arith.constant 0 : index
    %c0_2 = arith.constant 0 : index
    %1 = vector.load %arg4[%c0_1, %c0_2] : memref<64x131xbf16, #tpu.memory_space<vmem>>, vector<64x131xbf16>
    %cst = arith.constant dense<0.000000e+00> : vector<64x131xf32>
    %2 = tpu.matmul %0, %1, %cst {dimension_numbers = #tpu.dot_dimension_numbers<[1], [0], [0], [1], [0, 0, 1, 1], [], []>} : vector<64x64xbf16>, vector<64x131xbf16>, vector<64x131xf32> -> vector<64x131xf32>
    %c0_3 = arith.constant 0 : index
    %c0_4 = arith.constant 0 : index
    %3 = vector.load %arg2[%c0_3, %c0_4] : memref<64x64xbf16, #tpu.memory_space<vmem>>, vector<64x64xbf16>
    %c0_5 = arith.constant 0 : index
    %c0_6 = arith.constant 0 : index
    %4 = vector.load %arg5[%c0_5, %c0_6] : memref<64x131xbf16, #tpu.memory_space<vmem>>, vector<64x131xbf16>
    %cst_7 = arith.constant dense<0.000000e+00> : vector<64x131xf32>
    %5 = tpu.matmul %3, %4, %cst_7 {dimension_numbers = #tpu.dot_dimension_numbers<[1], [0], [0], [1], [0, 0, 1, 1], [], []>} : vector<64x64xbf16>, vector<64x131xbf16>, vector<64x131xf32> -> vector<64x131xf32>
    %6 = arith.addf %2, %5 : vector<64x131xf32>
    %c0_8 = arith.constant 0 : index
    %c0_9 = arith.constant 0 : index
    %7 = vector.load %arg3[%c0_8, %c0_9] : memref<64x8xbf16, #tpu.memory_space<vmem>>, vector<64x8xbf16>
    %c0_10 = arith.constant 0 : index
    %c0_11 = arith.constant 0 : index
    %8 = vector.load %arg6[%c0_10, %c0_11] : memref<8x131xbf16, #tpu.memory_space<vmem>>, vector<8x131xbf16>
    %cst_12 = arith.constant dense<0.000000e+00> : vector<64x131xf32>
    %9 = tpu.matmul %7, %8, %cst_12 {dimension_numbers = #tpu.dot_dimension_numbers<[1], [0], [0], [1], [0, 0, 1, 1], [], []>} : vector<64x8xbf16>, vector<8x131xbf16>, vector<64x131xf32> -> vector<64x131xf32>
    %10 = arith.addf %6, %9 : vector<64x131xf32>
    %c0_13 = arith.constant 0 : index
    %c0_14 = arith.constant 0 : index
    %11 = vector.load %arg7[%c0_13, %c0_14] : memref<2x131xf32, #tpu.memory_space<vmem>>, vector<1x131xf32>
    %12 = vector.broadcast %11 : vector<1x131xf32> to vector<64x131xf32>
    %13 = arith.addf %10, %12 : vector<64x131xf32>
    %cst_15 = arith.constant 0.000000e+00 : f32
    %14 = vector.broadcast %cst_15 : f32 to vector<64x131xf32>
    %15 = arith.cmpf ogt, %13, %14 : vector<64x131xf32>
    %c1 = arith.constant 1 : index
    %c0_16 = arith.constant 0 : index
    %16 = vector.load %arg7[%c1, %c0_16] : memref<2x131xf32, #tpu.memory_space<vmem>>, vector<1x131xf32>
    %17 = vector.broadcast %16 : vector<1x131xf32> to vector<64x131xf32>
    %18 = arith.mulf %17, %13 : vector<64x131xf32>
    %19 = arith.select %15, %13, %18 : vector<64x131xi1>, vector<64x131xf32>
    %20 = arith.truncf %19 : vector<64x131xf32> to vector<64x131xbf16>
    %c0_17 = arith.constant 0 : index
    %c0_18 = arith.constant 0 : index
    %21 = vector.load %arg8[%c0_17, %c0_18] : memref<64x131xbf16, #tpu.memory_space<vmem>>, vector<64x131xbf16>
    tpu.vector_store %arg8[%c0_17, %c0_18], %20 {strides = array<i32>} : memref<64x131xbf16, #tpu.memory_space<vmem>>, vector<64x131xbf16>,
    return
  }
  func.func @transform_0(%arg0: i32) -> (i32, i32) {
    %c0_i32 = arith.constant 0 : i32
    %c0_i32_0 = arith.constant 0 : i32
    return %arg0, %c0_i32 : i32, i32
  }
  func.func @transform_1(%arg0: i32) -> (i32, i32) {
    %c0_i32 = arith.constant 0 : i32
    %c0_i32_0 = arith.constant 0 : i32
    return %arg0, %c0_i32 : i32, i32
  }
  func.func @transform_2(%arg0: i32) -> (i32, i32) {
    %c0_i32 = arith.constant 0 : i32
    %c0_i32_0 = arith.constant 0 : i32
    return %arg0, %c0_i32 : i32, i32
  }
  func.func @transform_3(%arg0: i32) -> (i32, i32) {
    %c0_i32 = arith.constant 0 : i32
    %c0_i32_0 = arith.constant 0 : i32
    %c0_i32_1 = arith.constant 0 : i32
    return %c0_i32, %c0_i32_0 : i32, i32
  }
  func.func @transform_4(%arg0: i32) -> (i32, i32) {
    %c0_i32 = arith.constant 0 : i32
    %c0_i32_0 = arith.constant 0 : i32
    %c0_i32_1 = arith.constant 0 : i32
    return %c0_i32, %c0_i32_0 : i32, i32
  }
  func.func @transform_5(%arg0: i32) -> (i32, i32) {
    %c0_i32 = arith.constant 0 : i32
    %c0_i32_0 = arith.constant 0 : i32
    %c0_i32_1 = arith.constant 0 : i32
    return %c0_i32, %c0_i32_0 : i32, i32
  }
  func.func @transform_6(%arg0: i32) -> (i32, i32) {
    %c0_i32 = arith.constant 0 : i32
    %c0_i32_0 = arith.constant 0 : i32
    %c0_i32_1 = arith.constant 0 : i32
    return %c0_i32, %c0_i32_0 : i32, i32
  }
  func.func @transform_7(%arg0: i32) -> (i32, i32) {
    %c0_i32 = arith.constant 0 : i32
    %c0_i32_0 = arith.constant 0 : i32
    return %arg0, %c0_i32 : i32, i32
  }
}

module attributes {stable_mosaic.version = 11 : i64} {
  func.func @kernel(%arg0: i32, %arg1: memref<16x1179xbf16, #tpu.memory_space<vmem>>, %arg2: memref<1179x25xbf16, #tpu.memory_space<vmem>>, %arg3: memref<2x25xf32, #tpu.memory_space<vmem>>, %arg4: memref<16x25xbf16, #tpu.memory_space<vmem>>) attributes {dimension_semantics = [#tpu.dimension_semantics<parallel>], iteration_bounds = array<i64: 2>, scalar_prefetch = 0 : i64, scratch_operands = 0 : i64, tpu.core_type = #tpu.core_type<tc>, window_params = [{transform_indices = @transform_0, window_bounds = array<i64: 16, 1179>}, {pipeline_mode = #tpu.pipeline_mode<synchronous>, transform_indices = @transform_1, window_bounds = array<i64: 1179, 25>}, {pipeline_mode = #tpu.pipeline_mode<synchronous>, transform_indices = @transform_2, window_bounds = array<i64: 2, 25>}, {transform_indices = @transform_3, window_bounds = array<i64: 16, 25>}]} {
    %c0 = arith.constant 0 : index
    %c0_0 = arith.constant 0 : index
    %0 = vector.load %arg1[%c0, %c0_0] : memref<16x1179xbf16, #tpu.memory_space<vmem>>, vector<16x1179xbf16>
    %c0_1 = arith.constant 0 : index
    %c0_2 = arith.constant 0 : index
    %1 = vector.load %arg2[%c0_1, %c0_2] : memref<1179x25xbf16, #tpu.memory_space<vmem>>, vector<1179x25xbf16>
    %cst = arith.constant dense<0.000000e+00> : vector<16x25xf32>
    %2 = tpu.matmul %0, %1, %cst {dimension_numbers = #tpu.dot_dimension_numbers<[1], [0], [0], [1], [0, 0, 1, 1], [], []>} : vector<16x1179xbf16>, vector<1179x25xbf16>, vector<16x25xf32> -> vector<16x25xf32>
    %c0_3 = arith.constant 0 : index
    %c0_4 = arith.constant 0 : index
    %3 = vector.load %arg3[%c0_3, %c0_4] : memref<2x25xf32, #tpu.memory_space<vmem>>, vector<1x25xf32>
    %4 = vector.broadcast %3 : vector<1x25xf32> to vector<16x25xf32>
    %5 = arith.addf %2, %4 : vector<16x25xf32>
    %cst_5 = arith.constant 0.000000e+00 : f32
    %6 = vector.broadcast %cst_5 : f32 to vector<16x25xf32>
    %7 = arith.cmpf ogt, %5, %6 : vector<16x25xf32>
    %c1 = arith.constant 1 : index
    %c0_6 = arith.constant 0 : index
    %8 = vector.load %arg3[%c1, %c0_6] : memref<2x25xf32, #tpu.memory_space<vmem>>, vector<1x25xf32>
    %9 = vector.broadcast %8 : vector<1x25xf32> to vector<16x25xf32>
    %10 = arith.mulf %9, %5 : vector<16x25xf32>
    %11 = arith.select %7, %5, %10 : vector<16x25xi1>, vector<16x25xf32>
    %12 = arith.truncf %11 : vector<16x25xf32> to vector<16x25xbf16>
    %c0_7 = arith.constant 0 : index
    %c0_8 = arith.constant 0 : index
    %13 = vector.load %arg4[%c0_7, %c0_8] : memref<16x25xbf16, #tpu.memory_space<vmem>>, vector<16x25xbf16>
    tpu.vector_store %arg4[%c0_7, %c0_8], %12 {strides = array<i32>} : memref<16x25xbf16, #tpu.memory_space<vmem>>, vector<16x25xbf16>,
    return
  }
  func.func @transform_0(%arg0: i32) -> (i32, i32) {
    %c0_i32 = arith.constant 0 : i32
    %c0_i32_0 = arith.constant 0 : i32
    return %arg0, %c0_i32 : i32, i32
  }
  func.func @transform_1(%arg0: i32) -> (i32, i32) {
    %c0_i32 = arith.constant 0 : i32
    %c0_i32_0 = arith.constant 0 : i32
    %c0_i32_1 = arith.constant 0 : i32
    return %c0_i32, %c0_i32_0 : i32, i32
  }
  func.func @transform_2(%arg0: i32) -> (i32, i32) {
    %c0_i32 = arith.constant 0 : i32
    %c0_i32_0 = arith.constant 0 : i32
    %c0_i32_1 = arith.constant 0 : i32
    return %c0_i32, %c0_i32_0 : i32, i32
  }
  func.func @transform_3(%arg0: i32) -> (i32, i32) {
    %c0_i32 = arith.constant 0 : i32
    %c0_i32_0 = arith.constant 0 : i32
    return %arg0, %c0_i32 : i32, i32
  }
}

module attributes {stable_mosaic.version = 11 : i64} {
  func.func @kernel(%arg0: i32, %arg1: memref<16x1025xbf16, #tpu.memory_space<vmem>>, %arg2: memref<1025x128xbf16, #tpu.memory_space<vmem>>, %arg3: memref<2x128xf32, #tpu.memory_space<vmem>>, %arg4: memref<16x128xbf16, #tpu.memory_space<vmem>>) attributes {dimension_semantics = [#tpu.dimension_semantics<parallel>], iteration_bounds = array<i64: 2>, scalar_prefetch = 0 : i64, scratch_operands = 0 : i64, tpu.core_type = #tpu.core_type<tc>, window_params = [{transform_indices = @transform_0, window_bounds = array<i64: 16, 1025>}, {pipeline_mode = #tpu.pipeline_mode<synchronous>, transform_indices = @transform_1, window_bounds = array<i64: 1025, 128>}, {pipeline_mode = #tpu.pipeline_mode<synchronous>, transform_indices = @transform_2, window_bounds = array<i64: 2, 128>}, {transform_indices = @transform_3, window_bounds = array<i64: 16, 128>}]} {
    %c0 = arith.constant 0 : index
    %c0_0 = arith.constant 0 : index
    %0 = vector.load %arg1[%c0, %c0_0] : memref<16x1025xbf16, #tpu.memory_space<vmem>>, vector<16x1025xbf16>
    %c0_1 = arith.constant 0 : index
    %c0_2 = arith.constant 0 : index
    %1 = vector.load %arg2[%c0_1, %c0_2] : memref<1025x128xbf16, #tpu.memory_space<vmem>>, vector<1025x128xbf16>
    %cst = arith.constant dense<0.000000e+00> : vector<16x128xf32>
    %2 = tpu.matmul %0, %1, %cst {dimension_numbers = #tpu.dot_dimension_numbers<[1], [0], [0], [1], [0, 0, 1, 1], [], []>} : vector<16x1025xbf16>, vector<1025x128xbf16>, vector<16x128xf32> -> vector<16x128xf32>
    %c0_3 = arith.constant 0 : index
    %c0_4 = arith.constant 0 : index
    %3 = vector.load %arg3[%c0_3, %c0_4] : memref<2x128xf32, #tpu.memory_space<vmem>>, vector<1x128xf32>
    %4 = vector.broadcast %3 : vector<1x128xf32> to vector<16x128xf32>
    %5 = arith.addf %2, %4 : vector<16x128xf32>
    %cst_5 = arith.constant 0.000000e+00 : f32
    %6 = vector.broadcast %cst_5 : f32 to vector<16x128xf32>
    %7 = arith.cmpf ogt, %5, %6 : vector<16x128xf32>
    %c1 = arith.constant 1 : index
    %c0_6 = arith.constant 0 : index
    %8 = vector.load %arg3[%c1, %c0_6] : memref<2x128xf32, #tpu.memory_space<vmem>>, vector<1x128xf32>
    %9 = vector.broadcast %8 : vector<1x128xf32> to vector<16x128xf32>
    %10 = arith.mulf %9, %5 : vector<16x128xf32>
    %11 = arith.select %7, %5, %10 : vector<16x128xi1>, vector<16x128xf32>
    %12 = arith.truncf %11 : vector<16x128xf32> to vector<16x128xbf16>
    %c0_7 = arith.constant 0 : index
    %c0_8 = arith.constant 0 : index
    %13 = vector.load %arg4[%c0_7, %c0_8] : memref<16x128xbf16, #tpu.memory_space<vmem>>, vector<16x128xbf16>
    tpu.vector_store %arg4[%c0_7, %c0_8], %12 {strides = array<i32>} : memref<16x128xbf16, #tpu.memory_space<vmem>>, vector<16x128xbf16>,
    return
  }
  func.func @transform_0(%arg0: i32) -> (i32, i32) {
    %c0_i32 = arith.constant 0 : i32
    %c0_i32_0 = arith.constant 0 : i32
    return %arg0, %c0_i32 : i32, i32
  }
  func.func @transform_1(%arg0: i32) -> (i32, i32) {
    %c0_i32 = arith.constant 0 : i32
    %c0_i32_0 = arith.constant 0 : i32
    %c0_i32_1 = arith.constant 0 : i32
    return %c0_i32, %c0_i32_0 : i32, i32
  }
  func.func @transform_2(%arg0: i32) -> (i32, i32) {
    %c0_i32 = arith.constant 0 : i32
    %c0_i32_0 = arith.constant 0 : i32
    %c0_i32_1 = arith.constant 0 : i32
    return %c0_i32, %c0_i32_0 : i32, i32
  }
  func.func @transform_3(%arg0: i32) -> (i32, i32) {
    %c0_i32 = arith.constant 0 : i32
    %c0_i32_0 = arith.constant 0 : i32
    return %arg0, %c0_i32 : i32, i32
  }
}

module attributes {stable_mosaic.version = 11 : i64} {
  func.func @kernel(%arg0: i32, %arg1: memref<16x128xbf16, #tpu.memory_space<vmem>>, %arg2: memref<128x25xbf16, #tpu.memory_space<vmem>>, %arg3: memref<2x25xf32, #tpu.memory_space<vmem>>, %arg4: memref<16x25xbf16, #tpu.memory_space<vmem>>) attributes {dimension_semantics = [#tpu.dimension_semantics<parallel>], iteration_bounds = array<i64: 2>, scalar_prefetch = 0 : i64, scratch_operands = 0 : i64, tpu.core_type = #tpu.core_type<tc>, window_params = [{transform_indices = @transform_0, window_bounds = array<i64: 16, 128>}, {pipeline_mode = #tpu.pipeline_mode<synchronous>, transform_indices = @transform_1, window_bounds = array<i64: 128, 25>}, {pipeline_mode = #tpu.pipeline_mode<synchronous>, transform_indices = @transform_2, window_bounds = array<i64: 2, 25>}, {transform_indices = @transform_3, window_bounds = array<i64: 16, 25>}]} {
    %c0 = arith.constant 0 : index
    %c0_0 = arith.constant 0 : index
    %0 = vector.load %arg1[%c0, %c0_0] : memref<16x128xbf16, #tpu.memory_space<vmem>>, vector<16x128xbf16>
    %c0_1 = arith.constant 0 : index
    %c0_2 = arith.constant 0 : index
    %1 = vector.load %arg2[%c0_1, %c0_2] : memref<128x25xbf16, #tpu.memory_space<vmem>>, vector<128x25xbf16>
    %cst = arith.constant dense<0.000000e+00> : vector<16x25xf32>
    %2 = tpu.matmul %0, %1, %cst {dimension_numbers = #tpu.dot_dimension_numbers<[1], [0], [0], [1], [0, 0, 1, 1], [], []>} : vector<16x128xbf16>, vector<128x25xbf16>, vector<16x25xf32> -> vector<16x25xf32>
    %c0_3 = arith.constant 0 : index
    %c0_4 = arith.constant 0 : index
    %3 = vector.load %arg3[%c0_3, %c0_4] : memref<2x25xf32, #tpu.memory_space<vmem>>, vector<1x25xf32>
    %4 = vector.broadcast %3 : vector<1x25xf32> to vector<16x25xf32>
    %5 = arith.addf %2, %4 : vector<16x25xf32>
    %cst_5 = arith.constant 0.000000e+00 : f32
    %6 = vector.broadcast %cst_5 : f32 to vector<16x25xf32>
    %7 = arith.cmpf ogt, %5, %6 : vector<16x25xf32>
    %c1 = arith.constant 1 : index
    %c0_6 = arith.constant 0 : index
    %8 = vector.load %arg3[%c1, %c0_6] : memref<2x25xf32, #tpu.memory_space<vmem>>, vector<1x25xf32>
    %9 = vector.broadcast %8 : vector<1x25xf32> to vector<16x25xf32>
    %10 = arith.mulf %9, %5 : vector<16x25xf32>
    %11 = arith.select %7, %5, %10 : vector<16x25xi1>, vector<16x25xf32>
    %12 = arith.truncf %11 : vector<16x25xf32> to vector<16x25xbf16>
    %c0_7 = arith.constant 0 : index
    %c0_8 = arith.constant 0 : index
    %13 = vector.load %arg4[%c0_7, %c0_8] : memref<16x25xbf16, #tpu.memory_space<vmem>>, vector<16x25xbf16>
    tpu.vector_store %arg4[%c0_7, %c0_8], %12 {strides = array<i32>} : memref<16x25xbf16, #tpu.memory_space<vmem>>, vector<16x25xbf16>,
    return
  }
  func.func @transform_0(%arg0: i32) -> (i32, i32) {
    %c0_i32 = arith.constant 0 : i32
    %c0_i32_0 = arith.constant 0 : i32
    return %arg0, %c0_i32 : i32, i32
  }
  func.func @transform_1(%arg0: i32) -> (i32, i32) {
    %c0_i32 = arith.constant 0 : i32
    %c0_i32_0 = arith.constant 0 : i32
    %c0_i32_1 = arith.constant 0 : i32
    return %c0_i32, %c0_i32_0 : i32, i32
  }
  func.func @transform_2(%arg0: i32) -> (i32, i32) {
    %c0_i32 = arith.constant 0 : i32
    %c0_i32_0 = arith.constant 0 : i32
    %c0_i32_1 = arith.constant 0 : i32
    return %c0_i32, %c0_i32_0 : i32, i32
  }
  func.func @transform_3(%arg0: i32) -> (i32, i32) {
    %c0_i32 = arith.constant 0 : i32
    %c0_i32_0 = arith.constant 0 : i32
    return %arg0, %c0_i32 : i32, i32
  }
}

module attributes {stable_mosaic.version = 11 : i64} {
  func.func @kernel(%arg0: i32, %arg1: memref<16x1025xbf16, #tpu.memory_space<vmem>>, %arg2: memref<16x128xbf16, #tpu.memory_space<vmem>>, %arg3: memref<1025x128xbf16, #tpu.memory_space<vmem>>, %arg4: memref<128x128xbf16, #tpu.memory_space<vmem>>, %arg5: memref<2x128xf32, #tpu.memory_space<vmem>>, %arg6: memref<16x128xbf16, #tpu.memory_space<vmem>>) attributes {dimension_semantics = [#tpu.dimension_semantics<parallel>], iteration_bounds = array<i64: 2>, scalar_prefetch = 0 : i64, scratch_operands = 0 : i64, tpu.core_type = #tpu.core_type<tc>, window_params = [{transform_indices = @transform_0, window_bounds = array<i64: 16, 1025>}, {transform_indices = @transform_1, window_bounds = array<i64: 16, 128>}, {pipeline_mode = #tpu.pipeline_mode<synchronous>, transform_indices = @transform_2, window_bounds = array<i64: 1025, 128>}, {pipeline_mode = #tpu.pipeline_mode<synchronous>, transform_indices = @transform_3, window_bounds = array<i64: 128, 128>}, {pipeline_mode = #tpu.pipeline_mode<synchronous>, transform_indices = @transform_4, window_bounds = array<i64: 2, 128>}, {transform_indices = @transform_5, window_bounds = array<i64: 16, 128>}]} {
    %c0 = arith.constant 0 : index
    %c0_0 = arith.constant 0 : index
    %0 = vector.load %arg1[%c0, %c0_0] : memref<16x1025xbf16, #tpu.memory_space<vmem>>, vector<16x1025xbf16>
    %c0_1 = arith.constant 0 : index
    %c0_2 = arith.constant 0 : index
    %1 = vector.load %arg3[%c0_1, %c0_2] : memref<1025x128xbf16, #tpu.memory_space<vmem>>, vector<1025x128xbf16>
    %cst = arith.constant dense<0.000000e+00> : vector<16x128xf32>
    %2 = tpu.matmul %0, %1, %cst {dimension_numbers = #tpu.dot_dimension_numbers<[1], [0], [0], [1], [0, 0, 1, 1], [], []>} : vector<16x1025xbf16>, vector<1025x128xbf16>, vector<16x128xf32> -> vector<16x128xf32>
    %c0_3 = arith.constant 0 : index
    %c0_4 = arith.constant 0 : index
    %3 = vector.load %arg2[%c0_3, %c0_4] : memref<16x128xbf16, #tpu.memory_space<vmem>>, vector<16x128xbf16>
    %c0_5 = arith.constant 0 : index
    %c0_6 = arith.constant 0 : index
    %4 = vector.load %arg4[%c0_5, %c0_6] : memref<128x128xbf16, #tpu.memory_space<vmem>>, vector<128x128xbf16>
    %cst_7 = arith.constant dense<0.000000e+00> : vector<16x128xf32>
    %5 = tpu.matmul %3, %4, %cst_7 {dimension_numbers = #tpu.dot_dimension_numbers<[1], [0], [0], [1], [0, 0, 1, 1], [], []>} : vector<16x128xbf16>, vector<128x128xbf16>, vector<16x128xf32> -> vector<16x128xf32>
    %6 = arith.addf %2, %5 : vector<16x128xf32>
    %c0_8 = arith.constant 0 : index
    %c0_9 = arith.constant 0 : index
    %7 = vector.load %arg5[%c0_8, %c0_9] : memref<2x128xf32, #tpu.memory_space<vmem>>, vector<1x128xf32>
    %8 = vector.broadcast %7 : vector<1x128xf32> to vector<16x128xf32>
    %9 = arith.addf %6, %8 : vector<16x128xf32>
    %cst_10 = arith.constant 0.000000e+00 : f32
    %10 = vector.broadcast %cst_10 : f32 to vector<16x128xf32>
    %11 = arith.cmpf ogt, %9, %10 : vector<16x128xf32>
    %c1 = arith.constant 1 : index
    %c0_11 = arith.constant 0 : index
    %12 = vector.load %arg5[%c1, %c0_11] : memref<2x128xf32, #tpu.memory_space<vmem>>, vector<1x128xf32>
    %13 = vector.broadcast %12 : vector<1x128xf32> to vector<16x128xf32>
    %14 = arith.mulf %13, %9 : vector<16x128xf32>
    %15 = arith.select %11, %9, %14 : vector<16x128xi1>, vector<16x128xf32>
    %16 = arith.truncf %15 : vector<16x128xf32> to vector<16x128xbf16>
    %c0_12 = arith.constant 0 : index
    %c0_13 = arith.constant 0 : index
    %17 = vector.load %arg6[%c0_12, %c0_13] : memref<16x128xbf16, #tpu.memory_space<vmem>>, vector<16x128xbf16>
    tpu.vector_store %arg6[%c0_12, %c0_13], %16 {strides = array<i32>} : memref<16x128xbf16, #tpu.memory_space<vmem>>, vector<16x128xbf16>,
    return
  }
  func.func @transform_0(%arg0: i32) -> (i32, i32) {
    %c0_i32 = arith.constant 0 : i32
    %c0_i32_0 = arith.constant 0 : i32
    return %arg0, %c0_i32 : i32, i32
  }
  func.func @transform_1(%arg0: i32) -> (i32, i32) {
    %c0_i32 = arith.constant 0 : i32
    %c0_i32_0 = arith.constant 0 : i32
    return %arg0, %c0_i32 : i32, i32
  }
  func.func @transform_2(%arg0: i32) -> (i32, i32) {
    %c0_i32 = arith.constant 0 : i32
    %c0_i32_0 = arith.constant 0 : i32
    %c0_i32_1 = arith.constant 0 : i32
    return %c0_i32, %c0_i32_0 : i32, i32
  }
  func.func @transform_3(%arg0: i32) -> (i32, i32) {
    %c0_i32 = arith.constant 0 : i32
    %c0_i32_0 = arith.constant 0 : i32
    %c0_i32_1 = arith.constant 0 : i32
    return %c0_i32, %c0_i32_0 : i32, i32
  }
  func.func @transform_4(%arg0: i32) -> (i32, i32) {
    %c0_i32 = arith.constant 0 : i32
    %c0_i32_0 = arith.constant 0 : i32
    %c0_i32_1 = arith.constant 0 : i32
    return %c0_i32, %c0_i32_0 : i32, i32
  }
  func.func @transform_5(%arg0: i32) -> (i32, i32) {
    %c0_i32 = arith.constant 0 : i32
    %c0_i32_0 = arith.constant 0 : i32
    return %arg0, %c0_i32 : i32, i32
  }
}

module attributes {stable_mosaic.version = 11 : i64} {
  func.func @_b3_cls_kernel(%arg0: i32, %arg1: memref<16x128xbf16, #tpu.memory_space<vmem>>, %arg2: memref<16x128xbf16, #tpu.memory_space<vmem>>, %arg3: memref<128x256xbf16, #tpu.memory_space<vmem>>, %arg4: memref<128x256xbf16, #tpu.memory_space<vmem>>, %arg5: memref<2x256xf32, #tpu.memory_space<vmem>>, %arg6: memref<256x20xbf16, #tpu.memory_space<vmem>>, %arg7: memref<16x20xf32, #tpu.memory_space<vmem>>) attributes {dimension_semantics = [#tpu.dimension_semantics<parallel>], iteration_bounds = array<i64: 2>, scalar_prefetch = 0 : i64, scratch_operands = 0 : i64, tpu.core_type = #tpu.core_type<tc>, window_params = [{transform_indices = @transform_0, window_bounds = array<i64: 16, 128>}, {transform_indices = @transform_1, window_bounds = array<i64: 16, 128>}, {pipeline_mode = #tpu.pipeline_mode<synchronous>, transform_indices = @transform_2, window_bounds = array<i64: 128, 256>}, {pipeline_mode = #tpu.pipeline_mode<synchronous>, transform_indices = @transform_3, window_bounds = array<i64: 128, 256>}, {pipeline_mode = #tpu.pipeline_mode<synchronous>, transform_indices = @transform_4, window_bounds = array<i64: 2, 256>}, {pipeline_mode = #tpu.pipeline_mode<synchronous>, transform_indices = @transform_5, window_bounds = array<i64: 256, 20>}, {transform_indices = @transform_6, window_bounds = array<i64: 16, 20>}]} {
    %c0 = arith.constant 0 : index
    %c0_0 = arith.constant 0 : index
    %0 = vector.load %arg1[%c0, %c0_0] : memref<16x128xbf16, #tpu.memory_space<vmem>>, vector<16x128xbf16>
    %c0_1 = arith.constant 0 : index
    %c0_2 = arith.constant 0 : index
    %1 = vector.load %arg3[%c0_1, %c0_2] : memref<128x256xbf16, #tpu.memory_space<vmem>>, vector<128x256xbf16>
    %cst = arith.constant dense<0.000000e+00> : vector<16x256xf32>
    %2 = tpu.matmul %0, %1, %cst {dimension_numbers = #tpu.dot_dimension_numbers<[1], [0], [0], [1], [0, 0, 1, 1], [], []>} : vector<16x128xbf16>, vector<128x256xbf16>, vector<16x256xf32> -> vector<16x256xf32>
    %c0_3 = arith.constant 0 : index
    %c0_4 = arith.constant 0 : index
    %3 = vector.load %arg2[%c0_3, %c0_4] : memref<16x128xbf16, #tpu.memory_space<vmem>>, vector<16x128xbf16>
    %c0_5 = arith.constant 0 : index
    %c0_6 = arith.constant 0 : index
    %4 = vector.load %arg4[%c0_5, %c0_6] : memref<128x256xbf16, #tpu.memory_space<vmem>>, vector<128x256xbf16>
    %cst_7 = arith.constant dense<0.000000e+00> : vector<16x256xf32>
    %5 = tpu.matmul %3, %4, %cst_7 {dimension_numbers = #tpu.dot_dimension_numbers<[1], [0], [0], [1], [0, 0, 1, 1], [], []>} : vector<16x128xbf16>, vector<128x256xbf16>, vector<16x256xf32> -> vector<16x256xf32>
    %6 = arith.addf %2, %5 : vector<16x256xf32>
    %c0_8 = arith.constant 0 : index
    %c0_9 = arith.constant 0 : index
    %7 = vector.load %arg5[%c0_8, %c0_9] : memref<2x256xf32, #tpu.memory_space<vmem>>, vector<1x256xf32>
    %8 = vector.broadcast %7 : vector<1x256xf32> to vector<16x256xf32>
    %9 = arith.addf %6, %8 : vector<16x256xf32>
    %cst_10 = arith.constant 0.000000e+00 : f32
    %10 = vector.broadcast %cst_10 : f32 to vector<16x256xf32>
    %11 = arith.cmpf ogt, %9, %10 : vector<16x256xf32>
    %c1 = arith.constant 1 : index
    %c0_11 = arith.constant 0 : index
    %12 = vector.load %arg5[%c1, %c0_11] : memref<2x256xf32, #tpu.memory_space<vmem>>, vector<1x256xf32>
    %13 = vector.broadcast %12 : vector<1x256xf32> to vector<16x256xf32>
    %14 = arith.mulf %13, %9 : vector<16x256xf32>
    %15 = arith.select %11, %9, %14 : vector<16x256xi1>, vector<16x256xf32>
    %16 = arith.truncf %15 : vector<16x256xf32> to vector<16x256xbf16>
    %c0_12 = arith.constant 0 : index
    %c0_13 = arith.constant 0 : index
    %17 = vector.load %arg6[%c0_12, %c0_13] : memref<256x20xbf16, #tpu.memory_space<vmem>>, vector<256x20xbf16>
    %cst_14 = arith.constant dense<0.000000e+00> : vector<16x20xf32>
    %18 = tpu.matmul %16, %17, %cst_14 {dimension_numbers = #tpu.dot_dimension_numbers<[1], [0], [0], [1], [0, 0, 1, 1], [], []>} : vector<16x256xbf16>, vector<256x20xbf16>, vector<16x20xf32> -> vector<16x20xf32>
    %c0_15 = arith.constant 0 : index
    %c0_16 = arith.constant 0 : index
    %19 = vector.load %arg7[%c0_15, %c0_16] : memref<16x20xf32, #tpu.memory_space<vmem>>, vector<16x20xf32>
    tpu.vector_store %arg7[%c0_15, %c0_16], %18 {strides = array<i32>} : memref<16x20xf32, #tpu.memory_space<vmem>>, vector<16x20xf32>,
    return
  }
  func.func @transform_0(%arg0: i32) -> (i32, i32) {
    %c0_i32 = arith.constant 0 : i32
    %c0_i32_0 = arith.constant 0 : i32
    return %arg0, %c0_i32 : i32, i32
  }
  func.func @transform_1(%arg0: i32) -> (i32, i32) {
    %c0_i32 = arith.constant 0 : i32
    %c0_i32_0 = arith.constant 0 : i32
    return %arg0, %c0_i32 : i32, i32
  }
  func.func @transform_2(%arg0: i32) -> (i32, i32) {
    %c0_i32 = arith.constant 0 : i32
    %c0_i32_0 = arith.constant 0 : i32
    %c0_i32_1 = arith.constant 0 : i32
    return %c0_i32, %c0_i32_0 : i32, i32
  }
  func.func @transform_3(%arg0: i32) -> (i32, i32) {
    %c0_i32 = arith.constant 0 : i32
    %c0_i32_0 = arith.constant 0 : i32
    %c0_i32_1 = arith.constant 0 : i32
    return %c0_i32, %c0_i32_0 : i32, i32
  }
  func.func @transform_4(%arg0: i32) -> (i32, i32) {
    %c0_i32 = arith.constant 0 : i32
    %c0_i32_0 = arith.constant 0 : i32
    %c0_i32_1 = arith.constant 0 : i32
    return %c0_i32, %c0_i32_0 : i32, i32
  }
  func.func @transform_5(%arg0: i32) -> (i32, i32) {
    %c0_i32 = arith.constant 0 : i32
    %c0_i32_0 = arith.constant 0 : i32
    %c0_i32_1 = arith.constant 0 : i32
    return %c0_i32, %c0_i32_0 : i32, i32
  }
  func.func @transform_6(%arg0: i32) -> (i32, i32) {
    %c0_i32 = arith.constant 0 : i32
    %c0_i32_0 = arith.constant 0 : i32
    return %arg0, %c0_i32 : i32, i32
  }
}

</mosaic_0001>

<bundles_post_ra>
// kernel: _lambda_.24
= control target key start
LH: loop header
LB: loop body
LE: loop exit
PB: predicated region body
PF: predicated region fallthrough
CT: control target
= control target key end

     0   :  { %s1067_s12 = smov 0   ;;  %s1273_s0 = inlined_call_operand.vmem [shape: bf16[512,27], index: 0, kind: input, shape index: {}]   ;;  %s1274_s1 = inlined_call_operand.vmem [shape: bf16[27,16], index: 1, kind: input, shape index: {}]   ;;  %s1275_s2 = inlined_call_operand.vmem [shape: f32[2,16], index: 2, kind: input, shape index: {}]   ;;  %s1276_s3 = inlined_call_operand.vmem [shape: bf16[512,16], index: 3, kind: output, shape index: {}]  }
   0x1 LB: > { %s842_s13 = sadd.s32 4294967295, %s1044_s12   ;;  %p846_p0 = scmp.ge.s32.totalorder %s1044_s12, 1  ;;  %s1044_s12 = sphi %s1067_s12, %s13_s12  }
   0x2   : > { %p138_p1 = scmp.lt.s32.totalorder %s1044_s12, 3 }
   0x4   : > { %p139_p2 = pnand %p846_p0, %p138_p1 }
   0x5   : > { %s847_s16 = sshll.u32 (!%p139_p2), %s842_s13, 5 }
   0x6   : > { %142 = sbr.rel (%p139_p2) target bundleno = 264 (0x108), region = 32  ;;  %p163_p3 = scmp.lt.s32.totalorder (!%p139_p2), %s847_s16, 63 }
   0xb   : > { %v1020_v0 = vld [vmem:[%s1274_s1 + $0x8] sm:$0x3f]   ;;  %vm356_vm0 = vcmask 1044480   ;;  %vm357_vm1 = vcmask 1045504   ;;  %v1046_v1 = vmov 65535   ;;  %v1021_v5 = vld [vmem:[%s1274_s1] sm:$0xff]  }
   0xc   : > { %v358_v2 = vsel %vm356_vm0, 4294967295, %v1046_v1  ;;  %s1278_s16 = smov (!%p163_p3, %s847_s16), 63  ;;  %vm307_vm2 = vcmask 220160   ;;  %v1126_v22 = vld [vmem:[%s1275_s2] ss:$0 sm:$0xff]  ;;  %vm753_vm5 = vcmask 125952  }
   0xd   : > { %v359_v3 = vsel %vm357_vm1, %v358_v2, 0  ;;  %s848_s19 = sshll.u32 %s1278_s16, 2  ;;  %v1131_v24 = vld [vmem:[%s1275_s2 + $0x1] ss:$0 sm:$0xff] }
   0xe   : > { %v361_v4 = vand.u32 %v1020_v0, %v359_v3  ;;  %s1089_s22 = scalar_lea.vmem %s1273_s0, %s848_s19  ;;  %s1144_s29 = scalar_lea.vmem %s1276_s3, %s848_s19 }
   0xf   : > { %v1022_v6 = vld [vmem:[%s1089_s22] sm:$0xff]   ;;  %v1024_v8 = vld [vmem:[%s1089_s22 + $0x8] sm:$0xff]   ;;  %v1026_v10 = vld [vmem:[%s1089_s22 + $0x10] sm:$0xff]  }
  0x10   : > { %971 = vmatprep.subr.bf16.mxu0 %v361_v4  ;;  %1007 = vmatprep.subr.bf16.mxu1 %v361_v4  ;;  %v1023_v7 = vld [vmem:[%s1089_s22 + $0x40] sm:$0xff]   ;;  %v1025_v9 = vld [vmem:[%s1089_s22 + $0x48] sm:$0xff]   ;;  %v1027_v11 = vld [vmem:[%s1089_s22 + $0x50] sm:$0xff]  }
  0x11   : > { %972 = vmatpush3.bf16.msra.mxu0 %v361_v4  ;;  %1009 = vmatpush3.bf16.msra.mxu1 %v361_v4  ;;  %v1028_v12 = vld [vmem:[%s1089_s22 + $0x18] sm:$0xff]   ;;  %v1030_v14 = vld [vmem:[%s1089_s22 + $0x20] sm:$0xff]   ;;  %v1032_v16 = vld [vmem:[%s1089_s22 + $0x28] sm:$0xff]  }
  0x12   : > { %973 = vmatprep.subr.bf16.mxu0 %v1021_v5  ;;  %1008 = vmatprep.subr.bf16.mxu1 %v1021_v5  ;;  %v1029_v13 = vld [vmem:[%s1089_s22 + $0x58] sm:$0xff]   ;;  %v1031_v15 = vld [vmem:[%s1089_s22 + $0x60] sm:$0xff]   ;;  %v1033_v17 = vld [vmem:[%s1089_s22 + $0x68] sm:$0xff]  }
  0x13   : > { %975 = vmatprep.mubr.msk.bf16.mxu0 %vm307_vm2, %v1022_v6  ;;  %991 = vmatprep.mubr.msk.bf16.mxu1 %vm307_vm2, %v1023_v7  ;;  %v1034_v18 = vld [vmem:[%s1089_s22 + $0x30] sm:$0xff]   ;;  %v1036_v20 = vld [vmem:[%s1089_s22 + $0x38] sm:$0xff]  }
  0x14   : > { %v1035_v19 = vld [vmem:[%s1089_s22 + $0x70] sm:$0xff]   ;;  %v1037_v21 = vld [vmem:[%s1089_s22 + $0x78] sm:$0xff]  }
  0x15   : > { %974 = vmatpush3.bf16.msra.mxu0 %v1021_v5  ;;  %1010 = vmatpush3.bf16.msra.mxu1 %v1021_v5 }
  0x18   : > { %976 = vmatmul.mubr.msk.bf16.vlgmr.msra.gmra.mxu0 %vm307_vm2, %v1024_v8  ;;  %992 = vmatmul.mubr.msk.bf16.vlgmr.msra.gmra.mxu1 %vm307_vm2, %v1025_v9 }
  0x19   : > { %979 = vmatprep.mubr.msk.bf16.mxu0 %vm307_vm2, %v1026_v10  ;;  %995 = vmatprep.mubr.msk.bf16.mxu1 %vm307_vm2, %v1027_v11 }
  0x20   : > { %980 = vmatmul.mubr.msk.bf16.gmra.mxu0 %vm307_vm2, %v1028_v12  ;;  %996 = vmatmul.mubr.msk.bf16.gmra.mxu1 %vm307_vm2, %v1029_v13 }
  0x21   : > { %983 = vmatprep.mubr.msk.bf16.mxu0 %vm307_vm2, %v1030_v14  ;;  %999 = vmatprep.mubr.msk.bf16.mxu1 %vm307_vm2, %v1031_v15 }
  0x28   : > { %984 = vmatmul.mubr.msk.bf16.gmra.mxu0 %vm307_vm2, %v1032_v16  ;;  %1000 = vmatmul.mubr.msk.bf16.gmra.mxu1 %vm307_vm2, %v1033_v17 }
  0x29   : > { %987 = vmatprep.mubr.msk.bf16.mxu0 %vm307_vm2, %v1034_v18  ;;  %1003 = vmatprep.mubr.msk.bf16.mxu1 %vm307_vm2, %v1035_v19 }
  0x30   : > { %988 = vmatmul.mubr.msk.bf16.gmra.mxu0 %vm307_vm2, %v1036_v20  ;;  %1004 = vmatmul.mubr.msk.bf16.gmra.mxu1 %vm307_vm2, %v1037_v21 }
  0xd8   : > { %v977_v23 = vpop.f32.mrf.mxu0  ;;  %v993_v25 = vpop.f32.mrf.mxu1 }
  0xd9   : > { %v406_v26 = vadd.f32 %v977_v23, %v1126_v22  ;;  %v470_v27 = vadd.f32 %v993_v25, %v1126_v22 }
  0xda   : > { %v397_v28 = vpop.f32.mrf.mxu0  ;;  %v461_v29 = vpop.f32.mrf.mxu1 }
  0xdb   : > { %vm526_vm3 = vcmp.gt.f32.partialorder %v406_v26, 0.0  ;;  %v563_v30 = vmul.f32 %v1131_v24, %v406_v26  ;;  %vm542_vm4 = vcmp.gt.f32.partialorder %v470_v27, 0.0  ;;  %v579_v31 = vmul.f32 %v1131_v24, %v470_v27 }
  0xdc   : > { %v398_v32 = vadd.f32 %v1126_v22, %v397_v28  ;;  %v462_v33 = vadd.f32 %v1126_v22, %v461_v29  ;;  %v978_v34 = vpop.f32.mrf.mxu0  ;;  %v994_v35 = vpop.f32.mrf.mxu1 }
  0xdd   : > { %v595_v36 = vsel %vm526_vm3, %v406_v26, %v563_v30  ;;  %v611_v37 = vsel %vm542_vm4, %v470_v27, %v579_v31  ;;  %v409_v38 = vadd.f32 %v978_v34, %v1126_v22  ;;  %v473_v39 = vadd.f32 %v994_v35, %v1126_v22 }
  0xde   : > { %v923_v40 = vpack.c.bf16 %v595_v36, %v595_v36  ;;  %v939_v41 = vpack.c.bf16 %v611_v37, %v611_v37  ;;  %vm524_vm6 = vcmp.gt.f32.partialorder %v398_v32, 0.0  ;;  %v561_v42 = vmul.f32 %v1131_v24, %v398_v32  ;;  %v400_v43 = vpop.f32.mrf.mxu0  ;;  %v464_v44 = vpop.f32.mrf.mxu1 }
  0xdf   : > { %vm540_vm7 = vcmp.gt.f32.partialorder %v462_v33, 0.0  ;;  %v577_v45 = vmul.f32 %v1131_v24, %v462_v33  ;;  %vm527_vm8 = vcmp.gt.f32.partialorder %v409_v38, 0.0  ;;  %v564_v46 = vmul.f32 %v1131_v24, %v409_v38 }
  0xe0   : > { %756 = vst.msk [vmem:[%s1144_s29 + $0x8] sm:$0xf] %vm753_vm5, %v923_v40  ;;  %772 = vst.msk [vmem:[%s1144_s29 + $0x48] sm:$0xf] %vm753_vm5, %v939_v41  ;;  %v593_v47 = vsel %vm524_vm6, %v398_v32, %v561_v42  ;;  %vm543_vm9 = vcmp.gt.f32.partialorder %v473_v39, 0.0  ;;  %v580_v48 = vmul.f32 %v1131_v24, %v473_v39  ;;  %v401_v49 = vadd.f32 %v1126_v22, %v400_v43  ;;  %v981_v50 = vpop.f32.mrf.mxu0  ;;  %v997_v51 = vpop.f32.mrf.mxu1 }
  0xe1   : > { %v921_v52 = vpack.c.bf16 %v593_v47, %v593_v47  ;;  %v609_v53 = vsel %vm540_vm7, %v462_v33, %v577_v45  ;;  %v596_v54 = vsel %vm527_vm8, %v409_v38, %v564_v46  ;;  %v465_v55 = vadd.f32 %v1126_v22, %v464_v44 }
  0xe2   : > { %v937_v56 = vpack.c.bf16 %v609_v53, %v609_v53  ;;  %v924_v57 = vpack.c.bf16 %v596_v54, %v596_v54  ;;  %v612_v58 = vsel %vm543_vm9, %v473_v39, %v580_v48  ;;  %vm525_vm10 = vcmp.gt.f32.partialorder %v401_v49, 0.0  ;;  %v413_v59 = vpop.f32.mrf.mxu0  ;;  %v477_v60 = vpop.f32.mrf.mxu1 }
  0xe3   : > { %754 = vst.msk [vmem:[%s1144_s29] sm:$0xf] %vm753_vm5, %v921_v52  ;;  %v940_v61 = vpack.c.bf16 %v612_v58, %v612_v58  ;;  %v562_v62 = vmul.f32 %v1131_v24, %v401_v49  ;;  %vm541_vm11 = vcmp.gt.f32.partialorder %v465_v55, 0.0  ;;  %v578_v63 = vmul.f32 %v1131_v24, %v465_v55 }
  0xe4   : > { %770 = vst.msk [vmem:[%s1144_s29 + $0x40] sm:$0xf] %vm753_vm5, %v937_v56  ;;  %757 = vst.msk [vmem:[%s1144_s29 + $0xc] sm:$0xf] %vm753_vm5, %v924_v57  ;;  %v422_v0 = vadd.f32 %v981_v50, %v1126_v22  ;;  %v486_v1 = vadd.f32 %v997_v51, %v1126_v22  ;;  %v414_v2 = vadd.f32 %v1126_v22, %v413_v59  ;;  %v982_v4 = vpop.f32.mrf.mxu0  ;;  %v998_v5 = vpop.f32.mrf.mxu1 }
  0xe5   : > { %v478_v3 = vadd.f32 %v1126_v22, %v477_v60  ;;  %773 = vst.msk [vmem:[%s1144_s29 + $0x4c] sm:$0xf] %vm753_vm5, %v940_v61  ;;  %v594_v6 = vsel %vm525_vm10, %v401_v49, %v562_v62  ;;  %v610_v7 = vsel %vm541_vm11, %v465_v55, %v578_v63  ;;  %v425_v8 = vadd.f32 %v982_v4, %v1126_v22 }
  0xe6   : > { %v489_v9 = vadd.f32 %v998_v5, %v1126_v22  ;;  %v922_v10 = vpack.c.bf16 %v594_v6, %v594_v6  ;;  %v938_v11 = vpack.c.bf16 %v610_v7, %v610_v7  ;;  %vm530_vm12 = vcmp.gt.f32.partialorder %v422_v0, 0.0  ;;  %v416_v13 = vpop.f32.mrf.mxu0  ;;  %v480_v14 = vpop.f32.mrf.mxu1 }
  0xe7   : > { %v567_v12 = vmul.f32 %v1131_v24, %v422_v0  ;;  %vm546_vm13 = vcmp.gt.f32.partialorder %v486_v1, 0.0  ;;  %v583_v15 = vmul.f32 %v1131_v24, %v486_v1  ;;  %vm528_vm14 = vcmp.gt.f32.partialorder %v414_v2, 0.0 }
  0xe8   : > { %v565_v16 = vmul.f32 %v1131_v24, %v414_v2  ;;  %755 = vst.msk [vmem:[%s1144_s29 + $0x4] sm:$0xf] %vm753_vm5, %v922_v10  ;;  %771 = vst.msk [vmem:[%s1144_s29 + $0x44] sm:$0xf] %vm753_vm5, %v938_v11  ;;  %vm544_vm15 = vcmp.gt.f32.partialorder %v478_v3, 0.0  ;;  %v581_v18 = vmul.f32 %v1131_v24, %v478_v3  ;;  %vm531_vm0 = vcmp.gt.f32.partialorder %v425_v8, 0.0  ;;  %v985_v19 = vpop.f32.mrf.mxu0  ;;  %v1001_v20 = vpop.f32.mrf.mxu1 }
  0xe9   : > { %v599_v17 = vsel %vm530_vm12, %v422_v0, %v567_v12  ;;  %v615_v23 = vsel %vm546_vm13, %v486_v1, %v583_v15  ;;  %v568_v26 = vmul.f32 %v1131_v24, %v425_v8  ;;  %vm547_vm1 = vcmp.gt.f32.partialorder %v489_v9, 0.0 }
  0xea   : > { %v927_v21 = vpack.c.bf16 %v599_v17, %v599_v17  ;;  %v597_v25 = vsel %vm528_vm14, %v414_v2, %v565_v16  ;;  %v943_v27 = vpack.c.bf16 %v615_v23, %v615_v23  ;;  %v613_v29 = vsel %vm544_vm15, %v478_v3, %v581_v18  ;;  %v429_v30 = vpop.f32.mrf.mxu0  ;;  %v493_v31 = vpop.f32.mrf.mxu1 }
  0xeb   : > { %v925_v28 = vpack.c.bf16 %v597_v25, %v597_v25  ;;  %v941_v32 = vpack.c.bf16 %v613_v29, %v613_v29  ;;  %v600_v33 = vsel %vm531_vm0, %v425_v8, %v568_v26  ;;  %v584_v34 = vmul.f32 %v1131_v24, %v489_v9 }
  0xec   : > { %760 = vst.msk [vmem:[%s1144_s29 + $0x18] sm:$0xf] %vm753_vm5, %v927_v21  ;;  %v417_v35 = vadd.f32 %v1126_v22, %v416_v13  ;;  %776 = vst.msk [vmem:[%s1144_s29 + $0x58] sm:$0xf] %vm753_vm5, %v943_v27  ;;  %v928_v36 = vpack.c.bf16 %v600_v33, %v600_v33  ;;  %v481_v37 = vadd.f32 %v1126_v22, %v480_v14  ;;  %v986_v40 = vpop.f32.mrf.mxu0  ;;  %v1002_v41 = vpop.f32.mrf.mxu1 }
  0xed   : > { %758 = vst.msk [vmem:[%s1144_s29 + $0x10] sm:$0xf] %vm753_vm5, %v925_v28  ;;  %v438_v38 = vadd.f32 %v985_v19, %v1126_v22  ;;  %v502_v39 = vadd.f32 %v1001_v20, %v1126_v22  ;;  %774 = vst.msk [vmem:[%s1144_s29 + $0x50] sm:$0xf] %vm753_vm5, %v941_v32  ;;  %v616_v42 = vsel %vm547_vm1, %v489_v9, %v584_v34 }
  0xee   : > { %vm529_vm2 = vcmp.gt.f32.partialorder %v417_v35, 0.0  ;;  %v566_v43 = vmul.f32 %v1131_v24, %v417_v35  ;;  %v430_v44 = vadd.f32 %v1126_v22, %v429_v30  ;;  %761 = vst.msk [vmem:[%s1144_s29 + $0x1c] sm:$0xf] %vm753_vm5, %v928_v36  ;;  %v944_v45 = vpack.c.bf16 %v616_v42, %v616_v42  ;;  %v432_v47 = vpop.f32.mrf.mxu0  ;;  %v496_v48 = vpop.f32.mrf.mxu1 }
  0xef   : > { %vm545_vm3 = vcmp.gt.f32.partialorder %v481_v37, 0.0  ;;  %v582_v46 = vmul.f32 %v1131_v24, %v481_v37  ;;  %vm534_vm4 = vcmp.gt.f32.partialorder %v438_v38, 0.0  ;;  %v571_v50 = vmul.f32 %v1131_v24, %v438_v38 }
  0xf0   : > { %v598_v49 = vsel %vm529_vm2, %v417_v35, %v566_v43  ;;  %vm550_vm6 = vcmp.gt.f32.partialorder %v502_v39, 0.0  ;;  %v587_v51 = vmul.f32 %v1131_v24, %v502_v39  ;;  %777 = vst.msk [vmem:[%s1144_s29 + $0x5c] sm:$0xf] %vm753_vm5, %v944_v45  ;;  %vm532_vm7 = vcmp.gt.f32.partialorder %v430_v44, 0.0  ;;  %v989_v55 = vpop.f32.mrf.mxu0  ;;  %v1005_v56 = vpop.f32.mrf.mxu1 }
  0xf1   : > { %v926_v52 = vpack.c.bf16 %v598_v49, %v598_v49  ;;  %v614_v53 = vsel %vm545_vm3, %v481_v37, %v582_v46  ;;  %v569_v54 = vmul.f32 %v1131_v24, %v430_v44  ;;  %v603_v58 = vsel %vm534_vm4, %v438_v38, %v571_v50 }
  0xf2   : > { %v942_v57 = vpack.c.bf16 %v614_v53, %v614_v53  ;;  %v619_v59 = vsel %vm550_vm6, %v502_v39, %v587_v51  ;;  %v494_v60 = vadd.f32 %v1126_v22, %v493_v31  ;;  %v931_v61 = vpack.c.bf16 %v603_v58, %v603_v58  ;;  %v445_v1 = vpop.f32.mrf.mxu0  ;;  %v509_v5 = vpop.f32.mrf.mxu1 }
  0xf3   : > { %759 = vst.msk [vmem:[%s1144_s29 + $0x14] sm:$0xf] %vm753_vm5, %v926_v52  ;;  %v947_v62 = vpack.c.bf16 %v619_v59, %v619_v59  ;;  %v601_v63 = vsel %vm532_vm7, %v430_v44, %v569_v54  ;;  %v441_v0 = vadd.f32 %v986_v40, %v1126_v22  ;;  %v505_v4 = vadd.f32 %v1002_v41, %v1126_v22 }
  0xf4   : > { %775 = vst.msk [vmem:[%s1144_s29 + $0x54] sm:$0xf] %vm753_vm5, %v942_v57  ;;  %v929_v2 = vpack.c.bf16 %v601_v63, %v601_v63  ;;  %vm548_vm8 = vcmp.gt.f32.partialorder %v494_v60, 0.0  ;;  %v585_v3 = vmul.f32 %v1131_v24, %v494_v60  ;;  %764 = vst.msk [vmem:[%s1144_s29 + $0x28] sm:$0xf] %vm753_vm5, %v931_v61  ;;  %v433_v7 = vadd.f32 %v1126_v22, %v432_v47  ;;  %v990_v15 = vpop.f32.mrf.mxu0  ;;  %v1006_v19 = vpop.f32.mrf.mxu1 }
  0xf5   : > { %780 = vst.msk [vmem:[%s1144_s29 + $0x68] sm:$0xf] %vm753_vm5, %v947_v62  ;;  %vm535_vm9 = vcmp.gt.f32.partialorder %v441_v0, 0.0  ;;  %v572_v6 = vmul.f32 %v1131_v24, %v441_v0  ;;  %v497_v8 = vadd.f32 %v1126_v22, %v496_v48  ;;  %vm551_vm10 = vcmp.gt.f32.partialorder %v505_v4, 0.0 }
  0xf6   : > { %762 = vst.msk [vmem:[%s1144_s29 + $0x20] sm:$0xf] %vm753_vm5, %v929_v2  ;;  %v617_v9 = vsel %vm548_vm8, %v494_v60, %v585_v3  ;;  %v588_v10 = vmul.f32 %v1131_v24, %v505_v4  ;;  %v454_v11 = vadd.f32 %v989_v55, %v1126_v22  ;;  %vm533_vm11 = vcmp.gt.f32.partialorder %v433_v7, 0.0  ;;  %v448_v33 = vpop.f32.mrf.mxu0  ;;  %v512_v36 = vpop.f32.mrf.mxu1 }
  0xf7   : > { %v945_v12 = vpack.c.bf16 %v617_v9, %v617_v9  ;;  %v604_v13 = vsel %vm535_vm9, %v441_v0, %v572_v6  ;;  %v570_v14 = vmul.f32 %v1131_v24, %v433_v7  ;;  %vm549_vm12 = vcmp.gt.f32.partialorder %v497_v8, 0.0 }
  0xf8   : > { %v932_v16 = vpack.c.bf16 %v604_v13, %v604_v13  ;;  %v620_v17 = vsel %vm551_vm10, %v505_v4, %v588_v10  ;;  %v586_v18 = vmul.f32 %v1131_v24, %v497_v8  ;;  %vm538_vm13 = vcmp.gt.f32.partialorder %v454_v11, 0.0 }
  0xf9   : > { %778 = vst.msk [vmem:[%s1144_s29 + $0x60] sm:$0xf] %vm753_vm5, %v945_v12  ;;  %v948_v20 = vpack.c.bf16 %v620_v17, %v620_v17  ;;  %v602_v21 = vsel %vm533_vm11, %v433_v7, %v570_v14  ;;  %v575_v23 = vmul.f32 %v1131_v24, %v454_v11  ;;  %v518_v27 = vadd.f32 %v1005_v56, %v1126_v22 }
  0xfa   : > { %765 = vst.msk [vmem:[%s1144_s29 + $0x2c] sm:$0xf] %vm753_vm5, %v932_v16  ;;  %v930_v25 = vpack.c.bf16 %v602_v21, %v602_v21  ;;  %v618_v26 = vsel %vm549_vm12, %v497_v8, %v586_v18  ;;  %v446_v28 = vadd.f32 %v1126_v22, %v445_v1  ;;  %v510_v31 = vadd.f32 %v1126_v22, %v509_v5 }
  0xfb   : > { %781 = vst.msk [vmem:[%s1144_s29 + $0x6c] sm:$0xf] %vm753_vm5, %v948_v20  ;;  %v946_v29 = vpack.c.bf16 %v618_v26, %v618_v26  ;;  %v607_v30 = vsel %vm538_vm13, %v454_v11, %v575_v23  ;;  %v457_v32 = vadd.f32 %v990_v15, %v1126_v22  ;;  %vm554_vm14 = vcmp.gt.f32.partialorder %v518_v27, 0.0 }
  0xfc   : > { %763 = vst.msk [vmem:[%s1144_s29 + $0x24] sm:$0xf] %vm753_vm5, %v930_v25  ;;  %v935_v34 = vpack.c.bf16 %v607_v30, %v607_v30  ;;  %v591_v35 = vmul.f32 %v1131_v24, %v518_v27  ;;  %vm536_vm15 = vcmp.gt.f32.partialorder %v446_v28, 0.0  ;;  %v573_v37 = vmul.f32 %v1131_v24, %v446_v28 }
  0xfd   : > { %779 = vst.msk [vmem:[%s1144_s29 + $0x64] sm:$0xf] %vm753_vm5, %v946_v29  ;;  %vm552_vm0 = vcmp.gt.f32.partialorder %v510_v31, 0.0  ;;  %v589_v38 = vmul.f32 %v1131_v24, %v510_v31  ;;  %vm539_vm1 = vcmp.gt.f32.partialorder %v457_v32, 0.0  ;;  %v576_v40 = vmul.f32 %v1131_v24, %v457_v32 }
  0xfe   : > { %768 = vst.msk [vmem:[%s1144_s29 + $0x38] sm:$0xf] %vm753_vm5, %v935_v34  ;;  %v623_v39 = vsel %vm554_vm14, %v518_v27, %v591_v35  ;;  %v521_v41 = vadd.f32 %v1006_v19, %v1126_v22  ;;  %v449_v42 = vadd.f32 %v1126_v22, %v448_v33  ;;  %v605_v44 = vsel %vm536_vm15, %v446_v28, %v573_v37 }
  0xff   : > { %v951_v43 = vpack.c.bf16 %v623_v39, %v623_v39  ;;  %v621_v45 = vsel %vm552_vm0, %v510_v31, %v589_v38  ;;  %v513_v46 = vadd.f32 %v1126_v22, %v512_v36  ;;  %v933_v47 = vpack.c.bf16 %v605_v44, %v605_v44 }
 0x100   : > { %v949_v48 = vpack.c.bf16 %v621_v45, %v621_v45  ;;  %v608_v49 = vsel %vm539_vm1, %v457_v32, %v576_v40  ;;  %vm555_vm2 = vcmp.gt.f32.partialorder %v521_v41, 0.0  ;;  %v592_v51 = vmul.f32 %v1131_v24, %v521_v41 }
 0x101   : > { %784 = vst.msk [vmem:[%s1144_s29 + $0x78] sm:$0xf] %vm753_vm5, %v951_v43  ;;  %v936_v50 = vpack.c.bf16 %v608_v49, %v608_v49  ;;  %vm537_vm3 = vcmp.gt.f32.partialorder %v449_v42, 0.0  ;;  %v574_v52 = vmul.f32 %v1131_v24, %v449_v42  ;;  %766 = vst.msk [vmem:[%s1144_s29 + $0x30] sm:$0xf] %vm753_vm5, %v933_v47  ;;  %vm553_vm4 = vcmp.gt.f32.partialorder %v513_v46, 0.0 }
 0x102   : > { %782 = vst.msk [vmem:[%s1144_s29 + $0x70] sm:$0xf] %vm753_vm5, %v949_v48  ;;  %v590_v22 = vmul.f32 %v1131_v24, %v513_v46  ;;  %v624_v53 = vsel %vm555_vm2, %v521_v41, %v592_v51 }
 0x103   : > { %769 = vst.msk [vmem:[%s1144_s29 + $0x3c] sm:$0xf] %vm753_vm5, %v936_v50  ;;  %v606_v54 = vsel %vm537_vm3, %v449_v42, %v574_v52  ;;  %v952_v55 = vpack.c.bf16 %v624_v53, %v624_v53 }
 0x104   : > { %v934_v56 = vpack.c.bf16 %v606_v54, %v606_v54  ;;  %v622_v57 = vsel %vm553_vm4, %v513_v46, %v590_v22 }
 0x105   : > { %v950_v58 = vpack.c.bf16 %v622_v57, %v622_v57  ;;  %785 = vst.msk [vmem:[%s1144_s29 + $0x7c] sm:$0xf] %vm753_vm5, %v952_v55 }
 0x106   : > { %767 = vst.msk [vmem:[%s1144_s29 + $0x34] sm:$0xf] %vm753_vm5, %v934_v56 }
 0x107   : > { %783 = vst.msk [vmem:[%s1144_s29 + $0x74] sm:$0xf] %vm753_vm5, %v950_v58 }
 0x108 PF: > { %s13_s12 = sadd.s32 1, %s1044_s12  }
 0x109   : > { %p10_p4 = scmp.ge.s32.totalorder %s13_s12, 4  }
 0x10b   :  { %12 = sbr.rel (!%p10_p4) target bundleno = 1 (0x1), region = 62 }

// kernel: _lambda_.25
= control target key start
LH: loop header
LB: loop body
LE: loop exit
PB: predicated region body
PF: predicated region fallthrough
CT: control target
= control target key end

     0   :  { %s1601_s18 = smov 0   ;;  %s1840_s0 = inlined_call_operand.vmem [shape: bf16[512,16], index: 0, kind: input, shape index: {}]   ;;  %s1841_s1 = inlined_call_operand.vmem [shape: bf16[512,8], index: 1, kind: input, shape index: {}]   ;;  %s1842_s2 = inlined_call_operand.vmem [shape: bf16[16,19], index: 2, kind: input, shape index: {}]   ;;  %s1843_s3 = inlined_call_operand.vmem [shape: bf16[8,19], index: 3, kind: input, shape index: {}]   ;;  %s1844_s4 = inlined_call_operand.vmem [shape: f32[2,19], index: 4, kind: input, shape index: {}]   ;;  %s1845_s5 = inlined_call_operand.vmem [shape: bf16[512,19], index: 5, kind: output, shape index: {}]  }
   0x1 LB: > { %s1275_s19 = sadd.s32 4294967295, %s1569_s18   ;;  %p1279_p0 = scmp.ge.s32.totalorder %s1569_s18, 1  ;;  %s1569_s18 = sphi %s1601_s18, %s15_s18  }
   0x2   : > { %p199_p1 = scmp.lt.s32.totalorder %s1569_s18, 3 }
   0x4   : > { %p200_p2 = pnand %p1279_p0, %p199_p1 }
   0x5   : > { %s1280_s24 = sshll.u32 (!%p200_p2), %s1275_s19, 5 }
   0x6   : > { %203 = sbr.rel (%p200_p2) target bundleno = 283 (0x11b), region = 40  ;;  %p233_p3 = scmp.lt.s32.totalorder (!%p200_p2), %s1280_s24, 63 }
   0xb   : > { %v317_v0 = vld [vmem:[%s1843_s3] sm:$0xf]  ;;  %vm447_vm0 = vcmask 1043456   ;;  %s1847_s24 = smov (!%p233_p3, %s1280_s24), 63  ;;  %vm398_vm1 = vcmask 64512   ;;  %vm698_vm2 = vcmask 130048  }
   0xc   : > { %v1530_v1 = vld [vmem:[%s1842_s2] sm:$0xff]   ;;  %1521 = vmatprep.subr.msk.bf16.mxu0 %vm447_vm0, %v317_v0  ;;  %v449_v2 = vsel %vm447_vm0, %v317_v0, 0  ;;  %s1615_s25 = sshll.u32 %s1847_s24, 2  ;;  %vm1174_vm4 = vcmask 150528  }
   0xd   : > { %1487 = vmatprep.subr.bf16.mxu1 %v1530_v1  ;;  %1454 = vmatpush3.bf16.msra.mxu0 %v449_v2  ;;  %s1621_s28 = scalar_lea.vmem %s1841_s1, %s1615_s25  ;;  %s1628_s6 = scalar_lea.vmem %s1840_s0, %s1615_s25  ;;  %v1696_v37 = vld [vmem:[%s1844_s4] ss:$0 sm:$0xff]  ;;  %v1701_v40 = vld [vmem:[%s1844_s4 + $0x1] ss:$0 sm:$0xff] }
   0xe   : > { %1488 = vmatpush3.bf16.msra.mxu1 %v1530_v1  ;;  %v1531_v3 = vld [vmem:[%s1621_s28] sm:$0xff]   ;;  %v1533_v5 = vld [vmem:[%s1621_s28 + $0x8] sm:$0xff]   ;;  %v1535_v7 = vld [vmem:[%s1621_s28 + $0x10] sm:$0xff]   ;;  %s1710_s13 = scalar_lea.vmem %s1845_s5, %s1615_s25 }
   0xf   : > { %v1532_v4 = vld [vmem:[%s1628_s6] sm:$0xff]   ;;  %1455 = vmatprep.mubr.msk.bf16.mxu0 %vm398_vm1, %v1531_v3  ;;  %v1534_v6 = vld [vmem:[%s1628_s6 + $0x8] sm:$0xff]   ;;  %v1536_v8 = vld [vmem:[%s1628_s6 + $0x10] sm:$0xff]  }
  0x10   : > { %1489 = vmatprep.mubr.msk.bf16.mxu1 %vm698_vm2, %v1532_v4  ;;  %1456 = vmatmul.mubr.msk.bf16.vlgmr.msra.gmra.mxu0 %vm398_vm1, %v1533_v5  ;;  %v1537_v9 = vld [vmem:[%s1621_s28 + $0x18] sm:$0xff]   ;;  %v1539_v11 = vld [vmem:[%s1621_s28 + $0x20] sm:$0xff]   ;;  %v1541_v13 = vld [vmem:[%s1621_s28 + $0x28] sm:$0xff]  }
  0x11   : > { %1490 = vmatmul.mubr.msk.bf16.vlgmr.msra.gmra.mxu1 %vm698_vm2, %v1534_v6  ;;  %1459 = vmatprep.mubr.msk.bf16.mxu0 %vm398_vm1, %v1535_v7  ;;  %v1538_v10 = vld [vmem:[%s1628_s6 + $0x18] sm:$0xff]   ;;  %v1540_v12 = vld [vmem:[%s1628_s6 + $0x20] sm:$0xff]   ;;  %v1542_v14 = vld [vmem:[%s1628_s6 + $0x28] sm:$0xff]  }
  0x12   : > { %1493 = vmatprep.mubr.msk.bf16.mxu1 %vm698_vm2, %v1536_v8  ;;  %v1543_v15 = vld [vmem:[%s1621_s28 + $0x30] sm:$0xff]   ;;  %v1545_v17 = vld [vmem:[%s1621_s28 + $0x38] sm:$0xff]   ;;  %v1547_v19 = vld [vmem:[%s1621_s28 + $0x40] sm:$0xff]  }
  0x13   : > { %v1544_v16 = vld [vmem:[%s1628_s6 + $0x30] sm:$0xff]   ;;  %v1546_v18 = vld [vmem:[%s1628_s6 + $0x38] sm:$0xff]   ;;  %v1548_v20 = vld [vmem:[%s1628_s6 + $0x40] sm:$0xff]  }
  0x14   : > { %v1549_v21 = vld [vmem:[%s1621_s28 + $0x48] sm:$0xff]   ;;  %v1551_v23 = vld [vmem:[%s1621_s28 + $0x50] sm:$0xff]   ;;  %v1553_v25 = vld [vmem:[%s1621_s28 + $0x58] sm:$0xff]  }
  0x15   : > { %v1550_v22 = vld [vmem:[%s1628_s6 + $0x48] sm:$0xff]   ;;  %v1552_v24 = vld [vmem:[%s1628_s6 + $0x50] sm:$0xff]   ;;  %v1554_v26 = vld [vmem:[%s1628_s6 + $0x58] sm:$0xff]  }
  0x16   : > { %v1555_v27 = vld [vmem:[%s1621_s28 + $0x60] sm:$0xff]   ;;  %v1557_v29 = vld [vmem:[%s1621_s28 + $0x68] sm:$0xff]   ;;  %v1559_v31 = vld [vmem:[%s1621_s28 + $0x70] sm:$0xff]  }
  0x17   : > { %v1556_v28 = vld [vmem:[%s1628_s6 + $0x60] sm:$0xff]   ;;  %v1558_v30 = vld [vmem:[%s1628_s6 + $0x68] sm:$0xff]   ;;  %v1560_v32 = vld [vmem:[%s1628_s6 + $0x70] sm:$0xff]  }
  0x18   : > { %1460 = vmatmul.mubr.msk.bf16.gmra.mxu0 %vm398_vm1, %v1537_v9  ;;  %v1561_v33 = vld [vmem:[%s1621_s28 + $0x78] sm:$0xff]  }
  0x19   : > { %1494 = vmatmul.mubr.msk.bf16.gmra.mxu1 %vm698_vm2, %v1538_v10  ;;  %1463 = vmatprep.mubr.msk.bf16.mxu0 %vm398_vm1, %v1539_v11  ;;  %v1562_v34 = vld [vmem:[%s1628_s6 + $0x78] sm:$0xff]  }
  0x1a   : > { %1497 = vmatprep.mubr.msk.bf16.mxu1 %vm698_vm2, %v1540_v12 }
  0x20   : > { %1464 = vmatmul.mubr.msk.bf16.gmra.mxu0 %vm398_vm1, %v1541_v13 }
  0x21   : > { %1498 = vmatmul.mubr.msk.bf16.gmra.mxu1 %vm698_vm2, %v1542_v14  ;;  %1467 = vmatprep.mubr.msk.bf16.mxu0 %vm398_vm1, %v1543_v15 }
  0x22   : > { %1501 = vmatprep.mubr.msk.bf16.mxu1 %vm698_vm2, %v1544_v16 }
  0x28   : > { %1468 = vmatmul.mubr.msk.bf16.gmra.mxu0 %vm398_vm1, %v1545_v17 }
  0x29   : > { %1502 = vmatmul.mubr.msk.bf16.gmra.mxu1 %vm698_vm2, %v1546_v18  ;;  %1471 = vmatprep.mubr.msk.bf16.mxu0 %vm398_vm1, %v1547_v19 }
  0x2a   : > { %1505 = vmatprep.mubr.msk.bf16.mxu1 %vm698_vm2, %v1548_v20 }
  0x30   : > { %1472 = vmatmul.mubr.msk.bf16.gmra.mxu0 %vm398_vm1, %v1549_v21 }
  0x31   : > { %1506 = vmatmul.mubr.msk.bf16.gmra.mxu1 %vm698_vm2, %v1550_v22  ;;  %1475 = vmatprep.mubr.msk.bf16.mxu0 %vm398_vm1, %v1551_v23 }
  0x32   : > { %1509 = vmatprep.mubr.msk.bf16.mxu1 %vm698_vm2, %v1552_v24 }
  0x38   : > { %1476 = vmatmul.mubr.msk.bf16.gmra.mxu0 %vm398_vm1, %v1553_v25 }
  0x39   : > { %1510 = vmatmul.mubr.msk.bf16.gmra.mxu1 %vm698_vm2, %v1554_v26  ;;  %1479 = vmatprep.mubr.msk.bf16.mxu0 %vm398_vm1, %v1555_v27 }
  0x3a   : > { %1513 = vmatprep.mubr.msk.bf16.mxu1 %vm698_vm2, %v1556_v28 }
  0x40   : > { %1480 = vmatmul.mubr.msk.bf16.gmra.mxu0 %vm398_vm1, %v1557_v29 }
  0x41   : > { %1514 = vmatmul.mubr.msk.bf16.gmra.mxu1 %vm698_vm2, %v1558_v30  ;;  %1483 = vmatprep.mubr.msk.bf16.mxu0 %vm398_vm1, %v1559_v31 }
  0x42   : > { %1517 = vmatprep.mubr.msk.bf16.mxu1 %vm698_vm2, %v1560_v32 }
  0x48   : > { %1484 = vmatmul.mubr.msk.bf16.gmra.mxu0 %vm398_vm1, %v1561_v33 }
  0x49   : > { %1518 = vmatmul.mubr.msk.bf16.gmra.mxu1 %vm698_vm2, %v1562_v34 }
  0xd0   : > { %v1457_v35 = vpop.f32.mrf.mxu0 }
  0xd1   : > { %v1491_v36 = vpop.f32.mrf.mxu1 }
  0xd2   : > { %v790_v38 = vadd.f32 %v1491_v36, %v1457_v35  ;;  %v485_v39 = vpop.f32.mrf.mxu0 }
  0xd3   : > { %v781_v41 = vpop.f32.mrf.mxu1 }
  0xd4   : > { %v915_v42 = vadd.f32 %v1696_v37, %v790_v38  ;;  %v782_v43 = vadd.f32 %v781_v41, %v485_v39  ;;  %v1458_v44 = vpop.f32.mrf.mxu0 }
  0xd5   : > { %v1492_v45 = vpop.f32.mrf.mxu1 }
  0xd6   : > { %vm947_vm3 = vcmp.gt.f32.partialorder %v915_v42, 0.0  ;;  %v984_v46 = vmul.f32 %v1701_v40, %v915_v42  ;;  %v913_v47 = vadd.f32 %v1696_v37, %v782_v43  ;;  %v793_v48 = vadd.f32 %v1492_v45, %v1458_v44  ;;  %v488_v49 = vpop.f32.mrf.mxu0 }
  0xd7   : > { %v784_v50 = vpop.f32.mrf.mxu1 }
  0xd8   : > { %v1016_v51 = vsel %vm947_vm3, %v915_v42, %v984_v46  ;;  %vm945_vm5 = vcmp.gt.f32.partialorder %v913_v47, 0.0  ;;  %v982_v52 = vmul.f32 %v1701_v40, %v913_v47  ;;  %v916_v53 = vadd.f32 %v1696_v37, %v793_v48  ;;  %v1461_v54 = vpop.f32.mrf.mxu0 }
  0xd9   : > { %v1389_v55 = vpack.c.bf16 %v1016_v51, %v1016_v51  ;;  %v785_v56 = vadd.f32 %v784_v50, %v488_v49  ;;  %v1495_v57 = vpop.f32.mrf.mxu1 }
  0xda   : > { %v1014_v58 = vsel %vm945_vm5, %v913_v47, %v982_v52  ;;  %vm948_vm6 = vcmp.gt.f32.partialorder %v916_v53, 0.0  ;;  %v985_v59 = vmul.f32 %v1701_v40, %v916_v53  ;;  %v806_v60 = vadd.f32 %v1495_v57, %v1461_v54  ;;  %v501_v61 = vpop.f32.mrf.mxu0 }
  0xdb   : > { %1177 = vst.msk [vmem:[%s1710_s13 + $0x8] sm:$0xf] %vm1174_vm4, %v1389_v55  ;;  %v1387_v62 = vpack.c.bf16 %v1014_v58, %v1014_v58  ;;  %v914_v63 = vadd.f32 %v1696_v37, %v785_v56  ;;  %v797_v0 = vpop.f32.mrf.mxu1 }
  0xdc   : > { %v1017_v1 = vsel %vm948_vm6, %v916_v53, %v985_v59  ;;  %v919_v2 = vadd.f32 %v1696_v37, %v806_v60  ;;  %v798_v3 = vadd.f32 %v797_v0, %v501_v61  ;;  %v1462_v4 = vpop.f32.mrf.mxu0 }
  0xdd   : > { %1175 = vst.msk [vmem:[%s1710_s13] sm:$0xf] %vm1174_vm4, %v1387_v62  ;;  %v1390_v5 = vpack.c.bf16 %v1017_v1, %v1017_v1  ;;  %vm946_vm7 = vcmp.gt.f32.partialorder %v914_v63, 0.0  ;;  %v983_v6 = vmul.f32 %v1701_v40, %v914_v63  ;;  %v1496_v7 = vpop.f32.mrf.mxu1 }
  0xde   : > { %vm951_vm8 = vcmp.gt.f32.partialorder %v919_v2, 0.0  ;;  %v988_v8 = vmul.f32 %v1701_v40, %v919_v2  ;;  %v917_v9 = vadd.f32 %v1696_v37, %v798_v3  ;;  %v809_v10 = vadd.f32 %v1496_v7, %v1462_v4  ;;  %v504_v11 = vpop.f32.mrf.mxu0 }
  0xdf   : > { %1178 = vst.msk [vmem:[%s1710_s13 + $0xc] sm:$0xf] %vm1174_vm4, %v1390_v5  ;;  %v1015_v12 = vsel %vm946_vm7, %v914_v63, %v983_v6  ;;  %v800_v13 = vpop.f32.mrf.mxu1 }
  0xe0   : > { %v1388_v14 = vpack.c.bf16 %v1015_v12, %v1015_v12  ;;  %v1020_v15 = vsel %vm951_vm8, %v919_v2, %v988_v8  ;;  %vm949_vm9 = vcmp.gt.f32.partialorder %v917_v9, 0.0  ;;  %v986_v16 = vmul.f32 %v1701_v40, %v917_v9  ;;  %v1465_v17 = vpop.f32.mrf.mxu0 }
  0xe1   : > { %v1393_v18 = vpack.c.bf16 %v1020_v15, %v1020_v15  ;;  %v920_v19 = vadd.f32 %v1696_v37, %v809_v10  ;;  %v801_v20 = vadd.f32 %v800_v13, %v504_v11  ;;  %v1499_v21 = vpop.f32.mrf.mxu1 }
  0xe2   : > { %1176 = vst.msk [vmem:[%s1710_s13 + $0x4] sm:$0xf] %vm1174_vm4, %v1388_v14  ;;  %v1018_v22 = vsel %vm949_vm9, %v917_v9, %v986_v16  ;;  %v822_v23 = vadd.f32 %v1499_v21, %v1465_v17  ;;  %v517_v24 = vpop.f32.mrf.mxu0 }
  0xe3   : > { %1181 = vst.msk [vmem:[%s1710_s13 + $0x18] sm:$0xf] %vm1174_vm4, %v1393_v18  ;;  %v1391_v25 = vpack.c.bf16 %v1018_v22, %v1018_v22  ;;  %vm952_vm10 = vcmp.gt.f32.partialorder %v920_v19, 0.0  ;;  %v989_v26 = vmul.f32 %v1701_v40, %v920_v19  ;;  %v918_v27 = vadd.f32 %v1696_v37, %v801_v20  ;;  %v813_v28 = vpop.f32.mrf.mxu1 }
  0xe4   : > { %v923_v29 = vadd.f32 %v1696_v37, %v822_v23  ;;  %v814_v30 = vadd.f32 %v813_v28, %v517_v24  ;;  %v1466_v31 = vpop.f32.mrf.mxu0 }
  0xe5   : > { %1179 = vst.msk [vmem:[%s1710_s13 + $0x10] sm:$0xf] %vm1174_vm4, %v1391_v25  ;;  %v1021_v32 = vsel %vm952_vm10, %v920_v19, %v989_v26  ;;  %vm950_vm11 = vcmp.gt.f32.partialorder %v918_v27, 0.0  ;;  %v987_v33 = vmul.f32 %v1701_v40, %v918_v27  ;;  %v1500_v34 = vpop.f32.mrf.mxu1 }
  0xe6   : > { %v1394_v35 = vpack.c.bf16 %v1021_v32, %v1021_v32  ;;  %vm955_vm12 = vcmp.gt.f32.partialorder %v923_v29, 0.0  ;;  %v992_v36 = vmul.f32 %v1701_v40, %v923_v29  ;;  %v921_v38 = vadd.f32 %v1696_v37, %v814_v30  ;;  %v520_v39 = vpop.f32.mrf.mxu0 }
  0xe7   : > { %v1019_v41 = vsel %vm950_vm11, %v918_v27, %v987_v33  ;;  %v825_v42 = vadd.f32 %v1500_v34, %v1466_v31  ;;  %v816_v43 = vpop.f32.mrf.mxu1 }
  0xe8   : > { %1182 = vst.msk [vmem:[%s1710_s13 + $0x1c] sm:$0xf] %vm1174_vm4, %v1394_v35  ;;  %v1392_v44 = vpack.c.bf16 %v1019_v41, %v1019_v41  ;;  %v1024_v45 = vsel %vm955_vm12, %v923_v29, %v992_v36  ;;  %vm953_vm13 = vcmp.gt.f32.partialorder %v921_v38, 0.0  ;;  %v990_v46 = vmul.f32 %v1701_v40, %v921_v38  ;;  %v1469_v47 = vpop.f32.mrf.mxu0 }
  0xe9   : > { %v1397_v48 = vpack.c.bf16 %v1024_v45, %v1024_v45  ;;  %v924_v49 = vadd.f32 %v1696_v37, %v825_v42  ;;  %v817_v50 = vadd.f32 %v816_v43, %v520_v39  ;;  %v1503_v51 = vpop.f32.mrf.mxu1 }
  0xea   : > { %1180 = vst.msk [vmem:[%s1710_s13 + $0x14] sm:$0xf] %vm1174_vm4, %v1392_v44  ;;  %v1022_v52 = vsel %vm953_vm13, %v921_v38, %v990_v46  ;;  %v838_v53 = vadd.f32 %v1503_v51, %v1469_v47  ;;  %v533_v54 = vpop.f32.mrf.mxu0 }
  0xeb   : > { %1185 = vst.msk [vmem:[%s1710_s13 + $0x28] sm:$0xf] %vm1174_vm4, %v1397_v48  ;;  %v1395_v55 = vpack.c.bf16 %v1022_v52, %v1022_v52  ;;  %vm956_vm14 = vcmp.gt.f32.partialorder %v924_v49, 0.0  ;;  %v993_v56 = vmul.f32 %v1701_v40, %v924_v49  ;;  %v922_v57 = vadd.f32 %v1696_v37, %v817_v50  ;;  %v829_v58 = vpop.f32.mrf.mxu1 }
  0xec   : > { %v927_v59 = vadd.f32 %v1696_v37, %v838_v53  ;;  %v830_v60 = vadd.f32 %v829_v58, %v533_v54  ;;  %v1470_v61 = vpop.f32.mrf.mxu0 }
  0xed   : > { %1183 = vst.msk [vmem:[%s1710_s13 + $0x20] sm:$0xf] %vm1174_vm4, %v1395_v55  ;;  %v1025_v62 = vsel %vm956_vm14, %v924_v49, %v993_v56  ;;  %vm954_vm15 = vcmp.gt.f32.partialorder %v922_v57, 0.0  ;;  %v991_v63 = vmul.f32 %v1701_v40, %v922_v57  ;;  %v1504_v0 = vpop.f32.mrf.mxu1 }
  0xee   : > { %v1398_v1 = vpack.c.bf16 %v1025_v62, %v1025_v62  ;;  %vm959_vm0 = vcmp.gt.f32.partialorder %v927_v59, 0.0  ;;  %v996_v2 = vmul.f32 %v1701_v40, %v927_v59  ;;  %v925_v3 = vadd.f32 %v1696_v37, %v830_v60  ;;  %v536_v4 = vpop.f32.mrf.mxu0 }
  0xef   : > { %v1023_v5 = vsel %vm954_vm15, %v922_v57, %v991_v63  ;;  %v841_v6 = vadd.f32 %v1504_v0, %v1470_v61  ;;  %v832_v7 = vpop.f32.mrf.mxu1 }
  0xf0   : > { %1186 = vst.msk [vmem:[%s1710_s13 + $0x2c] sm:$0xf] %vm1174_vm4, %v1398_v1  ;;  %v1396_v8 = vpack.c.bf16 %v1023_v5, %v1023_v5  ;;  %v1028_v9 = vsel %vm959_vm0, %v927_v59, %v996_v2  ;;  %vm957_vm1 = vcmp.gt.f32.partialorder %v925_v3, 0.0  ;;  %v994_v10 = vmul.f32 %v1701_v40, %v925_v3  ;;  %v1473_v11 = vpop.f32.mrf.mxu0 }
  0xf1   : > { %v1401_v12 = vpack.c.bf16 %v1028_v9, %v1028_v9  ;;  %v928_v13 = vadd.f32 %v1696_v37, %v841_v6  ;;  %v833_v14 = vadd.f32 %v832_v7, %v536_v4  ;;  %v1507_v15 = vpop.f32.mrf.mxu1 }
  0xf2   : > { %1184 = vst.msk [vmem:[%s1710_s13 + $0x24] sm:$0xf] %vm1174_vm4, %v1396_v8  ;;  %v1026_v16 = vsel %vm957_vm1, %v925_v3, %v994_v10  ;;  %v854_v17 = vadd.f32 %v1507_v15, %v1473_v11  ;;  %v549_v18 = vpop.f32.mrf.mxu0 }
  0xf3   : > { %1189 = vst.msk [vmem:[%s1710_s13 + $0x38] sm:$0xf] %vm1174_vm4, %v1401_v12  ;;  %v1399_v19 = vpack.c.bf16 %v1026_v16, %v1026_v16  ;;  %vm960_vm2 = vcmp.gt.f32.partialorder %v928_v13, 0.0  ;;  %v997_v20 = vmul.f32 %v1701_v40, %v928_v13  ;;  %v926_v21 = vadd.f32 %v1696_v37, %v833_v14  ;;  %v845_v22 = vpop.f32.mrf.mxu1 }
  0xf4   : > { %v931_v23 = vadd.f32 %v1696_v37, %v854_v17  ;;  %v846_v24 = vadd.f32 %v845_v22, %v549_v18  ;;  %v1474_v25 = vpop.f32.mrf.mxu0 }
  0xf5   : > { %1187 = vst.msk [vmem:[%s1710_s13 + $0x30] sm:$0xf] %vm1174_vm4, %v1399_v19  ;;  %v1029_v26 = vsel %vm960_vm2, %v928_v13, %v997_v20  ;;  %vm958_vm3 = vcmp.gt.f32.partialorder %v926_v21, 0.0  ;;  %v995_v27 = vmul.f32 %v1701_v40, %v926_v21  ;;  %v1508_v28 = vpop.f32.mrf.mxu1 }
  0xf6   : > { %v1402_v29 = vpack.c.bf16 %v1029_v26, %v1029_v26  ;;  %vm963_vm5 = vcmp.gt.f32.partialorder %v931_v23, 0.0  ;;  %v1000_v30 = vmul.f32 %v1701_v40, %v931_v23  ;;  %v929_v31 = vadd.f32 %v1696_v37, %v846_v24  ;;  %v552_v32 = vpop.f32.mrf.mxu0 }
  0xf7   : > { %v1027_v33 = vsel %vm958_vm3, %v926_v21, %v995_v27  ;;  %v857_v34 = vadd.f32 %v1508_v28, %v1474_v25  ;;  %v848_v35 = vpop.f32.mrf.mxu1 }
  0xf8   : > { %1190 = vst.msk [vmem:[%s1710_s13 + $0x3c] sm:$0xf] %vm1174_vm4, %v1402_v29  ;;  %v1400_v36 = vpack.c.bf16 %v1027_v33, %v1027_v33  ;;  %v1032_v38 = vsel %vm963_vm5, %v931_v23, %v1000_v30  ;;  %vm961_vm6 = vcmp.gt.f32.partialorder %v929_v31, 0.0  ;;  %v998_v39 = vmul.f32 %v1701_v40, %v929_v31  ;;  %v1477_v41 = vpop.f32.mrf.mxu0 }
  0xf9   : > { %v1405_v42 = vpack.c.bf16 %v1032_v38, %v1032_v38  ;;  %v932_v43 = vadd.f32 %v1696_v37, %v857_v34  ;;  %v849_v44 = vadd.f32 %v848_v35, %v552_v32  ;;  %v1511_v45 = vpop.f32.mrf.mxu1 }
  0xfa   : > { %1188 = vst.msk [vmem:[%s1710_s13 + $0x34] sm:$0xf] %vm1174_vm4, %v1400_v36  ;;  %v1030_v46 = vsel %vm961_vm6, %v929_v31, %v998_v39  ;;  %v870_v47 = vadd.f32 %v1511_v45, %v1477_v41  ;;  %v565_v48 = vpop.f32.mrf.mxu0 }
  0xfb   : > { %1193 = vst.msk [vmem:[%s1710_s13 + $0x48] sm:$0xf] %vm1174_vm4, %v1405_v42  ;;  %v1403_v49 = vpack.c.bf16 %v1030_v46, %v1030_v46  ;;  %vm964_vm7 = vcmp.gt.f32.partialorder %v932_v43, 0.0  ;;  %v1001_v50 = vmul.f32 %v1701_v40, %v932_v43  ;;  %v930_v51 = vadd.f32 %v1696_v37, %v849_v44  ;;  %v861_v52 = vpop.f32.mrf.mxu1 }
  0xfc   : > { %v935_v53 = vadd.f32 %v1696_v37, %v870_v47  ;;  %v862_v54 = vadd.f32 %v861_v52, %v565_v48  ;;  %v1478_v55 = vpop.f32.mrf.mxu0 }
  0xfd   : > { %1191 = vst.msk [vmem:[%s1710_s13 + $0x40] sm:$0xf] %vm1174_vm4, %v1403_v49  ;;  %v1033_v56 = vsel %vm964_vm7, %v932_v43, %v1001_v50  ;;  %vm962_vm8 = vcmp.gt.f32.partialorder %v930_v51, 0.0  ;;  %v999_v57 = vmul.f32 %v1701_v40, %v930_v51  ;;  %v1512_v58 = vpop.f32.mrf.mxu1 }
  0xfe   : > { %v1406_v59 = vpack.c.bf16 %v1033_v56, %v1033_v56  ;;  %vm967_vm9 = vcmp.gt.f32.partialorder %v935_v53, 0.0  ;;  %v1004_v60 = vmul.f32 %v1701_v40, %v935_v53  ;;  %v933_v61 = vadd.f32 %v1696_v37, %v862_v54  ;;  %v568_v62 = vpop.f32.mrf.mxu0 }
  0xff   : > { %v1031_v63 = vsel %vm962_vm8, %v930_v51, %v999_v57  ;;  %v873_v0 = vadd.f32 %v1512_v58, %v1478_v55  ;;  %v864_v1 = vpop.f32.mrf.mxu1 }
 0x100   : > { %1194 = vst.msk [vmem:[%s1710_s13 + $0x4c] sm:$0xf] %vm1174_vm4, %v1406_v59  ;;  %v1404_v2 = vpack.c.bf16 %v1031_v63, %v1031_v63  ;;  %v1036_v3 = vsel %vm967_vm9, %v935_v53, %v1004_v60  ;;  %vm965_vm10 = vcmp.gt.f32.partialorder %v933_v61, 0.0  ;;  %v1002_v4 = vmul.f32 %v1701_v40, %v933_v61  ;;  %v1481_v5 = vpop.f32.mrf.mxu0 }
 0x101   : > { %v1409_v6 = vpack.c.bf16 %v1036_v3, %v1036_v3  ;;  %v936_v7 = vadd.f32 %v1696_v37, %v873_v0  ;;  %v865_v8 = vadd.f32 %v864_v1, %v568_v62  ;;  %v1515_v9 = vpop.f32.mrf.mxu1 }
 0x102   : > { %1192 = vst.msk [vmem:[%s1710_s13 + $0x44] sm:$0xf] %vm1174_vm4, %v1404_v2  ;;  %v1034_v10 = vsel %vm965_vm10, %v933_v61, %v1002_v4  ;;  %v886_v11 = vadd.f32 %v1515_v9, %v1481_v5  ;;  %v581_v12 = vpop.f32.mrf.mxu0 }
 0x103   : > { %1197 = vst.msk [vmem:[%s1710_s13 + $0x58] sm:$0xf] %vm1174_vm4, %v1409_v6  ;;  %v1407_v13 = vpack.c.bf16 %v1034_v10, %v1034_v10  ;;  %vm968_vm11 = vcmp.gt.f32.partialorder %v936_v7, 0.0  ;;  %v1005_v14 = vmul.f32 %v1701_v40, %v936_v7  ;;  %v934_v15 = vadd.f32 %v1696_v37, %v865_v8  ;;  %v877_v16 = vpop.f32.mrf.mxu1 }
 0x104   : > { %v939_v17 = vadd.f32 %v1696_v37, %v886_v11  ;;  %v878_v18 = vadd.f32 %v877_v16, %v581_v12  ;;  %v1482_v19 = vpop.f32.mrf.mxu0 }
 0x105   : > { %1195 = vst.msk [vmem:[%s1710_s13 + $0x50] sm:$0xf] %vm1174_vm4, %v1407_v13  ;;  %v1037_v20 = vsel %vm968_vm11, %v936_v7, %v1005_v14  ;;  %vm966_vm12 = vcmp.gt.f32.partialorder %v934_v15, 0.0  ;;  %v1003_v21 = vmul.f32 %v1701_v40, %v934_v15  ;;  %v1516_v22 = vpop.f32.mrf.mxu1 }
 0x106   : > { %v1410_v23 = vpack.c.bf16 %v1037_v20, %v1037_v20  ;;  %vm971_vm13 = vcmp.gt.f32.partialorder %v939_v17, 0.0  ;;  %v1008_v24 = vmul.f32 %v1701_v40, %v939_v17  ;;  %v937_v25 = vadd.f32 %v1696_v37, %v878_v18  ;;  %v584_v26 = vpop.f32.mrf.mxu0 }
 0x107   : > { %v1035_v27 = vsel %vm966_vm12, %v934_v15, %v1003_v21  ;;  %v889_v28 = vadd.f32 %v1516_v22, %v1482_v19  ;;  %v880_v29 = vpop.f32.mrf.mxu1 }
 0x108   : > { %1198 = vst.msk [vmem:[%s1710_s13 + $0x5c] sm:$0xf] %vm1174_vm4, %v1410_v23  ;;  %v1408_v30 = vpack.c.bf16 %v1035_v27, %v1035_v27  ;;  %v1040_v31 = vsel %vm971_vm13, %v939_v17, %v1008_v24  ;;  %vm969_vm14 = vcmp.gt.f32.partialorder %v937_v25, 0.0  ;;  %v1006_v32 = vmul.f32 %v1701_v40, %v937_v25  ;;  %v1485_v33 = vpop.f32.mrf.mxu0 }
 0x109   : > { %v1413_v34 = vpack.c.bf16 %v1040_v31, %v1040_v31  ;;  %v940_v35 = vadd.f32 %v1696_v37, %v889_v28  ;;  %v881_v36 = vadd.f32 %v880_v29, %v584_v26  ;;  %v1519_v38 = vpop.f32.mrf.mxu1 }
 0x10a   : > { %1196 = vst.msk [vmem:[%s1710_s13 + $0x54] sm:$0xf] %vm1174_vm4, %v1408_v30  ;;  %v1038_v39 = vsel %vm969_vm14, %v937_v25, %v1006_v32  ;;  %v902_v41 = vadd.f32 %v1519_v38, %v1485_v33  ;;  %v597_v42 = vpop.f32.mrf.mxu0 }
 0x10b   : > { %1201 = vst.msk [vmem:[%s1710_s13 + $0x68] sm:$0xf] %vm1174_vm4, %v1413_v34  ;;  %v1411_v43 = vpack.c.bf16 %v1038_v39, %v1038_v39  ;;  %vm972_vm15 = vcmp.gt.f32.partialorder %v940_v35, 0.0  ;;  %v1009_v44 = vmul.f32 %v1701_v40, %v940_v35  ;;  %v938_v45 = vadd.f32 %v1696_v37, %v881_v36  ;;  %v893_v46 = vpop.f32.mrf.mxu1 }
 0x10c   : > { %v943_v47 = vadd.f32 %v1696_v37, %v902_v41  ;;  %v894_v48 = vadd.f32 %v893_v46, %v597_v42  ;;  %v1486_v49 = vpop.f32.mrf.mxu0 }
 0x10d   : > { %1199 = vst.msk [vmem:[%s1710_s13 + $0x60] sm:$0xf] %vm1174_vm4, %v1411_v43  ;;  %v1041_v50 = vsel %vm972_vm15, %v940_v35, %v1009_v44  ;;  %vm970_vm0 = vcmp.gt.f32.partialorder %v938_v45, 0.0  ;;  %v1007_v51 = vmul.f32 %v1701_v40, %v938_v45  ;;  %v1520_v52 = vpop.f32.mrf.mxu1 }
 0x10e   : > { %v1414_v53 = vpack.c.bf16 %v1041_v50, %v1041_v50  ;;  %vm975_vm1 = vcmp.gt.f32.partialorder %v943_v47, 0.0  ;;  %v1012_v54 = vmul.f32 %v1701_v40, %v943_v47  ;;  %v941_v55 = vadd.f32 %v1696_v37, %v894_v48  ;;  %v600_v56 = vpop.f32.mrf.mxu0 }
 0x10f   : > { %v1039_v57 = vsel %vm970_vm0, %v938_v45, %v1007_v51  ;;  %v905_v58 = vadd.f32 %v1520_v52, %v1486_v49  ;;  %v896_v59 = vpop.f32.mrf.mxu1 }
 0x110   : > { %1202 = vst.msk [vmem:[%s1710_s13 + $0x6c] sm:$0xf] %vm1174_vm4, %v1414_v53  ;;  %v1412_v60 = vpack.c.bf16 %v1039_v57, %v1039_v57  ;;  %v1044_v61 = vsel %vm975_vm1, %v943_v47, %v1012_v54  ;;  %vm973_vm2 = vcmp.gt.f32.partialorder %v941_v55, 0.0  ;;  %v1010_v62 = vmul.f32 %v1701_v40, %v941_v55 }
 0x111   : > { %v1417_v63 = vpack.c.bf16 %v1044_v61, %v1044_v61  ;;  %v944_v0 = vadd.f32 %v1696_v37, %v905_v58  ;;  %v897_v1 = vadd.f32 %v896_v59, %v600_v56 }
 0x112   : > { %1200 = vst.msk [vmem:[%s1710_s13 + $0x64] sm:$0xf] %vm1174_vm4, %v1412_v60  ;;  %v1042_v2 = vsel %vm973_vm2, %v941_v55, %v1010_v62 }
 0x113   : > { %1205 = vst.msk [vmem:[%s1710_s13 + $0x78] sm:$0xf] %vm1174_vm4, %v1417_v63  ;;  %v1415_v3 = vpack.c.bf16 %v1042_v2, %v1042_v2  ;;  %vm976_vm3 = vcmp.gt.f32.partialorder %v944_v0, 0.0  ;;  %v1013_v4 = vmul.f32 %v1701_v40, %v944_v0  ;;  %v942_v5 = vadd.f32 %v1696_v37, %v897_v1 }
 0x115   : > { %1203 = vst.msk [vmem:[%s1710_s13 + $0x70] sm:$0xf] %vm1174_vm4, %v1415_v3  ;;  %v1045_v6 = vsel %vm976_vm3, %v944_v0, %v1013_v4  ;;  %vm974_vm5 = vcmp.gt.f32.partialorder %v942_v5, 0.0  ;;  %v1011_v7 = vmul.f32 %v1701_v40, %v942_v5 }
 0x116   : > { %v1418_v8 = vpack.c.bf16 %v1045_v6, %v1045_v6 }
 0x117   : > { %v1043_v9 = vsel %vm974_vm5, %v942_v5, %v1011_v7 }
 0x118   : > { %1206 = vst.msk [vmem:[%s1710_s13 + $0x7c] sm:$0xf] %vm1174_vm4, %v1418_v8  ;;  %v1416_v10 = vpack.c.bf16 %v1043_v9, %v1043_v9 }
 0x11a   : > { %1204 = vst.msk [vmem:[%s1710_s13 + $0x74] sm:$0xf] %vm1174_vm4, %v1416_v10 }
 0x11b PF: > { %s15_s18 = sadd.s32 1, %s1569_s18  }
 0x11c   : > { %p12_p4 = scmp.ge.s32.totalorder %s15_s18, 4  }
 0x11e   :  { %14 = sbr.rel (!%p12_p4) target bundleno = 1 (0x1), region = 73 }

// kernel: _lambda_.26
= control target key start
LH: loop header
LB: loop body
LE: loop exit
PB: predicated region body
PF: predicated region fallthrough
CT: control target
= control target key end

     0   :  { %s664_s12 = smov 0   ;;  %s778_s0 = inlined_call_operand.vmem [shape: bf16[128,171], index: 0, kind: input, shape index: {}]   ;;  %s779_s1 = inlined_call_operand.vmem [shape: bf16[171,12], index: 1, kind: input, shape index: {}]   ;;  %s780_s2 = inlined_call_operand.vmem [shape: f32[2,12], index: 2, kind: input, shape index: {}]   ;;  %s781_s3 = inlined_call_operand.vmem [shape: bf16[128,12], index: 3, kind: output, shape index: {}]  }
   0x1 LB: > { %s525_s13 = sadd.s32 4294967295, %s640_s12   ;;  %p529_p0 = scmp.ge.s32.totalorder %s640_s12, 1  ;;  %s640_s12 = sphi %s664_s12, %s13_s12  }
   0x2   : > { %p139_p1 = scmp.lt.s32.totalorder %s640_s12, 3 }
   0x4   : > { %p140_p2 = pnand %p529_p0, %p139_p1 }
   0x5   : > { %s530_s20 = sshll.u32 (!%p140_p2), %s525_s13, 3 }
   0x6   : > { %143 = sbr.rel (%p140_p2) target bundleno = 269 (0x10d), region = 32  ;;  %p165_p3 = scmp.lt.s32.totalorder (!%p140_p2), %s530_s20, 15 }
   0xb   : > { %v611_v0 = vld [vmem:[%s779_s1 + $0x38] sm:$0xff]   ;;  %v642_v1 = vmov 0   ;;  %v612_v2 = vld [vmem:[%s779_s1 + $0x30] sm:$0xff]   ;;  %v613_v3 = vld [vmem:[%s779_s1 + $0x28] sm:$0xff]   ;;  %s783_s20 = smov (!%p165_p3, %s530_s20), 15  ;;  %vm314_vm0 = vcmask 351232  }
   0xc   : > { %334 = vmatprep.subr.bf16.mxu0 %v642_v1  ;;  %579 = vmatprep.subr.bf16.mxu1 %v642_v1  ;;  %v614_v4 = vld [vmem:[%s779_s1 + $0x20] sm:$0xff]   ;;  %s570_s23 = sshll.u32 %s783_s20, 3  ;;  %v615_v5 = vld [vmem:[%s779_s1 + $0x18] sm:$0xff]   ;;  %v616_v8 = vld [vmem:[%s779_s1 + $0x10] sm:$0xff]   ;;  %vm327_vm1 = vcmask 1044480   ;;  %vm328_vm2 = vcmask 1045504  }
   0xd   : > { %335 = vmatpush1.bf16.msra.mxu0 %v611_v0  ;;  %590 = vmatpush1.bf16.msra.mxu1 %v611_v0  ;;  %s698_s26 = scalar_lea.vmem %s778_s0, %s570_s23  ;;  %v617_v9 = vld [vmem:[%s779_s1 + $0x8] sm:$0xff]   ;;  %v643_v10 = vmov 65535   ;;  %v618_v12 = vld [vmem:[%s779_s1] sm:$0xff]   ;;  %v619_v13 = vld [vmem:[%s779_s1 + $0x50] sm:$0x3f]   ;;  %s534_s19 = sshll.u32 %s783_s20, 2 }
   0xe   : > { %336 = vmatprep.subr.bf16.mxu0 %v642_v1  ;;  %580 = vmatprep.subr.bf16.mxu1 %v642_v1  ;;  %v624_v6 = vld [vmem:[%s698_s26 + $0x4] ss:$8 sps:$4 sm:$0xff]   ;;  %v329_v11 = vsel %vm327_vm1, 4294967295, %v643_v10  ;;  %v622_v18 = vld [vmem:[%s698_s26] ss:$8 sps:$4 sm:$0xff]   ;;  %vm460_vm5 = vcmask 93184   ;;  %s757_s23 = scalar_lea.vmem %s781_s3, %s534_s19 }
   0xf   : > { %v627_v7 = vld [vmem:[%s698_s26 + $0x24] ss:$8 sps:$4 sm:$0xff]   ;;  %555 = vmatprep.mubr.msk.bf16.mxu0 %vm314_vm0, %v624_v6  ;;  %v330_v14 = vsel %vm328_vm2, %v329_v11, 0  ;;  %v625_v19 = vld [vmem:[%s698_s26 + $0x20] ss:$8 sps:$4 sm:$0xff]  }
  0x10   : > { %557 = vmatprep.mubr.msk.bf16.mxu1 %vm314_vm0, %v627_v7  ;;  %v332_v15 = vand.u32 %v619_v13, %v330_v14  ;;  %v620_v16 = vld [vmem:[%s779_s1 + $0x48] sm:$0xff]   ;;  %v621_v17 = vld [vmem:[%s779_s1 + $0x40] sm:$0xff]   ;;  %v628_v20 = vld [vmem:[%s698_s26 + $0x14] ss:$8 sps:$4 sm:$0xff]  }
  0x11   : > { %337 = vmatpush1.bf16.msra.mxu0 %v612_v2  ;;  %591 = vmatpush1.bf16.msra.mxu1 %v612_v2  ;;  %v630_v21 = vld [vmem:[%s698_s26 + $0x34] ss:$8 sps:$4 sm:$0xff]   ;;  %v632_v22 = vld [vmem:[%s698_s26 + $0x10] ss:$8 sps:$4 sm:$0xff]   ;;  %v535_v24 = vld [vmem:[%s780_s2] ss:$0 sm:$0xff] }
  0x12   : > { %338 = vmatprep.subr.bf16.mxu0 %v642_v1  ;;  %581 = vmatprep.subr.bf16.mxu1 %v642_v1  ;;  %v633_v23 = vld [vmem:[%s698_s26 + $0x30] ss:$8 sps:$4 sm:$0xff]   ;;  %v559_v26 = vld [vmem:[%s780_s2 + $0x1] ss:$0 sm:$0xff] }
  0x15   : > { %339 = vmatpush1.bf16.msra.mxu0 %v613_v3  ;;  %592 = vmatpush1.bf16.msra.mxu1 %v613_v3 }
  0x16   : > { %340 = vmatprep.subr.bf16.mxu0 %v642_v1  ;;  %582 = vmatprep.subr.bf16.mxu1 %v642_v1 }
  0x19   : > { %341 = vmatpush1.bf16.msra.mxu0 %v614_v4  ;;  %593 = vmatpush1.bf16.msra.mxu1 %v614_v4 }
  0x1a   : > { %342 = vmatprep.subr.bf16.mxu0 %v642_v1  ;;  %583 = vmatprep.subr.bf16.mxu1 %v642_v1 }
  0x1d   : > { %343 = vmatpush1.bf16.msra.mxu0 %v615_v5  ;;  %594 = vmatpush1.bf16.msra.mxu1 %v615_v5 }
  0x1e   : > { %344 = vmatprep.subr.bf16.mxu0 %v642_v1  ;;  %584 = vmatprep.subr.bf16.mxu1 %v642_v1 }
  0x21   : > { %345 = vmatpush1.bf16.msra.mxu0 %v616_v8  ;;  %595 = vmatpush1.bf16.msra.mxu1 %v616_v8 }
  0x22   : > { %346 = vmatprep.subr.bf16.mxu0 %v642_v1  ;;  %585 = vmatprep.subr.bf16.mxu1 %v642_v1 }
  0x25   : > { %347 = vmatpush1.bf16.msra.mxu0 %v617_v9  ;;  %596 = vmatpush1.bf16.msra.mxu1 %v617_v9 }
  0x26   : > { %348 = vmatprep.subr.bf16.mxu0 %v642_v1  ;;  %586 = vmatprep.subr.bf16.mxu1 %v642_v1 }
  0x29   : > { %349 = vmatpush1.bf16.msra.mxu0 %v618_v12  ;;  %597 = vmatpush1.bf16.msra.mxu1 %v618_v12 }
  0x2a   : > { %360 = vmatprep.subr.bf16.mxu0 %v642_v1  ;;  %587 = vmatprep.subr.bf16.mxu1 %v642_v1 }
  0x2d   : > { %361 = vmatpush2.bf16.msra.mxu0 %v332_v15  ;;  %598 = vmatpush2.bf16.msra.mxu1 %v332_v15 }
  0x2e   : > { %362 = vmatprep.subr.bf16.mxu0 %v642_v1  ;;  %588 = vmatprep.subr.bf16.mxu1 %v642_v1 }
  0x31   : > { %363 = vmatpush2.bf16.msra.mxu0 %v620_v16  ;;  %599 = vmatpush2.bf16.msra.mxu1 %v620_v16 }
  0x32   : > { %364 = vmatprep.subr.bf16.mxu0 %v642_v1  ;;  %589 = vmatprep.subr.bf16.mxu1 %v642_v1 }
  0x35   : > { %365 = vmatpush2.bf16.msra.mxu0 %v621_v17  ;;  %600 = vmatpush2.bf16.msra.mxu1 %v621_v17 }
  0x38   : > { %367 = vmatmul.mubr.bf16.vlgmr.msra.gmra.mxu0 %v622_v18  ;;  %383 = vmatmul.mubr.bf16.vlgmr.msra.gmra.mxu1 %v625_v19 }
  0x39   : > { %556 = vmatprep.mubr.msk.bf16.mxu0 %vm314_vm0, %v628_v20  ;;  %558 = vmatprep.mubr.msk.bf16.mxu1 %vm314_vm0, %v630_v21 }
  0x40   : > { %375 = vmatmul.mubr.bf16.gmra.mxu0 %v632_v22  ;;  %391 = vmatmul.mubr.bf16.gmra.mxu1 %v633_v23 }
  0xf8   : > { %v368_v25 = vpop.f32.mrf.mxu0  ;;  %v384_v27 = vpop.f32.mrf.mxu1 }
  0xf9   : > { %v369_v28 = vadd.f32 %v535_v24, %v368_v25  ;;  %v385_v29 = vadd.f32 %v535_v24, %v384_v27 }
  0xfa   : > { %v370_v30 = vpop.f32.mrf.mxu0  ;;  %v386_v31 = vpop.f32.mrf.mxu1 }
  0xfb   : > { %vm399_vm3 = vcmp.gt.f32.partialorder %v369_v28, 0.0  ;;  %v412_v32 = vmul.f32 %v559_v26, %v369_v28  ;;  %vm403_vm4 = vcmp.gt.f32.partialorder %v385_v29, 0.0  ;;  %v416_v33 = vmul.f32 %v559_v26, %v385_v29 }
  0xfc   : > { %v371_v34 = vpop.f32.mrf.mxu0  ;;  %v387_v35 = vpop.f32.mrf.mxu1 }
  0xfd   : > { %v420_v36 = vsel %vm399_vm3, %v369_v28, %v412_v32  ;;  %v424_v37 = vsel %vm403_vm4, %v385_v29, %v416_v33  ;;  %v372_v38 = vadd.f32 %v535_v24, %v371_v34  ;;  %v388_v39 = vadd.f32 %v535_v24, %v387_v35 }
  0xfe   : > { %v571_v40 = vpack.c.bf16 %v420_v36, %v420_v36  ;;  %v575_v41 = vpack.c.bf16 %v424_v37, %v424_v37  ;;  %v373_v42 = vpop.f32.mrf.mxu0  ;;  %v389_v43 = vpop.f32.mrf.mxu1 }
  0xff   : > { %vm400_vm6 = vcmp.gt.f32.partialorder %v372_v38, 0.0  ;;  %v413_v44 = vmul.f32 %v559_v26, %v372_v38  ;;  %vm404_vm7 = vcmp.gt.f32.partialorder %v388_v39, 0.0  ;;  %v417_v45 = vmul.f32 %v559_v26, %v388_v39 }
 0x100   : > { %461 = vst.msk [vmem:[%s757_s23] sm:$0xf] %vm460_vm5, %v571_v40  ;;  %465 = vst.msk [vmem:[%s757_s23 + $0x10] sm:$0xf] %vm460_vm5, %v575_v41  ;;  %v376_v46 = vpop.f32.mrf.mxu0  ;;  %v392_v47 = vpop.f32.mrf.mxu1 }
 0x101   : > { %v421_v48 = vsel %vm400_vm6, %v372_v38, %v413_v44  ;;  %v425_v49 = vsel %vm404_vm7, %v388_v39, %v417_v45  ;;  %v377_v50 = vadd.f32 %v535_v24, %v376_v46  ;;  %v393_v51 = vadd.f32 %v535_v24, %v392_v47 }
 0x102   : > { %v572_v52 = vpack.c.bf16 %v421_v48, %v421_v48  ;;  %v576_v53 = vpack.c.bf16 %v425_v49, %v425_v49  ;;  %v378_v54 = vpop.f32.mrf.mxu0  ;;  %v394_v55 = vpop.f32.mrf.mxu1 }
 0x103   : > { %vm401_vm8 = vcmp.gt.f32.partialorder %v377_v50, 0.0  ;;  %v414_v56 = vmul.f32 %v559_v26, %v377_v50  ;;  %vm405_vm9 = vcmp.gt.f32.partialorder %v393_v51, 0.0  ;;  %v418_v57 = vmul.f32 %v559_v26, %v393_v51 }
 0x104   : > { %462 = vst.msk [vmem:[%s757_s23 + $0x4] sm:$0xf] %vm460_vm5, %v572_v52  ;;  %466 = vst.msk [vmem:[%s757_s23 + $0x14] sm:$0xf] %vm460_vm5, %v576_v53  ;;  %v379_v58 = vpop.f32.mrf.mxu0  ;;  %v395_v59 = vpop.f32.mrf.mxu1 }
 0x105   : > { %v422_v60 = vsel %vm401_vm8, %v377_v50, %v414_v56  ;;  %v426_v61 = vsel %vm405_vm9, %v393_v51, %v418_v57  ;;  %v380_v62 = vadd.f32 %v535_v24, %v379_v58  ;;  %v396_v63 = vadd.f32 %v535_v24, %v395_v59 }
 0x106   : > { %v573_v0 = vpack.c.bf16 %v422_v60, %v422_v60  ;;  %v577_v1 = vpack.c.bf16 %v426_v61, %v426_v61  ;;  %v381_v2 = vpop.f32.mrf.mxu0  ;;  %v397_v3 = vpop.f32.mrf.mxu1 }
 0x107   : > { %vm402_vm10 = vcmp.gt.f32.partialorder %v380_v62, 0.0  ;;  %v415_v4 = vmul.f32 %v559_v26, %v380_v62  ;;  %vm406_vm11 = vcmp.gt.f32.partialorder %v396_v63, 0.0  ;;  %v419_v5 = vmul.f32 %v559_v26, %v396_v63 }
 0x108   : > { %463 = vst.msk [vmem:[%s757_s23 + $0x8] sm:$0xf] %vm460_vm5, %v573_v0  ;;  %467 = vst.msk [vmem:[%s757_s23 + $0x18] sm:$0xf] %vm460_vm5, %v577_v1 }
 0x109   : > { %v423_v6 = vsel %vm402_vm10, %v380_v62, %v415_v4  ;;  %v427_v7 = vsel %vm406_vm11, %v396_v63, %v419_v5 }
 0x10a   : > { %v574_v8 = vpack.c.bf16 %v423_v6, %v423_v6  ;;  %v578_v9 = vpack.c.bf16 %v427_v7, %v427_v7 }
 0x10c   : > { %464 = vst.msk [vmem:[%s757_s23 + $0xc] sm:$0xf] %vm460_vm5, %v574_v8  ;;  %468 = vst.msk [vmem:[%s757_s23 + $0x1c] sm:$0xf] %vm460_vm5, %v578_v9 }
 0x10d PF: > { %s13_s12 = sadd.s32 1, %s640_s12  }
 0x10e   : > { %p10_p4 = scmp.ge.s32.totalorder %s13_s12, 4  }
 0x110   :  { %12 = sbr.rel (!%p10_p4) target bundleno = 1 (0x1), region = 62 }

// kernel: _lambda_.28
= control target key start
LH: loop header
LB: loop body
LE: loop exit
PB: predicated region body
PF: predicated region fallthrough
CT: control target
= control target key end

     0   :  { %s561_s12 = smov 0   ;;  %s625_s0 = inlined_call_operand.vmem [shape: bf16[128,64], index: 0, kind: input, shape index: {}]   ;;  %s626_s1 = inlined_call_operand.vmem [shape: bf16[64,12], index: 1, kind: input, shape index: {}]   ;;  %s627_s2 = inlined_call_operand.vmem [shape: f32[2,12], index: 2, kind: input, shape index: {}]   ;;  %s628_s3 = inlined_call_operand.vmem [shape: bf16[128,12], index: 3, kind: output, shape index: {}]  }
   0x1 LB: > { %s444_s13 = sadd.s32 4294967295, %s539_s12   ;;  %p448_p0 = scmp.ge.s32.totalorder %s539_s12, 1  ;;  %s539_s12 = sphi %s561_s12, %s13_s12  }
   0x2   : > { %p138_p1 = scmp.lt.s32.totalorder %s539_s12, 3 }
   0x4   : > { %p139_p2 = pnand %p448_p0, %p138_p1 }
   0x5   : > { %s449_s16 = sshll.u32 (!%p139_p2), %s444_s13, 3 }
   0x6   : > { %142 = sbr.rel (%p139_p2) target bundleno = 237 (0xed), region = 32  ;;  %p163_p3 = scmp.lt.s32.totalorder (!%p139_p2), %s449_s16, 15 }
   0xb   : > { %v525_v0 = vld [vmem:[%s626_s1 + $0x18] sm:$0xff]   ;;  %v526_v1 = vld [vmem:[%s626_s1 + $0x10] sm:$0xff]   ;;  %s630_s16 = smov (!%p163_p3, %s449_s16), 15  ;;  %v527_v2 = vld [vmem:[%s626_s1 + $0x8] sm:$0xff]   ;;  %vm240_vm0 = vcmask 523264   ;;  %vm379_vm3 = vcmask 93184  }
   0xc   : > { %493 = vmatprep.subr.bf16.mxu0 %v525_v0  ;;  %509 = vmatprep.subr.bf16.mxu1 %v525_v0  ;;  %s450_s21 = sshll.u32 %s630_s16, 2  ;;  %v528_v3 = vld [vmem:[%s626_s1] sm:$0xff]  }
   0xd   : > { %494 = vmatpush3.bf16.msra.mxu0 %v525_v0  ;;  %513 = vmatpush3.bf16.msra.mxu1 %v525_v0  ;;  %s166_s26 = scalar_lea.vmem %s625_s0, %s450_s21  ;;  %v453_v8 = vld [vmem:[%s627_s2] ss:$0 sm:$0xff]  ;;  %v466_v10 = vld [vmem:[%s627_s2 + $0x1] ss:$0 sm:$0xff]  ;;  %s604_s6 = scalar_lea.vmem %s628_s3, %s450_s21 }
   0xe   : > { %495 = vmatprep.subr.bf16.mxu0 %v526_v1  ;;  %510 = vmatprep.subr.bf16.mxu1 %v526_v1  ;;  %v529_v4 = vld [vmem:[%s166_s26] sm:$0xff]   ;;  %v530_v5 = vld [vmem:[%s166_s26 + $0x10] sm:$0xff]   ;;  %v531_v6 = vld [vmem:[%s166_s26 + $0x8] sm:$0xff]  }
   0xf   : > { %501 = vmatprep.mubr.msk.bf16.mxu0 %vm240_vm0, %v529_v4  ;;  %505 = vmatprep.mubr.msk.bf16.mxu1 %vm240_vm0, %v530_v5  ;;  %v532_v7 = vld [vmem:[%s166_s26 + $0x18] sm:$0xff]  }
  0x11   : > { %496 = vmatpush3.bf16.msra.mxu0 %v526_v1  ;;  %514 = vmatpush3.bf16.msra.mxu1 %v526_v1 }
  0x12   : > { %497 = vmatprep.subr.bf16.mxu0 %v527_v2  ;;  %511 = vmatprep.subr.bf16.mxu1 %v527_v2 }
  0x15   : > { %498 = vmatpush3.bf16.msra.mxu0 %v527_v2  ;;  %515 = vmatpush3.bf16.msra.mxu1 %v527_v2 }
  0x16   : > { %499 = vmatprep.subr.bf16.mxu0 %v528_v3  ;;  %512 = vmatprep.subr.bf16.mxu1 %v528_v3 }
  0x19   : > { %500 = vmatpush3.bf16.msra.mxu0 %v528_v3  ;;  %516 = vmatpush3.bf16.msra.mxu1 %v528_v3 }
  0x1c   : > { %502 = vmatmul.mubr.msk.bf16.vlgmr.msra.gmra.mxu0 %vm240_vm0, %v531_v6  ;;  %506 = vmatmul.mubr.msk.bf16.vlgmr.msra.gmra.mxu1 %vm240_vm0, %v532_v7 }
  0xdc   : > { %v503_v9 = vpop.f32.mrf.mxu0  ;;  %v507_v11 = vpop.f32.mrf.mxu1 }
  0xdd   : > { %v296_v12 = vadd.f32 %v503_v9, %v453_v8  ;;  %v312_v13 = vadd.f32 %v507_v11, %v453_v8 }
  0xde   : > { %v287_v14 = vpop.f32.mrf.mxu0  ;;  %v303_v15 = vpop.f32.mrf.mxu1 }
  0xdf   : > { %vm320_vm1 = vcmp.gt.f32.partialorder %v296_v12, 0.0  ;;  %v333_v16 = vmul.f32 %v466_v10, %v296_v12  ;;  %vm324_vm2 = vcmp.gt.f32.partialorder %v312_v13, 0.0  ;;  %v337_v17 = vmul.f32 %v466_v10, %v312_v13 }
  0xe0   : > { %v288_v18 = vadd.f32 %v453_v8, %v287_v14  ;;  %v304_v19 = vadd.f32 %v453_v8, %v303_v15  ;;  %v504_v20 = vpop.f32.mrf.mxu0  ;;  %v508_v21 = vpop.f32.mrf.mxu1 }
  0xe1   : > { %v341_v22 = vsel %vm320_vm1, %v296_v12, %v333_v16  ;;  %v345_v23 = vsel %vm324_vm2, %v312_v13, %v337_v17  ;;  %v299_v24 = vadd.f32 %v504_v20, %v453_v8  ;;  %v315_v25 = vadd.f32 %v508_v21, %v453_v8 }
  0xe2   : > { %v479_v26 = vpack.c.bf16 %v341_v22, %v341_v22  ;;  %v483_v27 = vpack.c.bf16 %v345_v23, %v345_v23  ;;  %vm318_vm4 = vcmp.gt.f32.partialorder %v288_v18, 0.0  ;;  %v331_v28 = vmul.f32 %v466_v10, %v288_v18  ;;  %v290_v29 = vpop.f32.mrf.mxu0  ;;  %v306_v30 = vpop.f32.mrf.mxu1 }
  0xe3   : > { %vm322_vm5 = vcmp.gt.f32.partialorder %v304_v19, 0.0  ;;  %v335_v31 = vmul.f32 %v466_v10, %v304_v19  ;;  %vm321_vm6 = vcmp.gt.f32.partialorder %v299_v24, 0.0  ;;  %v334_v32 = vmul.f32 %v466_v10, %v299_v24 }
  0xe4   : > { %382 = vst.msk [vmem:[%s604_s6 + $0x8] sm:$0xf] %vm379_vm3, %v479_v26  ;;  %386 = vst.msk [vmem:[%s604_s6 + $0x18] sm:$0xf] %vm379_vm3, %v483_v27  ;;  %v339_v33 = vsel %vm318_vm4, %v288_v18, %v331_v28  ;;  %vm325_vm7 = vcmp.gt.f32.partialorder %v315_v25, 0.0  ;;  %v338_v34 = vmul.f32 %v466_v10, %v315_v25  ;;  %v291_v35 = vadd.f32 %v453_v8, %v290_v29 }
  0xe5   : > { %v477_v36 = vpack.c.bf16 %v339_v33, %v339_v33  ;;  %v343_v37 = vsel %vm322_vm5, %v304_v19, %v335_v31  ;;  %v342_v38 = vsel %vm321_vm6, %v299_v24, %v334_v32  ;;  %v307_v39 = vadd.f32 %v453_v8, %v306_v30 }
  0xe6   : > { %v481_v40 = vpack.c.bf16 %v343_v37, %v343_v37  ;;  %v480_v41 = vpack.c.bf16 %v342_v38, %v342_v38  ;;  %v346_v42 = vsel %vm325_vm7, %v315_v25, %v338_v34  ;;  %vm319_vm8 = vcmp.gt.f32.partialorder %v291_v35, 0.0 }
  0xe7   : > { %380 = vst.msk [vmem:[%s604_s6] sm:$0xf] %vm379_vm3, %v477_v36  ;;  %v484_v43 = vpack.c.bf16 %v346_v42, %v346_v42  ;;  %v332_v44 = vmul.f32 %v466_v10, %v291_v35  ;;  %vm323_vm9 = vcmp.gt.f32.partialorder %v307_v39, 0.0  ;;  %v336_v45 = vmul.f32 %v466_v10, %v307_v39 }
  0xe8   : > { %384 = vst.msk [vmem:[%s604_s6 + $0x10] sm:$0xf] %vm379_vm3, %v481_v40  ;;  %383 = vst.msk [vmem:[%s604_s6 + $0xc] sm:$0xf] %vm379_vm3, %v480_v41 }
  0xe9   : > { %387 = vst.msk [vmem:[%s604_s6 + $0x1c] sm:$0xf] %vm379_vm3, %v484_v43  ;;  %v340_v46 = vsel %vm319_vm8, %v291_v35, %v332_v44  ;;  %v344_v47 = vsel %vm323_vm9, %v307_v39, %v336_v45 }
  0xea   : > { %v478_v48 = vpack.c.bf16 %v340_v46, %v340_v46  ;;  %v482_v49 = vpack.c.bf16 %v344_v47, %v344_v47 }
  0xec   : > { %381 = vst.msk [vmem:[%s604_s6 + $0x4] sm:$0xf] %vm379_vm3, %v478_v48  ;;  %385 = vst.msk [vmem:[%s604_s6 + $0x14] sm:$0xf] %vm379_vm3, %v482_v49 }
  0xed PF: > { %s13_s12 = sadd.s32 1, %s539_s12  }
  0xee   : > { %p10_p4 = scmp.ge.s32.totalorder %s13_s12, 4  }
  0xf0   :  { %12 = sbr.rel (!%p10_p4) target bundleno = 1 (0x1), region = 62 }

// kernel: _lambda_.27
= control target key start
LH: loop header
LB: loop body
LE: loop exit
PB: predicated region body
PF: predicated region fallthrough
CT: control target
= control target key end

     0   :  { %s1010_s12 = smov 0   ;;  %s1205_s0 = inlined_call_operand.vmem [shape: bf16[128,492], index: 0, kind: input, shape index: {}]   ;;  %s1206_s1 = inlined_call_operand.vmem [shape: bf16[492,64], index: 1, kind: input, shape index: {}]   ;;  %s1207_s2 = inlined_call_operand.vmem [shape: f32[2,64], index: 2, kind: input, shape index: {}]   ;;  %s1208_s3 = inlined_call_operand.vmem [shape: bf16[128,64], index: 3, kind: output, shape index: {}]  }
   0x1 LB: > { %s795_s13 = sadd.s32 4294967295, %s987_s12   ;;  %p799_p0 = scmp.ge.s32.totalorder %s987_s12, 1  ;;  %s987_s12 = sphi %s1010_s12, %s13_s12  }
   0x2   : > { %p139_p1 = scmp.lt.s32.totalorder %s987_s12, 3 }
   0x4   : > { %p140_p2 = pnand %p799_p0, %p139_p1 }
   0x5   : > { %s800_s7 = sshll.u32 (!%p140_p2), %s795_s13, 3 }
   0x6   : > { %143 = sbr.rel (%p140_p2) target bundleno = 301 (0x12d), region = 32  ;;  %p165_p3 = scmp.lt.s32.totalorder (!%p140_p2), %s800_s7, 15 }
   0xb   : > { %v926_v0 = vld [vmem:[%s1206_s1 + $0xb8] sm:$0xff]   ;;  %v989_v1 = vmov 0   ;;  %v927_v2 = vld [vmem:[%s1206_s1 + $0xb0] sm:$0xff]   ;;  %v928_v5 = vld [vmem:[%s1206_s1 + $0xa8] sm:$0xff]   ;;  %s1210_s7 = smov (!%p165_p3, %s800_s7), 15  ;;  %vm535_vm0 = vcmask 1045504  }
   0xc   : > { %604 = vmatprep.subr.bf16.mxu1 %v989_v1  ;;  %v930_v3 = vld [vmem:[%s1206_s1 + $0x78] sm:$0xff]   ;;  %v933_v6 = vld [vmem:[%s1206_s1 + $0x70] sm:$0xff]   ;;  %v929_v8 = vld [vmem:[%s1206_s1 + $0xa0] sm:$0xff]   ;;  %s868_s27 = sshll.u32 %s1210_s7, 4  ;;  %vm522_vm1 = vcmask 883712   ;;  %s804_s8 = sshll.u32 %s1210_s7, 2 }
   0xd   : > { %605 = vmatpush1.bf16.msra.mxu1 %v926_v0  ;;  %v931_v4 = vld [vmem:[%s1206_s1 + $0x38] sm:$0xff]   ;;  %877 = vmatprep.subr.bf16.mxu0 %v930_v3  ;;  %v934_v7 = vld [vmem:[%s1206_s1 + $0x30] sm:$0xff]   ;;  %v936_v9 = vld [vmem:[%s1206_s1 + $0x68] sm:$0xff]   ;;  %s1097_s10 = scalar_lea.vmem %s1205_s0, %s868_s27  ;;  %s1171_s11 = scalar_lea.vmem %s1208_s3, %s804_s8  ;;  %vm730_vm3 = vcmask 519168  }
   0xe   : > { %606 = vmatprep.subr.bf16.mxu1 %v989_v1  ;;  %878 = vmatpush3.bf16.msra.mxu0 %v931_v4  ;;  %v937_v10 = vld [vmem:[%s1206_s1 + $0x28] sm:$0xff]   ;;  %v939_v11 = vld [vmem:[%s1206_s1 + $0x60] sm:$0xff]   ;;  %v932_v12 = vld [vmem:[%s1206_s1 + $0x98] sm:$0xff]  }
   0xf   : > { %879 = vmatprep.subr.bf16.mxu0 %v933_v6  ;;  %v940_v13 = vld [vmem:[%s1206_s1 + $0x20] sm:$0xff]   ;;  %v942_v14 = vld [vmem:[%s1206_s1 + $0x58] sm:$0xff]   ;;  %v935_v15 = vld [vmem:[%s1206_s1 + $0x90] sm:$0xff]  }
  0x10   : > { %v943_v16 = vld [vmem:[%s1206_s1 + $0x18] sm:$0xff]   ;;  %v945_v17 = vld [vmem:[%s1206_s1 + $0x50] sm:$0xff]   ;;  %v938_v18 = vld [vmem:[%s1206_s1 + $0x88] sm:$0xff]  }
  0x11   : > { %607 = vmatpush1.bf16.msra.mxu1 %v927_v2  ;;  %v946_v19 = vld [vmem:[%s1206_s1 + $0x10] sm:$0xff]   ;;  %v948_v20 = vld [vmem:[%s1206_s1 + $0x48] sm:$0xff]   ;;  %v941_v21 = vld [vmem:[%s1206_s1 + $0x80] sm:$0xff]  }
  0x12   : > { %608 = vmatprep.subr.bf16.mxu1 %v989_v1  ;;  %880 = vmatpush3.bf16.msra.mxu0 %v934_v7  ;;  %v944_v22 = vld [vmem:[%s1206_s1 + $0xf0] sm:$0x3f]   ;;  %v949_v23 = vld [vmem:[%s1206_s1 + $0x8] sm:$0xff]   ;;  %v951_v24 = vld [vmem:[%s1206_s1 + $0x40] sm:$0xff]  }
  0x13   : > { %881 = vmatprep.subr.bf16.mxu0 %v936_v9  ;;  %v956_v25 = vld [vmem:[%s1097_s10 + $0x4] ss:$16 sps:$4 sm:$0xff]   ;;  %v537_v26 = vsel %vm535_vm0, %v944_v22, 0  ;;  %v947_v28 = vld [vmem:[%s1206_s1 + $0xe8] sm:$0xff]   ;;  %v954_v29 = vld [vmem:[%s1097_s10] ss:$16 sps:$4 sm:$0xff]  }
  0x14   : > { %v952_v27 = vld [vmem:[%s1206_s1] sm:$0xff]   ;;  %571 = vmatprep.mubr.bf16.mxu0 %v956_v25  ;;  %v965_v30 = vld [vmem:[%s1097_s10 + $0xc] ss:$16 sps:$4 sm:$0xff]   ;;  %v957_v36 = vld [vmem:[%s1206_s1 + $0xd0] sm:$0xff]  }
  0x15   : > { %609 = vmatpush1.bf16.msra.mxu1 %v928_v5  ;;  %v959_v31 = vld [vmem:[%s1097_s10 + $0x24] ss:$16 sps:$4 sm:$0xff]   ;;  %853 = vmatprep.mubr.msk.bf16.mxu1 %vm522_vm1, %v965_v30  ;;  %v953_v33 = vld [vmem:[%s1206_s1 + $0xd8] sm:$0xff]   ;;  %v961_v34 = vld [vmem:[%s1097_s10 + $0x20] ss:$16 sps:$4 sm:$0xff]  }
  0x16   : > { %610 = vmatprep.subr.bf16.mxu1 %v989_v1  ;;  %882 = vmatpush3.bf16.msra.mxu0 %v937_v10  ;;  %v950_v32 = vld [vmem:[%s1206_s1 + $0xe0] sm:$0xff]   ;;  %v958_v37 = vld [vmem:[%s1206_s1 + $0xc8] sm:$0xff]  }
  0x17   : > { %883 = vmatprep.subr.bf16.mxu0 %v939_v11  ;;  %v966_v35 = vld [vmem:[%s1097_s10 + $0x44] ss:$16 sps:$4 sm:$0xff]   ;;  %v968_v38 = vld [vmem:[%s1097_s10 + $0x40] ss:$16 sps:$4 sm:$0xff]   ;;  %v963_v41 = vld [vmem:[%s1097_s10 + $0x8] ss:$16 sps:$4 sm:$0xff]  }
  0x18   : > { %v972_v39 = vld [vmem:[%s1097_s10 + $0x64] ss:$16 sps:$4 sm:$0xff]   ;;  %v969_v42 = vld [vmem:[%s1097_s10 + $0x2c] ss:$16 sps:$4 sm:$0xff]   ;;  %v974_v43 = vld [vmem:[%s1097_s10 + $0x60] ss:$16 sps:$4 sm:$0xff]  }
  0x19   : > { %611 = vmatpush1.bf16.msra.mxu1 %v929_v8  ;;  %v962_v40 = vld [vmem:[%s1206_s1 + $0xc0] sm:$0xff]   ;;  %v971_v44 = vld [vmem:[%s1097_s10 + $0x28] ss:$16 sps:$4 sm:$0xff]   ;;  %v975_v45 = vld [vmem:[%s1097_s10 + $0x4c] ss:$16 sps:$4 sm:$0xff]  }
  0x1a   : > { %612 = vmatprep.subr.bf16.mxu1 %v989_v1  ;;  %884 = vmatpush3.bf16.msra.mxu0 %v940_v13  ;;  %v977_v46 = vld [vmem:[%s1097_s10 + $0x48] ss:$16 sps:$4 sm:$0xff]   ;;  %v978_v47 = vld [vmem:[%s1097_s10 + $0x6c] ss:$16 sps:$4 sm:$0xff]   ;;  %v1157_v59 = vld [vmem:[%s1207_s2] ss:$0 sm:$0xff] }
  0x1b   : > { %885 = vmatprep.subr.bf16.mxu0 %v942_v14  ;;  %v980_v48 = vld [vmem:[%s1097_s10 + $0x68] ss:$16 sps:$4 sm:$0xff]   ;;  %v1163_v0 = vld [vmem:[%s1207_s2 + $0x1] ss:$0 sm:$0xff] }
  0x1d   : > { %613 = vmatpush1.bf16.msra.mxu1 %v932_v12 }
  0x1e   : > { %614 = vmatprep.subr.bf16.mxu1 %v989_v1  ;;  %886 = vmatpush3.bf16.msra.mxu0 %v943_v16 }
  0x1f   : > { %887 = vmatprep.subr.bf16.mxu0 %v945_v17 }
  0x21   : > { %615 = vmatpush1.bf16.msra.mxu1 %v935_v15 }
  0x22   : > { %616 = vmatprep.subr.bf16.mxu1 %v989_v1  ;;  %888 = vmatpush3.bf16.msra.mxu0 %v946_v19 }
  0x23   : > { %889 = vmatprep.subr.bf16.mxu0 %v948_v20 }
  0x25   : > { %617 = vmatpush1.bf16.msra.mxu1 %v938_v18 }
  0x26   : > { %618 = vmatprep.subr.bf16.mxu1 %v989_v1  ;;  %890 = vmatpush3.bf16.msra.mxu0 %v949_v23 }
  0x27   : > { %891 = vmatprep.subr.bf16.mxu0 %v951_v24 }
  0x29   : > { %619 = vmatpush1.bf16.msra.mxu1 %v941_v21 }
  0x2a   : > { %622 = vmatprep.subr.bf16.mxu1 %v989_v1  ;;  %892 = vmatpush3.bf16.msra.mxu0 %v952_v27 }
  0x2d   : > { %623 = vmatpush2.bf16.msra.mxu1 %v537_v26  ;;  %572 = vmatmul.mubr.bf16.vlgmr.msra.gmra.mxu0 %v954_v29 }
  0x2e   : > { %624 = vmatprep.subr.bf16.mxu1 %v989_v1  ;;  %579 = vmatprep.mubr.bf16.mxu0 %v959_v31 }
  0x31   : > { %625 = vmatpush2.bf16.msra.mxu1 %v947_v28 }
  0x32   : > { %626 = vmatprep.subr.bf16.mxu1 %v989_v1 }
  0x35   : > { %627 = vmatpush2.bf16.msra.mxu1 %v950_v32  ;;  %580 = vmatmul.mubr.bf16.gmra.mxu0 %v961_v34 }
  0x36   : > { %628 = vmatprep.subr.bf16.mxu1 %v989_v1  ;;  %587 = vmatprep.mubr.bf16.mxu0 %v966_v35 }
  0x39   : > { %629 = vmatpush2.bf16.msra.mxu1 %v953_v33 }
  0x3a   : > { %630 = vmatprep.subr.bf16.mxu1 %v989_v1 }
  0x3d   : > { %631 = vmatpush2.bf16.msra.mxu1 %v957_v36  ;;  %588 = vmatmul.mubr.bf16.gmra.mxu0 %v968_v38 }
  0x3e   : > { %632 = vmatprep.subr.bf16.mxu1 %v989_v1  ;;  %595 = vmatprep.mubr.bf16.mxu0 %v972_v39 }
  0x41   : > { %633 = vmatpush2.bf16.msra.mxu1 %v958_v37 }
  0x42   : > { %634 = vmatprep.subr.bf16.mxu1 %v989_v1 }
  0x45   : > { %635 = vmatpush2.bf16.msra.mxu1 %v962_v40  ;;  %596 = vmatmul.mubr.bf16.gmra.mxu0 %v974_v43 }
  0x48   : > { %637 = vmatmul.mubr.bf16.vlgmr.msra.gmra.mxu1 %v963_v41 }
  0x49   : > { %854 = vmatprep.mubr.msk.bf16.mxu1 %vm522_vm1, %v969_v42 }
  0x50   : > { %645 = vmatmul.mubr.bf16.gmra.mxu1 %v971_v44 }
  0x51   : > { %855 = vmatprep.mubr.msk.bf16.mxu1 %vm522_vm1, %v975_v45 }
  0x58   : > { %653 = vmatmul.mubr.bf16.gmra.mxu1 %v977_v46 }
  0x59   : > { %856 = vmatprep.mubr.msk.bf16.mxu1 %vm522_vm1, %v978_v47 }
  0x60   : > { %661 = vmatmul.mubr.bf16.gmra.mxu1 %v980_v48 }
  0xed   : > { %v893_v49 = vpop.f32.mrf.mxu0 }
  0xef   : > { %v894_v50 = vpop.f32.mrf.mxu0 }
  0xf0   : > { %v895_v58 = vadd.f32 %v894_v50, %v893_v49 }
  0xf1   : > { %v896_v51 = vpop.f32.mrf.mxu0 }
  0xf2   : > { %v574_v62 = vadd.f32 %v895_v58, %v1157_v59 }
  0xf3   : > { %v897_v52 = vpop.f32.mrf.mxu0 }
  0xf4   : > { %v898_v61 = vadd.f32 %v897_v52, %v896_v51 }
  0xf5   : > { %v899_v53 = vpop.f32.mrf.mxu0 }
  0xf6   : > { %v577_v6 = vadd.f32 %v898_v61, %v1157_v59 }
  0xf7   : > { %v900_v54 = vpop.f32.mrf.mxu0 }
  0xf8   : > { %v901_v4 = vadd.f32 %v900_v54, %v899_v53 }
  0xf9   : > { %v902_v55 = vpop.f32.mrf.mxu0 }
  0xfa   : > { %v582_v15 = vadd.f32 %v901_v4, %v1157_v59 }
  0xfb   : > { %v903_v56 = vpop.f32.mrf.mxu0 }
  0xfc   : > { %v904_v13 = vadd.f32 %v903_v56, %v902_v55 }
  0xfd   : > { %v905_v57 = vpop.f32.mrf.mxu0 }
  0xfe   : > { %v585_v24 = vadd.f32 %v904_v13, %v1157_v59 }
  0xff   : > { %v906_v60 = vpop.f32.mrf.mxu0 }
 0x100   : > { %v907_v22 = vadd.f32 %v906_v60, %v905_v57 }
 0x101   : > { %v908_v1 = vpop.f32.mrf.mxu0 }
 0x102   : > { %v590_v33 = vadd.f32 %v907_v22, %v1157_v59 }
 0x103   : > { %v909_v8 = vpop.f32.mrf.mxu0 }
 0x104   : > { %v910_v31 = vadd.f32 %v909_v8, %v908_v1 }
 0x105   : > { %v911_v17 = vpop.f32.mrf.mxu0 }
 0x106   : > { %v593_v42 = vadd.f32 %v910_v31, %v1157_v59 }
 0x107   : > { %v912_v26 = vpop.f32.mrf.mxu0 }
 0x108   : > { %v638_v63 = vpop.f32.mrf.mxu1  ;;  %v913_v40 = vadd.f32 %v912_v26, %v911_v17 }
 0x109   : > { %v639_v2 = vadd.f32 %v638_v63, %v574_v62  ;;  %v914_v34 = vpop.f32.mrf.mxu0 }
 0x10a   : > { %v640_v3 = vpop.f32.mrf.mxu1  ;;  %v598_v51 = vadd.f32 %v913_v40, %v1157_v59 }
 0x10b   : > { %vm669_vm2 = vcmp.gt.f32.partialorder %v639_v2, 0.0  ;;  %v682_v5 = vmul.f32 %v1163_v0, %v639_v2  ;;  %v915_v43 = vpop.f32.mrf.mxu0 }
 0x10c   : > { %v641_v7 = vpop.f32.mrf.mxu1  ;;  %v916_v49 = vadd.f32 %v915_v43, %v914_v34 }
 0x10d   : > { %v690_v9 = vsel %vm669_vm2, %v639_v2, %v682_v5  ;;  %v642_v10 = vadd.f32 %v641_v7, %v577_v6 }
 0x10e   : > { %v869_v11 = vpack.c.bf16 %v690_v9, %v690_v9  ;;  %v643_v12 = vpop.f32.mrf.mxu1  ;;  %v601_v58 = vadd.f32 %v916_v49, %v1157_v59 }
 0x10f   : > { %vm670_vm4 = vcmp.gt.f32.partialorder %v642_v10, 0.0  ;;  %v683_v14 = vmul.f32 %v1163_v0, %v642_v10 }
 0x110   : > { %731 = vst.msk [vmem:[%s1171_s11] sm:$0xf] %vm730_vm3, %v869_v11  ;;  %v646_v16 = vpop.f32.mrf.mxu1 }
 0x111   : > { %v691_v18 = vsel %vm670_vm4, %v642_v10, %v683_v14  ;;  %v647_v19 = vadd.f32 %v646_v16, %v582_v15 }
 0x112   : > { %v870_v20 = vpack.c.bf16 %v691_v18, %v691_v18  ;;  %v648_v21 = vpop.f32.mrf.mxu1 }
 0x113   : > { %vm671_vm5 = vcmp.gt.f32.partialorder %v647_v19, 0.0  ;;  %v684_v23 = vmul.f32 %v1163_v0, %v647_v19 }
 0x114   : > { %732 = vst.msk [vmem:[%s1171_s11 + $0x4] sm:$0xf] %vm730_vm3, %v870_v20  ;;  %v649_v25 = vpop.f32.mrf.mxu1 }
 0x115   : > { %v692_v27 = vsel %vm671_vm5, %v647_v19, %v684_v23  ;;  %v650_v28 = vadd.f32 %v649_v25, %v585_v24 }
 0x116   : > { %v871_v29 = vpack.c.bf16 %v692_v27, %v692_v27  ;;  %v651_v30 = vpop.f32.mrf.mxu1 }
 0x117   : > { %vm672_vm6 = vcmp.gt.f32.partialorder %v650_v28, 0.0  ;;  %v685_v32 = vmul.f32 %v1163_v0, %v650_v28 }
 0x118   : > { %733 = vst.msk [vmem:[%s1171_s11 + $0x8] sm:$0xf] %vm730_vm3, %v871_v29  ;;  %v654_v35 = vpop.f32.mrf.mxu1 }
 0x119   : > { %v693_v36 = vsel %vm672_vm6, %v650_v28, %v685_v32  ;;  %v655_v37 = vadd.f32 %v654_v35, %v590_v33 }
 0x11a   : > { %v872_v38 = vpack.c.bf16 %v693_v36, %v693_v36  ;;  %v656_v39 = vpop.f32.mrf.mxu1 }
 0x11b   : > { %vm673_vm7 = vcmp.gt.f32.partialorder %v655_v37, 0.0  ;;  %v686_v41 = vmul.f32 %v1163_v0, %v655_v37 }
 0x11c   : > { %734 = vst.msk [vmem:[%s1171_s11 + $0xc] sm:$0xf] %vm730_vm3, %v872_v38  ;;  %v657_v44 = vpop.f32.mrf.mxu1 }
 0x11d   : > { %v694_v45 = vsel %vm673_vm7, %v655_v37, %v686_v41  ;;  %v658_v46 = vadd.f32 %v657_v44, %v593_v42 }
 0x11e   : > { %v873_v47 = vpack.c.bf16 %v694_v45, %v694_v45  ;;  %v659_v48 = vpop.f32.mrf.mxu1 }
 0x11f   : > { %vm674_vm8 = vcmp.gt.f32.partialorder %v658_v46, 0.0  ;;  %v687_v50 = vmul.f32 %v1163_v0, %v658_v46 }
 0x120   : > { %735 = vst.msk [vmem:[%s1171_s11 + $0x10] sm:$0xf] %vm730_vm3, %v873_v47  ;;  %v662_v52 = vpop.f32.mrf.mxu1 }
 0x121   : > { %v695_v53 = vsel %vm674_vm8, %v658_v46, %v687_v50  ;;  %v663_v54 = vadd.f32 %v662_v52, %v598_v51 }
 0x122   : > { %v874_v55 = vpack.c.bf16 %v695_v53, %v695_v53  ;;  %v664_v56 = vpop.f32.mrf.mxu1 }
 0x123   : > { %vm675_vm9 = vcmp.gt.f32.partialorder %v663_v54, 0.0  ;;  %v688_v57 = vmul.f32 %v1163_v0, %v663_v54 }
 0x124   : > { %736 = vst.msk [vmem:[%s1171_s11 + $0x14] sm:$0xf] %vm730_vm3, %v874_v55  ;;  %v665_v60 = vpop.f32.mrf.mxu1 }
 0x125   : > { %v696_v61 = vsel %vm675_vm9, %v663_v54, %v688_v57  ;;  %v666_v62 = vadd.f32 %v665_v60, %v601_v58 }
 0x126   : > { %v875_v63 = vpack.c.bf16 %v696_v61, %v696_v61  ;;  %v667_v1 = vpop.f32.mrf.mxu1 }
 0x127   : > { %vm676_vm10 = vcmp.gt.f32.partialorder %v666_v62, 0.0  ;;  %v689_v2 = vmul.f32 %v1163_v0, %v666_v62 }
 0x128   : > { %737 = vst.msk [vmem:[%s1171_s11 + $0x18] sm:$0xf] %vm730_vm3, %v875_v63 }
 0x129   : > { %v697_v3 = vsel %vm676_vm10, %v666_v62, %v689_v2 }
 0x12a   : > { %v876_v4 = vpack.c.bf16 %v697_v3, %v697_v3 }
 0x12c   : > { %738 = vst.msk [vmem:[%s1171_s11 + $0x1c] sm:$0xf] %vm730_vm3, %v876_v4 }
 0x12d PF: > { %s13_s12 = sadd.s32 1, %s987_s12  }
 0x12e   : > { %p10_p4 = scmp.ge.s32.totalorder %s13_s12, 4  }
 0x130   :  { %12 = sbr.rel (!%p10_p4) target bundleno = 1 (0x1), region = 62 }

// kernel: _lambda_.29
= control target key start
LH: loop header
LB: loop body
LE: loop exit
PB: predicated region body
PF: predicated region fallthrough
CT: control target
= control target key end

     0   :  { %s1300_s18 = smov 0   ;;  %s1533_s0 = inlined_call_operand.vmem [shape: bf16[128,492], index: 0, kind: input, shape index: {}]   ;;  %s1534_s1 = inlined_call_operand.vmem [shape: bf16[128,64], index: 1, kind: input, shape index: {}]   ;;  %s1535_s2 = inlined_call_operand.vmem [shape: bf16[492,64], index: 2, kind: input, shape index: {}]   ;;  %s1536_s3 = inlined_call_operand.vmem [shape: bf16[64,64], index: 3, kind: input, shape index: {}]   ;;  %s1537_s4 = inlined_call_operand.vmem [shape: f32[2,64], index: 4, kind: input, shape index: {}]   ;;  %s1538_s5 = inlined_call_operand.vmem [shape: bf16[128,64], index: 5, kind: output, shape index: {}]  }
   0x1 LB: > { %s1029_s19 = sadd.s32 4294967295, %s1267_s18   ;;  %p1033_p0 = scmp.ge.s32.totalorder %s1267_s18, 1  ;;  %s1267_s18 = sphi %s1300_s18, %s15_s18  }
   0x2   : > { %p200_p1 = scmp.lt.s32.totalorder %s1267_s18, 3 }
   0x4   : > { %p201_p2 = pnand %p1033_p0, %p200_p1 }
   0x5   : > { %s1034_s24 = sshll.u32 (!%p201_p2), %s1029_s19, 3 }
   0x6   : > { %204 = sbr.rel (%p201_p2) target bundleno = 303 (0x12f), region = 40  ;;  %p235_p3 = scmp.lt.s32.totalorder (!%p201_p2), %s1034_s24, 15 }
   0xb   : > { %v1198_v0 = vld [vmem:[%s1536_s3 + $0x18] sm:$0xff]   ;;  %v1269_v1 = vmov 0   ;;  %v1200_v3 = vld [vmem:[%s1536_s3 + $0x10] sm:$0xff]   ;;  %v1202_v5 = vld [vmem:[%s1536_s3 + $0x8] sm:$0xff]   ;;  %s1540_s24 = smov (!%p235_p3, %s1034_s24), 15  ;;  %vm392_vm0 = vcmask 523264  }
   0xc   : > { %813 = vmatprep.subr.bf16.mxu0 %v1269_v1  ;;  %v1199_v2 = vld [vmem:[%s1535_s2 + $0xb8] sm:$0xff]   ;;  %1173 = vmatprep.subr.bf16.mxu1 %v1198_v0  ;;  %v1201_v4 = vld [vmem:[%s1535_s2 + $0xb0] sm:$0xff]   ;;  %v1203_v6 = vld [vmem:[%s1535_s2 + $0xa8] sm:$0xff]   ;;  %s1038_s8 = sshll.u32 %s1540_s24, 2  ;;  %vm744_vm1 = vcmask 1045504   ;;  %s1116_s25 = sshll.u32 %s1540_s24, 4 }
   0xd   : > { %814 = vmatpush1.bf16.msra.mxu0 %v1199_v2  ;;  %1174 = vmatpush3.bf16.msra.mxu1 %v1198_v0  ;;  %v1204_v7 = vld [vmem:[%s1536_s3] sm:$0xff]   ;;  %s1340_s13 = scalar_lea.vmem %s1534_s1, %s1038_s8  ;;  %v1208_v10 = vld [vmem:[%s1535_s2 + $0x78] sm:$0xff]   ;;  %v1211_v14 = vld [vmem:[%s1535_s2 + $0x70] sm:$0xff]   ;;  %s1411_s6 = scalar_lea.vmem %s1533_s0, %s1116_s25  ;;  %vm731_vm2 = vcmask 883712   ;;  %vm952_vm4 = vcmask 519168  }
   0xe   : > { %815 = vmatprep.subr.bf16.mxu0 %v1269_v1  ;;  %1175 = vmatprep.subr.bf16.mxu1 %v1200_v3  ;;  %v1206_v8 = vld [vmem:[%s1340_s13] sm:$0xff]   ;;  %v1207_v11 = vld [vmem:[%s1340_s13 + $0x8] sm:$0xff]   ;;  %v1209_v12 = vld [vmem:[%s1535_s2 + $0x98] sm:$0xff]   ;;  %s1495_s15 = scalar_lea.vmem %s1538_s5, %s1038_s8 }
   0xf   : > { %v1205_v9 = vld [vmem:[%s1535_s2 + $0xa0] sm:$0xff]   ;;  %1181 = vmatprep.mubr.msk.bf16.mxu1 %vm392_vm0, %v1206_v8  ;;  %v1210_v13 = vld [vmem:[%s1535_s2 + $0x38] sm:$0xff]   ;;  %v1212_v15 = vld [vmem:[%s1535_s2 + $0x90] sm:$0xff]  }
  0x10   : > { %v1213_v16 = vld [vmem:[%s1535_s2 + $0x30] sm:$0xff]   ;;  %v1214_v17 = vld [vmem:[%s1535_s2 + $0x68] sm:$0xff]   ;;  %v1217_v20 = vld [vmem:[%s1535_s2 + $0x60] sm:$0xff]  }
  0x11   : > { %816 = vmatpush1.bf16.msra.mxu0 %v1201_v4  ;;  %1176 = vmatpush3.bf16.msra.mxu1 %v1200_v3  ;;  %v1215_v18 = vld [vmem:[%s1535_s2 + $0x88] sm:$0xff]   ;;  %v1218_v21 = vld [vmem:[%s1535_s2 + $0x80] sm:$0xff]   ;;  %v1220_v23 = vld [vmem:[%s1535_s2 + $0x58] sm:$0xff]  }
  0x12   : > { %817 = vmatprep.subr.bf16.mxu0 %v1269_v1  ;;  %1177 = vmatprep.subr.bf16.mxu1 %v1202_v5  ;;  %v1216_v19 = vld [vmem:[%s1535_s2 + $0x28] sm:$0xff]   ;;  %v1219_v22 = vld [vmem:[%s1535_s2 + $0x20] sm:$0xff]   ;;  %v1221_v24 = vld [vmem:[%s1535_s2 + $0xf0] sm:$0x3f]  }
  0x13   : > { %v1226_v25 = vld [vmem:[%s1340_s13 + $0x10] sm:$0xff]   ;;  %v1227_v26 = vld [vmem:[%s1340_s13 + $0x18] sm:$0xff]   ;;  %v746_v28 = vsel %vm744_vm1, %v1221_v24, 0  ;;  %v1224_v30 = vld [vmem:[%s1535_s2 + $0xe8] sm:$0xff]  }
  0x14   : > { %v1222_v27 = vld [vmem:[%s1535_s2 + $0x18] sm:$0xff]   ;;  %v1223_v29 = vld [vmem:[%s1535_s2 + $0x50] sm:$0xff]   ;;  %v1228_v32 = vld [vmem:[%s1535_s2 + $0x48] sm:$0xff]  }
  0x15   : > { %818 = vmatpush1.bf16.msra.mxu0 %v1203_v6  ;;  %1178 = vmatpush3.bf16.msra.mxu1 %v1202_v5  ;;  %v1225_v31 = vld [vmem:[%s1535_s2 + $0x10] sm:$0xff]   ;;  %v1229_v34 = vld [vmem:[%s1535_s2 + $0xe0] sm:$0xff]   ;;  %v1230_v35 = vld [vmem:[%s1535_s2 + $0x8] sm:$0xff]  }
  0x16   : > { %819 = vmatprep.subr.bf16.mxu0 %v1269_v1  ;;  %1179 = vmatprep.subr.bf16.mxu1 %v1204_v7  ;;  %v1236_v33 = vld [vmem:[%s1411_s6 + $0x4] ss:$16 sps:$4 sm:$0xff]   ;;  %v1232_v37 = vld [vmem:[%s1535_s2 + $0xd8] sm:$0xff]   ;;  %v1234_v40 = vld [vmem:[%s1411_s6] ss:$16 sps:$4 sm:$0xff]  }
  0x17   : > { %v1231_v36 = vld [vmem:[%s1535_s2 + $0x40] sm:$0xff]   ;;  %v1245_v38 = vld [vmem:[%s1411_s6 + $0xc] ss:$16 sps:$4 sm:$0xff]   ;;  %v1237_v41 = vld [vmem:[%s1535_s2 + $0xd0] sm:$0xff]  }
  0x18   : > { %v1233_v39 = vld [vmem:[%s1535_s2] sm:$0xff]   ;;  %1100 = vmatprep.mubr.msk.bf16.mxu0 %vm731_vm2, %v1245_v38  ;;  %v1238_v43 = vld [vmem:[%s1535_s2 + $0xc8] sm:$0xff]  }
  0x19   : > { %820 = vmatpush1.bf16.msra.mxu0 %v1205_v9  ;;  %1180 = vmatpush3.bf16.msra.mxu1 %v1204_v7  ;;  %v1239_v42 = vld [vmem:[%s1411_s6 + $0x24] ss:$16 sps:$4 sm:$0xff]   ;;  %v1241_v44 = vld [vmem:[%s1411_s6 + $0x20] ss:$16 sps:$4 sm:$0xff]   ;;  %v1243_v47 = vld [vmem:[%s1411_s6 + $0x8] ss:$16 sps:$4 sm:$0xff]  }
  0x1a   : > { %821 = vmatprep.subr.bf16.mxu0 %v1269_v1  ;;  %1133 = vmatprep.subr.bf16.mxu1 %v1208_v10  ;;  %v1242_v45 = vld [vmem:[%s1535_s2 + $0xc0] sm:$0xff]   ;;  %v1249_v48 = vld [vmem:[%s1411_s6 + $0x2c] ss:$16 sps:$4 sm:$0xff]   ;;  %v1251_v51 = vld [vmem:[%s1411_s6 + $0x28] ss:$16 sps:$4 sm:$0xff]  }
  0x1b   : > { %v1246_v46 = vld [vmem:[%s1411_s6 + $0x44] ss:$16 sps:$4 sm:$0xff]   ;;  %v1248_v49 = vld [vmem:[%s1411_s6 + $0x40] ss:$16 sps:$4 sm:$0xff]   ;;  %v1255_v52 = vld [vmem:[%s1411_s6 + $0x4c] ss:$16 sps:$4 sm:$0xff]  }
  0x1c   : > { %1182 = vmatmul.mubr.msk.bf16.vlgmr.msra.gmra.mxu1 %vm392_vm0, %v1207_v11  ;;  %v1252_v50 = vld [vmem:[%s1411_s6 + $0x64] ss:$16 sps:$4 sm:$0xff]   ;;  %v1254_v53 = vld [vmem:[%s1411_s6 + $0x60] ss:$16 sps:$4 sm:$0xff]   ;;  %v1257_v54 = vld [vmem:[%s1411_s6 + $0x48] ss:$16 sps:$4 sm:$0xff]  }
  0x1d   : > { %822 = vmatpush1.bf16.msra.mxu0 %v1209_v12  ;;  %1134 = vmatpush3.bf16.msra.mxu1 %v1210_v13  ;;  %v1258_v55 = vld [vmem:[%s1411_s6 + $0x6c] ss:$16 sps:$4 sm:$0xff]   ;;  %v1260_v56 = vld [vmem:[%s1411_s6 + $0x68] ss:$16 sps:$4 sm:$0xff]   ;;  %v1481_v11 = vld [vmem:[%s1537_s4] ss:$0 sm:$0xff] }
  0x1e   : > { %823 = vmatprep.subr.bf16.mxu0 %v1269_v1  ;;  %1135 = vmatprep.subr.bf16.mxu1 %v1211_v14  ;;  %v1486_v14 = vld [vmem:[%s1537_s4 + $0x1] ss:$0 sm:$0xff] }
  0x1f   : > { %1185 = vmatprep.mubr.msk.bf16.mxu1 %vm392_vm0, %v1226_v25 }
  0x21   : > { %824 = vmatpush1.bf16.msra.mxu0 %v1212_v15  ;;  %1136 = vmatpush3.bf16.msra.mxu1 %v1213_v16 }
  0x22   : > { %825 = vmatprep.subr.bf16.mxu0 %v1269_v1  ;;  %1137 = vmatprep.subr.bf16.mxu1 %v1214_v17 }
  0x24   : > { %1186 = vmatmul.mubr.msk.bf16.gmra.mxu1 %vm392_vm0, %v1227_v26 }
  0x25   : > { %826 = vmatpush1.bf16.msra.mxu0 %v1215_v18  ;;  %1138 = vmatpush3.bf16.msra.mxu1 %v1216_v19 }
  0x26   : > { %827 = vmatprep.subr.bf16.mxu0 %v1269_v1  ;;  %1139 = vmatprep.subr.bf16.mxu1 %v1217_v20 }
  0x27   : > { %780 = vmatprep.mubr.bf16.mxu1 %v1236_v33 }
  0x29   : > { %828 = vmatpush1.bf16.msra.mxu0 %v1218_v21  ;;  %1140 = vmatpush3.bf16.msra.mxu1 %v1219_v22 }
  0x2a   : > { %831 = vmatprep.subr.bf16.mxu0 %v1269_v1  ;;  %1141 = vmatprep.subr.bf16.mxu1 %v1220_v23 }
  0x2d   : > { %832 = vmatpush2.bf16.msra.mxu0 %v746_v28  ;;  %1142 = vmatpush3.bf16.msra.mxu1 %v1222_v27 }
  0x2e   : > { %833 = vmatprep.subr.bf16.mxu0 %v1269_v1  ;;  %1143 = vmatprep.subr.bf16.mxu1 %v1223_v29 }
  0x31   : > { %834 = vmatpush2.bf16.msra.mxu0 %v1224_v30  ;;  %1144 = vmatpush3.bf16.msra.mxu1 %v1225_v31 }
  0x32   : > { %835 = vmatprep.subr.bf16.mxu0 %v1269_v1  ;;  %1145 = vmatprep.subr.bf16.mxu1 %v1228_v32 }
  0x35   : > { %836 = vmatpush2.bf16.msra.mxu0 %v1229_v34  ;;  %1146 = vmatpush3.bf16.msra.mxu1 %v1230_v35 }
  0x36   : > { %837 = vmatprep.subr.bf16.mxu0 %v1269_v1  ;;  %1147 = vmatprep.subr.bf16.mxu1 %v1231_v36 }
  0x39   : > { %838 = vmatpush2.bf16.msra.mxu0 %v1232_v37  ;;  %1148 = vmatpush3.bf16.msra.mxu1 %v1233_v39 }
  0x3a   : > { %839 = vmatprep.subr.bf16.mxu0 %v1269_v1 }
  0x3c   : > { %781 = vmatmul.mubr.bf16.vlgmr.msra.gmra.mxu1 %v1234_v40 }
  0x3d   : > { %840 = vmatpush2.bf16.msra.mxu0 %v1237_v41  ;;  %788 = vmatprep.mubr.bf16.mxu1 %v1239_v42 }
  0x3e   : > { %841 = vmatprep.subr.bf16.mxu0 %v1269_v1 }
  0x41   : > { %842 = vmatpush2.bf16.msra.mxu0 %v1238_v43 }
  0x42   : > { %843 = vmatprep.subr.bf16.mxu0 %v1269_v1 }
  0x44   : > { %789 = vmatmul.mubr.bf16.gmra.mxu1 %v1241_v44 }
  0x45   : > { %844 = vmatpush2.bf16.msra.mxu0 %v1242_v45  ;;  %796 = vmatprep.mubr.bf16.mxu1 %v1246_v46 }
  0x48   : > { %846 = vmatmul.mubr.bf16.vlgmr.msra.gmra.mxu0 %v1243_v47 }
  0x49   : > { %1101 = vmatprep.mubr.msk.bf16.mxu0 %vm731_vm2, %v1249_v48 }
  0x4c   : > { %797 = vmatmul.mubr.bf16.gmra.mxu1 %v1248_v49 }
  0x4d   : > { %804 = vmatprep.mubr.bf16.mxu1 %v1252_v50 }
  0x50   : > { %854 = vmatmul.mubr.bf16.gmra.mxu0 %v1251_v51 }
  0x51   : > { %1102 = vmatprep.mubr.msk.bf16.mxu0 %vm731_vm2, %v1255_v52 }
  0x54   : > { %805 = vmatmul.mubr.bf16.gmra.mxu1 %v1254_v53 }
  0x58   : > { %862 = vmatmul.mubr.bf16.gmra.mxu0 %v1257_v54 }
  0x59   : > { %1103 = vmatprep.mubr.msk.bf16.mxu0 %vm731_vm2, %v1258_v55 }
  0x60   : > { %870 = vmatmul.mubr.bf16.gmra.mxu0 %v1260_v56 }
  0xdc   : > { %v1183_v57 = vpop.f32.mrf.mxu1 }
  0xde   : > { %v439_v58 = vpop.f32.mrf.mxu1 }
  0xe0   : > { %v1184_v59 = vpop.f32.mrf.mxu1 }
  0xe2   : > { %v442_v60 = vpop.f32.mrf.mxu1 }
  0xe4   : > { %v1472_v61 = vpop.f32.mrf.mxu1 }
  0xe6   : > { %v455_v62 = vpop.f32.mrf.mxu1 }
  0xe8   : > { %v1474_v63 = vpop.f32.mrf.mxu1 }
  0xea   : > { %v1476_v0 = vpop.f32.mrf.mxu1 }
  0xfc   : > { %v1149_v1 = vpop.f32.mrf.mxu1 }
  0xfe   : > { %v1150_v2 = vpop.f32.mrf.mxu1 }
  0xff   : > { %v1151_v5 = vadd.f32 %v1150_v2, %v1149_v1 }
 0x100   : > { %v1152_v3 = vpop.f32.mrf.mxu1 }
 0x101   : > { %v783_v9 = vadd.f32 %v1151_v5, %v439_v58 }
 0x102   : > { %v1153_v4 = vpop.f32.mrf.mxu1 }
 0x103   : > { %v1154_v8 = vadd.f32 %v1153_v4, %v1152_v3 }
 0x104   : > { %v1155_v6 = vpop.f32.mrf.mxu1 }
 0x105   : > { %v786_v19 = vadd.f32 %v1154_v8, %v442_v60 }
 0x106   : > { %v1156_v7 = vpop.f32.mrf.mxu1 }
 0x107   : > { %v1157_v17 = vadd.f32 %v1156_v7, %v1155_v6 }
 0x108   : > { %v847_v10 = vpop.f32.mrf.mxu0  ;;  %v1158_v12 = vpop.f32.mrf.mxu1 }
 0x109   : > { %v848_v13 = vadd.f32 %v847_v10, %v783_v9  ;;  %v791_v29 = vadd.f32 %v1183_v57, %v1157_v17 }
 0x10a   : > { %v849_v15 = vpop.f32.mrf.mxu0  ;;  %v1159_v16 = vpop.f32.mrf.mxu1 }
 0x10b   : > { %v883_v18 = vadd.f32 %v1481_v11, %v848_v13  ;;  %v1160_v27 = vadd.f32 %v1159_v16, %v1158_v12 }
 0x10c   : > { %v850_v20 = vpop.f32.mrf.mxu0  ;;  %v1161_v21 = vpop.f32.mrf.mxu1 }
 0x10d   : > { %vm891_vm3 = vcmp.gt.f32.partialorder %v883_v18, 0.0  ;;  %v904_v22 = vmul.f32 %v1486_v14, %v883_v18  ;;  %v851_v23 = vadd.f32 %v850_v20, %v786_v19  ;;  %v794_v40 = vadd.f32 %v1184_v59, %v1160_v27 }
 0x10e   : > { %v852_v24 = vpop.f32.mrf.mxu0  ;;  %v1162_v25 = vpop.f32.mrf.mxu1 }
 0x10f   : > { %v912_v26 = vsel %vm891_vm3, %v883_v18, %v904_v22  ;;  %v884_v28 = vadd.f32 %v1481_v11, %v851_v23  ;;  %v1163_v38 = vadd.f32 %v1162_v25, %v1161_v21 }
 0x110   : > { %v1117_v30 = vpack.c.bf16 %v912_v26, %v912_v26  ;;  %v855_v31 = vpop.f32.mrf.mxu0  ;;  %v1164_v32 = vpop.f32.mrf.mxu1 }
 0x111   : > { %vm892_vm5 = vcmp.gt.f32.partialorder %v884_v28, 0.0  ;;  %v905_v33 = vmul.f32 %v1486_v14, %v884_v28  ;;  %v856_v34 = vadd.f32 %v855_v31, %v791_v29  ;;  %v799_v51 = vadd.f32 %v1163_v38, %v455_v62 }
 0x112   : > { %953 = vst.msk [vmem:[%s1495_s15] sm:$0xf] %vm952_vm4, %v1117_v30  ;;  %v857_v35 = vpop.f32.mrf.mxu0  ;;  %v1165_v36 = vpop.f32.mrf.mxu1 }
 0x113   : > { %v913_v37 = vsel %vm892_vm5, %v884_v28, %v905_v33  ;;  %v885_v39 = vadd.f32 %v1481_v11, %v856_v34  ;;  %v1166_v49 = vadd.f32 %v1165_v36, %v1164_v32 }
 0x114   : > { %v1118_v41 = vpack.c.bf16 %v913_v37, %v913_v37  ;;  %v858_v42 = vpop.f32.mrf.mxu0  ;;  %v1167_v43 = vpop.f32.mrf.mxu1 }
 0x115   : > { %vm893_vm6 = vcmp.gt.f32.partialorder %v885_v39, 0.0  ;;  %v906_v44 = vmul.f32 %v1486_v14, %v885_v39  ;;  %v859_v45 = vadd.f32 %v858_v42, %v794_v40  ;;  %v802_v1 = vadd.f32 %v1166_v49, %v1476_v0 }
 0x116   : > { %954 = vst.msk [vmem:[%s1495_s15 + $0x4] sm:$0xf] %vm952_vm4, %v1118_v41  ;;  %v860_v46 = vpop.f32.mrf.mxu0  ;;  %v1168_v47 = vpop.f32.mrf.mxu1 }
 0x117   : > { %v914_v48 = vsel %vm893_vm6, %v885_v39, %v906_v44  ;;  %v886_v50 = vadd.f32 %v1481_v11, %v859_v45  ;;  %v1169_v59 = vadd.f32 %v1168_v47, %v1167_v43 }
 0x118   : > { %v1119_v52 = vpack.c.bf16 %v914_v48, %v914_v48  ;;  %v863_v53 = vpop.f32.mrf.mxu0  ;;  %v1170_v54 = vpop.f32.mrf.mxu1 }
 0x119   : > { %vm894_vm7 = vcmp.gt.f32.partialorder %v886_v50, 0.0  ;;  %v907_v55 = vmul.f32 %v1486_v14, %v886_v50  ;;  %v864_v56 = vadd.f32 %v863_v53, %v799_v51  ;;  %v807_v10 = vadd.f32 %v1472_v61, %v1169_v59 }
 0x11a   : > { %955 = vst.msk [vmem:[%s1495_s15 + $0x8] sm:$0xf] %vm952_vm4, %v1119_v52  ;;  %v865_v57 = vpop.f32.mrf.mxu0  ;;  %v1171_v3 = vpop.f32.mrf.mxu1 }
 0x11b   : > { %v915_v58 = vsel %vm894_vm7, %v886_v50, %v907_v55  ;;  %v887_v60 = vadd.f32 %v1481_v11, %v864_v56  ;;  %v1172_v8 = vadd.f32 %v1171_v3, %v1170_v54 }
 0x11c   : > { %v1120_v2 = vpack.c.bf16 %v915_v58, %v915_v58  ;;  %v866_v62 = vpop.f32.mrf.mxu0 }
 0x11d   : > { %vm895_vm8 = vcmp.gt.f32.partialorder %v887_v60, 0.0  ;;  %v908_v4 = vmul.f32 %v1486_v14, %v887_v60  ;;  %v867_v5 = vadd.f32 %v866_v62, %v802_v1  ;;  %v810_v19 = vadd.f32 %v1474_v63, %v1172_v8 }
 0x11e   : > { %956 = vst.msk [vmem:[%s1495_s15 + $0xc] sm:$0xf] %vm952_vm4, %v1120_v2  ;;  %v868_v6 = vpop.f32.mrf.mxu0 }
 0x11f   : > { %v916_v7 = vsel %vm895_vm8, %v887_v60, %v908_v4  ;;  %v888_v9 = vadd.f32 %v1481_v11, %v867_v5 }
 0x120   : > { %v1121_v12 = vpack.c.bf16 %v916_v7, %v916_v7  ;;  %v871_v0 = vpop.f32.mrf.mxu0 }
 0x121   : > { %vm896_vm9 = vcmp.gt.f32.partialorder %v888_v9, 0.0  ;;  %v909_v13 = vmul.f32 %v1486_v14, %v888_v9  ;;  %v872_v15 = vadd.f32 %v871_v0, %v807_v10 }
 0x122   : > { %957 = vst.msk [vmem:[%s1495_s15 + $0x10] sm:$0xf] %vm952_vm4, %v1121_v12  ;;  %v873_v16 = vpop.f32.mrf.mxu0 }
 0x123   : > { %v917_v17 = vsel %vm896_vm9, %v888_v9, %v909_v13  ;;  %v889_v18 = vadd.f32 %v1481_v11, %v872_v15 }
 0x124   : > { %v1122_v20 = vpack.c.bf16 %v917_v17, %v917_v17  ;;  %v874_v21 = vpop.f32.mrf.mxu0 }
 0x125   : > { %vm897_vm10 = vcmp.gt.f32.partialorder %v889_v18, 0.0  ;;  %v910_v61 = vmul.f32 %v1486_v14, %v889_v18  ;;  %v875_v22 = vadd.f32 %v874_v21, %v810_v19 }
 0x126   : > { %958 = vst.msk [vmem:[%s1495_s15 + $0x14] sm:$0xf] %vm952_vm4, %v1122_v20  ;;  %v876_v23 = vpop.f32.mrf.mxu0 }
 0x127   : > { %v918_v24 = vsel %vm897_vm10, %v889_v18, %v910_v61  ;;  %v890_v25 = vadd.f32 %v1481_v11, %v875_v22 }
 0x128   : > { %v1123_v26 = vpack.c.bf16 %v918_v24, %v918_v24 }
 0x129   : > { %vm898_vm11 = vcmp.gt.f32.partialorder %v890_v25, 0.0  ;;  %v911_v27 = vmul.f32 %v1486_v14, %v890_v25 }
 0x12a   : > { %959 = vst.msk [vmem:[%s1495_s15 + $0x18] sm:$0xf] %vm952_vm4, %v1123_v26 }
 0x12b   : > { %v919_v63 = vsel %vm898_vm11, %v890_v25, %v911_v27 }
 0x12c   : > { %v1124_v28 = vpack.c.bf16 %v919_v63, %v919_v63 }
 0x12e   : > { %960 = vst.msk [vmem:[%s1495_s15 + $0x1c] sm:$0xf] %vm952_vm4, %v1124_v28 }
 0x12f PF: > { %s15_s18 = sadd.s32 1, %s1267_s18  }
 0x130   : > { %p12_p4 = scmp.ge.s32.totalorder %s15_s18, 4  }
 0x132   :  { %14 = sbr.rel (!%p12_p4) target bundleno = 1 (0x1), region = 73 }

// kernel: _lambda_.38
= control target key start
LH: loop header
LB: loop body
LE: loop exit
PB: predicated region body
PF: predicated region fallthrough
CT: control target
= control target key end

     0   :  { %s1205_s24 = smov 0   ;;  %s1428_s0 = inlined_call_operand.vmem [shape: bf16[128,64], index: 0, kind: input, shape index: {}]   ;;  %s1429_s1 = inlined_call_operand.vmem [shape: bf16[128,64], index: 1, kind: input, shape index: {}]   ;;  %s1430_s2 = inlined_call_operand.vmem [shape: bf16[128,8], index: 2, kind: input, shape index: {}]   ;;  %s1431_s3 = inlined_call_operand.vmem [shape: bf16[64,131], index: 3, kind: input, shape index: {}]   ;;  %s1432_s4 = inlined_call_operand.vmem [shape: bf16[64,131], index: 4, kind: input, shape index: {}]   ;;  %s1433_s5 = inlined_call_operand.vmem [shape: bf16[8,131], index: 5, kind: input, shape index: {}]   ;;  %s1434_s6 = inlined_call_operand.vmem [shape: f32[2,131], index: 6, kind: input, shape index: {}]   ;;  %s1435_s7 = inlined_call_operand.vmem [shape: bf16[128,131], index: 7, kind: output, shape index: {}]  }
   0x1 LB: > { %s1024_s25 = sadd.s32 4294967295, %s1162_s24   ;;  %p1028_p0 = scmp.ge.s32.totalorder %s1162_s24, 1  ;;  %s1162_s24 = sphi %s1205_s24, %s17_s24  }
   0x2   : > { %p260_p1 = scmp.lt.s32.totalorder %s1162_s24, 3 }
   0x4   : > { %p261_p2 = pnand %p1028_p0, %p260_p1 }
   0x5   : > { %s1029_s28 = sshll.u32 (!%p261_p2), %s1024_s25, 3 }
   0x6   : > { %264 = sbr.rel (%p261_p2) target bundleno = 281 (0x119), region = 48  ;;  %p304_p3 = scmp.lt.s32.totalorder (!%p261_p2), %s1029_s28, 15 }
   0xb   : > { %v1118_v0 = vld [vmem:[%s1432_s4 + $0x34] ss:$8 sps:$4 sm:$0xff]   ;;  %v1120_v1 = vld [vmem:[%s1432_s4 + $0x30] ss:$8 sps:$4 sm:$0xff]   ;;  %v1164_v2 = vmov 0   ;;  %s1439_s28 = smov (!%p304_p3, %s1029_s28), 15  ;;  %v797_v39 = vlaneseq }
   0xc   : > { %466 = vmatprep.mubr.bf16.mxu0 %v1164_v2  ;;  %486 = vmatprep.mubr.bf16.mxu1 %v1164_v2  ;;  %v1121_v3 = vld [vmem:[%s1432_s4 + $0x24] ss:$8 sps:$4 sm:$0xff]   ;;  %v1123_v4 = vld [vmem:[%s1432_s4 + $0x20] ss:$8 sps:$4 sm:$0xff]   ;;  %v1124_v5 = vld [vmem:[%s1432_s4 + $0x14] ss:$8 sps:$4 sm:$0xff]  }
   0xd   : > { %442 = vmatprep.subr.bf16.mxu0 %v1118_v0  ;;  %1101 = vmatprep.subr.bf16.mxu1 %v1118_v0  ;;  %s1030_s14 = sshll.u32 %s1439_s28, 2  ;;  %v1126_v6 = vld [vmem:[%s1432_s4 + $0x10] ss:$8 sps:$4 sm:$0xff]   ;;  %v1127_v7 = vld [vmem:[%s1432_s4 + $0x4] ss:$8 sps:$4 sm:$0xff]   ;;  %vm699_vm0 = vcmask 1043456  }
   0xe   : > { %443 = vmatpush1.bf16.msra.mxu0 %v1120_v1  ;;  %1105 = vmatpush1.bf16.msra.mxu1 %v1120_v1  ;;  %s1239_s19 = scalar_lea.vmem %s1429_s1, %s1030_s14  ;;  %v660_v8 = vld [vmem:[%s1433_s5] sm:$0xff]  ;;  %v1134_v11 = vld [vmem:[%s1431_s3 + $0x34] ss:$8 sps:$4 sm:$0xff]   ;;  %v1132_v14 = vld [vmem:[%s1431_s3 + $0x30] ss:$8 sps:$4 sm:$0xff]   ;;  %s1260_s11 = scalar_lea.vmem %s1428_s0, %s1030_s14  ;;  %vm421_vm1 = vcmask 523264  }
   0xf   : > { %444 = vmatprep.subr.bf16.mxu0 %v1121_v3  ;;  %1102 = vmatprep.subr.bf16.mxu1 %v1121_v3  ;;  %v1129_v9 = vld [vmem:[%s1432_s4] ss:$8 sps:$4 sm:$0xff]   ;;  %v1074_v10 = vcombine.low %v660_v8, %v660_v8  ;;  %v1075_v12 = vcombine.high %v660_v8, %v660_v8  ;;  %v1131_v15 = vld [vmem:[%s1239_s19 + $0x10] sm:$0xff]   ;;  %s1266_s15 = scalar_lea.vmem %s1430_s2, %s1030_s14  ;;  %v1139_v17 = vld [vmem:[%s1431_s3 + $0x24] ss:$8 sps:$4 sm:$0xff]   ;;  %vm686_vm2 = vcmask 64512  }
  0x10   : > { %v1130_v13 = vld [vmem:[%s1239_s19] sm:$0xff]   ;;  %v1144_v19 = vld [vmem:[%s1431_s3 + $0x14] ss:$8 sps:$4 sm:$0xff]   ;;  %v1140_v20 = vld [vmem:[%s1239_s19 + $0x8] sm:$0xff]   ;;  %v798_v44 = vshrl.u32 %v797_v39, 7  ;;  %vm932_vm3 = vcmask 23556  }
  0x11   : > { %v701_v16 = vsel %vm699_vm0, %v1074_v10, 0  ;;  %v1137_v18 = vld [vmem:[%s1431_s3 + $0x20] ss:$8 sps:$4 sm:$0xff]   ;;  %v1141_v21 = vld [vmem:[%s1239_s19 + $0x18] sm:$0xff]   ;;  %v1147_v23 = vld [vmem:[%s1431_s3 + $0x4] ss:$8 sps:$4 sm:$0xff]  }
  0x12   : > { %445 = vmatpush1.bf16.msra.mxu0 %v1123_v4  ;;  %1106 = vmatpush1.bf16.msra.mxu1 %v1123_v4  ;;  %v1142_v22 = vld [vmem:[%s1431_s3 + $0x10] ss:$8 sps:$4 sm:$0xff]   ;;  %v1145_v24 = vld [vmem:[%s1431_s3] ss:$8 sps:$4 sm:$0xff]   ;;  %v799_v49 = vsub.s32 0, %v798_v44  ;;  %v803_v53 = vsub.s32 1, %v798_v44  ;;  %vm1357_vm6 = vmor %vm932_vm3, %vm699_vm0 }
  0x13   : > { %446 = vmatprep.subr.bf16.mxu0 %v1124_v5  ;;  %1103 = vmatprep.subr.bf16.mxu1 %v1124_v5  ;;  %v1148_v25 = vld [vmem:[%s1260_s11] sm:$0xff]   ;;  %v1150_v27 = vld [vmem:[%s1260_s11 + $0x8] sm:$0xff]   ;;  %v1152_v29 = vld [vmem:[%s1260_s11 + $0x10] sm:$0xff]   ;;  %s1092_s10 = sshll.u32 %s1439_s28, 3 }
  0x14   : > { %v1149_v26 = vld [vmem:[%s1266_s15] sm:$0xff]   ;;  %v1151_v28 = vld [vmem:[%s1266_s15 + $0x8] sm:$0xff]   ;;  %v1153_v30 = vld [vmem:[%s1266_s15 + $0x10] sm:$0xff]   ;;  %s1364_s12 = scalar_lea.vmem %s1435_s7, %s1092_s10 }
  0x15   : > { %v1154_v31 = vld [vmem:[%s1260_s11 + $0x18] sm:$0xff]   ;;  %v795_v52 = vld [vmem:[%s1434_s6] ss:$2 sm:$0x3] }
  0x16   : > { %447 = vmatpush1.bf16.msra.mxu0 %v1126_v6  ;;  %1107 = vmatpush1.bf16.msra.mxu1 %v1126_v6  ;;  %v1155_v32 = vld [vmem:[%s1266_s15 + $0x18] sm:$0xff]   ;;  %v1081_v56 = vld [vmem:[%s1434_s6 + $0x1] ss:$2 sm:$0x3]  ;;  %v1342_v58 = vrot.slane %v795_v52, %v799_v49  ;;  %v1346_v0 = vrot.slane %v795_v52, %v803_v53 }
  0x17   : > { %448 = vmatprep.subr.bf16.mxu0 %v1127_v7  ;;  %1104 = vmatprep.subr.bf16.mxu1 %v1127_v7  ;;  %v1344_v62 = vrot.slane %v1081_v56, %v799_v49  ;;  %v1349_v5 = vrot.slane %v1081_v56, %v803_v53 }
  0x1a   : > { %449 = vmatpush1.bf16.msra.mxu0 %v1129_v9  ;;  %1108 = vmatpush1.bf16.msra.mxu1 %v1129_v9 }
  0x1b   : > { %587 = vmatprep.subr.bf16.mxu1 %v1134_v11  ;;  %1076 = vmatprep.subr.msk.bf16.mxu0 %vm699_vm0, %v1075_v12 }
  0x1d   : > { %1050 = vmatmul.mubr.msk.bf16.vlgmr.msra.gmra.mxu0 %vm421_vm1, %v1130_v13  ;;  %1052 = vmatmul.mubr.msk.bf16.vlgmr.msra.gmra.mxu1 %vm421_vm1, %v1131_v15 }
  0x1e   : > { %588 = vmatpush1.bf16.msra.mxu1 %v1132_v14  ;;  %721 = vmatpush1.bf16.msra.mxu0 %v701_v16 }
  0x1f   : > { %589 = vmatprep.subr.bf16.mxu1 %v1139_v17  ;;  %476 = vmatprep.mubr.bf16.mxu0 %v1164_v2 }
  0x20   : > { %496 = vmatprep.mubr.bf16.mxu1 %v1164_v2 }
  0x22   : > { %590 = vmatpush1.bf16.msra.mxu1 %v1137_v18 }
  0x23   : > { %591 = vmatprep.subr.bf16.mxu1 %v1144_v19 }
  0x25   : > { %1051 = vmatmul.mubr.msk.bf16.gmra.mxu0 %vm421_vm1, %v1140_v20  ;;  %1053 = vmatmul.mubr.msk.bf16.gmra.mxu1 %vm421_vm1, %v1141_v21 }
  0x26   : > { %592 = vmatpush1.bf16.msra.mxu1 %v1142_v22  ;;  %611 = vmatprep.mubr.bf16.mxu1 %v1164_v2 }
  0x27   : > { %593 = vmatprep.subr.bf16.mxu1 %v1147_v23  ;;  %738 = vmatprep.mubr.bf16.mxu0 %v1164_v2 }
  0x2a   : > { %594 = vmatpush1.bf16.msra.mxu1 %v1145_v24 }
  0x2d   : > { %1066 = vmatmul.mubr.msk.bf16.vlgmr.msra.gmra.mxu1 %vm421_vm1, %v1148_v25  ;;  %1077 = vmatmul.mubr.msk.bf16.vlgmr.msra.gmra.mxu0 %vm686_vm2, %v1149_v26 }
  0x2e   : > { %621 = vmatprep.mubr.bf16.mxu1 %v1164_v2  ;;  %748 = vmatprep.mubr.bf16.mxu0 %v1164_v2 }
  0x35   : > { %1067 = vmatmul.mubr.msk.bf16.gmra.mxu1 %vm421_vm1, %v1150_v27  ;;  %1078 = vmatmul.mubr.msk.bf16.gmra.mxu0 %vm686_vm2, %v1151_v28 }
  0x36   : > { %631 = vmatprep.mubr.bf16.mxu1 %v1164_v2  ;;  %758 = vmatprep.mubr.bf16.mxu0 %v1164_v2 }
  0x3d   : > { %1068 = vmatmul.mubr.msk.bf16.gmra.mxu1 %vm421_vm1, %v1152_v29  ;;  %1079 = vmatmul.mubr.msk.bf16.gmra.mxu0 %vm686_vm2, %v1153_v30 }
  0x3e   : > { %641 = vmatprep.mubr.bf16.mxu1 %v1164_v2  ;;  %768 = vmatprep.mubr.bf16.mxu0 %v1164_v2 }
  0x45   : > { %1069 = vmatmul.mubr.msk.bf16.gmra.mxu1 %vm421_vm1, %v1154_v31  ;;  %1080 = vmatmul.mubr.msk.bf16.gmra.mxu0 %vm686_vm2, %v1155_v32 }
  0xdd   : > { %v468_v33 = vpop.f32.mrf.mxu0  ;;  %v1320_v34 = vpop.f32.mrf.mxu1 }
  0xdf   : > { %v470_v35 = vpop.f32.mrf.mxu0  ;;  %v1322_v36 = vpop.f32.mrf.mxu1 }
  0xe1   : > { %v472_v37 = vpop.f32.mrf.mxu0  ;;  %v1324_v38 = vpop.f32.mrf.mxu1 }
  0xe3   : > { %v474_v40 = vpop.f32.mrf.mxu0  ;;  %v1326_v41 = vpop.f32.mrf.mxu1 }
  0xe5   : > { %v478_v42 = vpop.f32.mrf.mxu0  ;;  %v1328_v43 = vpop.f32.mrf.mxu1 }
  0xe7   : > { %v480_v45 = vpop.f32.mrf.mxu0  ;;  %v1330_v46 = vpop.f32.mrf.mxu1 }
  0xe9   : > { %v482_v47 = vpop.f32.mrf.mxu0  ;;  %v1332_v48 = vpop.f32.mrf.mxu1 }
  0xeb   : > { %v484_v50 = vpop.f32.mrf.mxu0  ;;  %v1334_v51 = vpop.f32.mrf.mxu1 }
  0xed   : > { %v613_v54 = vpop.f32.mrf.mxu1  ;;  %v740_v55 = vpop.f32.mrf.mxu0 }
  0xee   : > { %v614_v57 = vadd.f32 %v613_v54, %v468_v33 }
  0xef   : > { %v615_v59 = vpop.f32.mrf.mxu1  ;;  %v742_v60 = vpop.f32.mrf.mxu0 }
  0xf0   : > { %v779_v61 = vadd.f32 %v740_v55, %v614_v57  ;;  %v616_v63 = vadd.f32 %v615_v59, %v470_v35 }
  0xf1   : > { %v617_v1 = vpop.f32.mrf.mxu1  ;;  %v744_v2 = vpop.f32.mrf.mxu0 }
  0xf2   : > { %v807_v3 = vadd.f32 %v1342_v58, %v779_v61  ;;  %v780_v4 = vadd.f32 %v742_v60, %v616_v63  ;;  %v618_v6 = vadd.f32 %v617_v1, %v472_v37 }
  0xf3   : > { %v619_v7 = vpop.f32.mrf.mxu1  ;;  %v746_v8 = vpop.f32.mrf.mxu0 }
  0xf4   : > { %v852_v9 = vmul.f32 %v1344_v62, %v807_v3  ;;  %v808_v10 = vadd.f32 %v1346_v0, %v780_v4  ;;  %v781_v11 = vadd.f32 %v744_v2, %v618_v6  ;;  %vm823_vm4 = vcmp.gt.f32.partialorder %v807_v3, 0.0 }
  0xf5   : > { %v620_v12 = vadd.f32 %v619_v7, %v474_v40  ;;  %v623_v13 = vpop.f32.mrf.mxu1  ;;  %v750_v14 = vpop.f32.mrf.mxu0 }
  0xf6   : > { %vm824_vm5 = vcmp.gt.f32.partialorder %v808_v10, 0.0  ;;  %v853_v15 = vmul.f32 %v1349_v5, %v808_v10  ;;  %v809_v16 = vadd.f32 %v1342_v58, %v781_v11  ;;  %v624_v18 = vadd.f32 %v623_v13, %v478_v42 }
  0xf7   : > { %v782_v17 = vadd.f32 %v746_v8, %v620_v12  ;;  %v625_v19 = vpop.f32.mrf.mxu1  ;;  %v752_v20 = vpop.f32.mrf.mxu0  ;;  %v868_v22 = vsel %vm823_vm4, %v807_v3, %v852_v9 }
  0xf8   : > { %v869_v23 = vsel %vm824_vm5, %v808_v10, %v853_v15  ;;  %v626_v24 = vadd.f32 %v625_v19, %v480_v45  ;;  %v854_v26 = vmul.f32 %v1344_v62, %v809_v16  ;;  %v783_v28 = vadd.f32 %v750_v14, %v624_v18 }
  0xf9   : > { %v1093_v25 = vpack.c.bf16 %v869_v23, %v868_v22  ;;  %v810_v27 = vadd.f32 %v1346_v0, %v782_v17  ;;  %v627_v29 = vpop.f32.mrf.mxu1  ;;  %v754_v30 = vpop.f32.mrf.mxu0  ;;  %vm825_vm7 = vcmp.gt.f32.partialorder %v809_v16, 0.0 }
  0xfa   : > { %v784_v31 = vadd.f32 %v752_v20, %v626_v24  ;;  %v628_v32 = vadd.f32 %v627_v29, %v482_v47  ;;  %v811_v35 = vadd.f32 %v1342_v58, %v783_v28  ;;  %v870_v45 = vsel %vm825_vm7, %v809_v16, %v854_v26 }
  0xfb   : > { %934 = vst.msk [vmem:[%s1364_s12] sm:$0xff] %vm1357_vm6, %v1093_v25  ;;  %vm826_vm8 = vcmp.gt.f32.partialorder %v810_v27, 0.0  ;;  %v855_v33 = vmul.f32 %v1349_v5, %v810_v27  ;;  %v629_v37 = vpop.f32.mrf.mxu1  ;;  %v756_v39 = vpop.f32.mrf.mxu0 }
  0xfc   : > { %v812_v40 = vadd.f32 %v1346_v0, %v784_v31  ;;  %v785_v42 = vadd.f32 %v754_v30, %v628_v32  ;;  %v630_v44 = vadd.f32 %v629_v37, %v484_v50  ;;  %vm827_vm9 = vcmp.gt.f32.partialorder %v811_v35, 0.0 }
  0xfd   : > { %v871_v49 = vsel %vm826_vm8, %v810_v27, %v855_v33  ;;  %v856_v47 = vmul.f32 %v1344_v62, %v811_v35  ;;  %v633_v52 = vpop.f32.mrf.mxu1  ;;  %v760_v53 = vpop.f32.mrf.mxu0 }
  0xfe   : > { %v1094_v54 = vpack.c.bf16 %v871_v49, %v870_v45  ;;  %vm828_vm10 = vcmp.gt.f32.partialorder %v812_v40, 0.0  ;;  %v857_v55 = vmul.f32 %v1349_v5, %v812_v40  ;;  %v813_v56 = vadd.f32 %v1342_v58, %v785_v42 }
  0xff   : > { %v786_v57 = vadd.f32 %v756_v39, %v630_v44  ;;  %v634_v59 = vadd.f32 %v633_v52, %v1320_v34  ;;  %v635_v60 = vpop.f32.mrf.mxu1  ;;  %v762_v61 = vpop.f32.mrf.mxu0  ;;  %v872_v50 = vsel %vm827_vm9, %v811_v35, %v856_v47 }
 0x100   : > { %935 = vst.msk [vmem:[%s1364_s12 + $0x8] sm:$0xff] %vm1357_vm6, %v1094_v54  ;;  %v873_v63 = vsel %vm828_vm10, %v812_v40, %v857_v55  ;;  %v636_v1 = vadd.f32 %v635_v60, %v1322_v36  ;;  %v858_v3 = vmul.f32 %v1344_v62, %v813_v56  ;;  %vm829_vm11 = vcmp.gt.f32.partialorder %v813_v56, 0.0 }
 0x101   : > { %v1095_v2 = vpack.c.bf16 %v873_v63, %v872_v50  ;;  %v814_v4 = vadd.f32 %v1346_v0, %v786_v57  ;;  %v787_v6 = vadd.f32 %v760_v53, %v634_v59  ;;  %v637_v7 = vpop.f32.mrf.mxu1  ;;  %v764_v8 = vpop.f32.mrf.mxu0 }
 0x102   : > { %v788_v34 = vadd.f32 %v762_v61, %v636_v1  ;;  %v638_v9 = vadd.f32 %v637_v7, %v1324_v38  ;;  %v874_v16 = vsel %vm829_vm11, %v813_v56, %v858_v3 }
 0x103   : > { %936 = vst.msk [vmem:[%s1364_s12 + $0x10] sm:$0xff] %vm1357_vm6, %v1095_v2  ;;  %vm830_vm12 = vcmp.gt.f32.partialorder %v814_v4, 0.0  ;;  %v859_v10 = vmul.f32 %v1349_v5, %v814_v4  ;;  %v815_v36 = vadd.f32 %v1342_v58, %v787_v6  ;;  %v639_v11 = vpop.f32.mrf.mxu1  ;;  %v766_v12 = vpop.f32.mrf.mxu0 }
 0x104   : > { %v816_v13 = vadd.f32 %v1346_v0, %v788_v34  ;;  %v789_v14 = vadd.f32 %v764_v8, %v638_v9  ;;  %v640_v15 = vadd.f32 %v639_v11, %v1326_v41 }
 0x105   : > { %v875_v17 = vsel %vm830_vm12, %v814_v4, %v859_v10  ;;  %vm831_vm13 = vcmp.gt.f32.partialorder %v815_v36, 0.0  ;;  %v860_v38 = vmul.f32 %v1344_v62, %v815_v36  ;;  %v643_v18 = vpop.f32.mrf.mxu1  ;;  %v770_v19 = vpop.f32.mrf.mxu0 }
 0x106   : > { %v1096_v20 = vpack.c.bf16 %v875_v17, %v874_v16  ;;  %vm832_vm14 = vcmp.gt.f32.partialorder %v816_v13, 0.0  ;;  %v861_v22 = vmul.f32 %v1349_v5, %v816_v13  ;;  %v817_v23 = vadd.f32 %v1342_v58, %v789_v14 }
 0x107   : > { %v790_v24 = vadd.f32 %v766_v12, %v640_v15  ;;  %v644_v25 = vadd.f32 %v643_v18, %v1328_v43  ;;  %v645_v26 = vpop.f32.mrf.mxu1  ;;  %v772_v27 = vpop.f32.mrf.mxu0  ;;  %v876_v41 = vsel %vm831_vm13, %v815_v36, %v860_v38 }
 0x108   : > { %937 = vst.msk [vmem:[%s1364_s12 + $0x18] sm:$0xff] %vm1357_vm6, %v1096_v20  ;;  %v877_v28 = vsel %vm832_vm14, %v816_v13, %v861_v22  ;;  %v646_v29 = vadd.f32 %v645_v26, %v1330_v46  ;;  %v862_v31 = vmul.f32 %v1344_v62, %v817_v23  ;;  %vm833_vm15 = vcmp.gt.f32.partialorder %v817_v23, 0.0 }
 0x109   : > { %v1097_v30 = vpack.c.bf16 %v877_v28, %v876_v41  ;;  %v818_v32 = vadd.f32 %v1346_v0, %v790_v24  ;;  %v791_v33 = vadd.f32 %v770_v19, %v644_v25  ;;  %v647_v35 = vpop.f32.mrf.mxu1  ;;  %v774_v39 = vpop.f32.mrf.mxu0 }
 0x10a   : > { %v792_v37 = vadd.f32 %v772_v27, %v646_v29  ;;  %v648_v43 = vadd.f32 %v647_v35, %v1332_v48  ;;  %v878_v47 = vsel %vm833_vm15, %v817_v23, %v862_v31 }
 0x10b   : > { %938 = vst.msk [vmem:[%s1364_s12 + $0x20] sm:$0xff] %vm1357_vm6, %v1097_v30  ;;  %vm834_vm0 = vcmp.gt.f32.partialorder %v818_v32, 0.0  ;;  %v863_v40 = vmul.f32 %v1349_v5, %v818_v32  ;;  %v819_v46 = vadd.f32 %v1342_v58, %v791_v33  ;;  %v649_v42 = vpop.f32.mrf.mxu1  ;;  %v776_v56 = vpop.f32.mrf.mxu0 }
 0x10c   : > { %v820_v44 = vadd.f32 %v1346_v0, %v792_v37  ;;  %v793_v45 = vadd.f32 %v774_v39, %v648_v43  ;;  %v650_v49 = vadd.f32 %v649_v42, %v1334_v51 }
 0x10d   : > { %v879_v52 = vsel %vm834_vm0, %v818_v32, %v863_v40  ;;  %vm835_vm1 = vcmp.gt.f32.partialorder %v819_v46, 0.0  ;;  %v864_v48 = vmul.f32 %v1344_v62, %v819_v46 }
 0x10e   : > { %v1098_v53 = vpack.c.bf16 %v879_v52, %v878_v47  ;;  %vm836_vm2 = vcmp.gt.f32.partialorder %v820_v44, 0.0  ;;  %v865_v54 = vmul.f32 %v1349_v5, %v820_v44  ;;  %v821_v55 = vadd.f32 %v1342_v58, %v793_v45 }
 0x10f   : > { %v794_v57 = vadd.f32 %v776_v56, %v650_v49  ;;  %v880_v59 = vsel %vm835_vm1, %v819_v46, %v864_v48 }
 0x110   : > { %939 = vst.msk [vmem:[%s1364_s12 + $0x28] sm:$0xff] %vm1357_vm6, %v1098_v53  ;;  %v881_v51 = vsel %vm836_vm2, %v820_v44, %v865_v54  ;;  %v866_v61 = vmul.f32 %v1344_v62, %v821_v55  ;;  %vm837_vm3 = vcmp.gt.f32.partialorder %v821_v55, 0.0 }
 0x111   : > { %v1099_v60 = vpack.c.bf16 %v881_v51, %v880_v59  ;;  %v822_v50 = vadd.f32 %v1346_v0, %v794_v57 }
 0x112   : > { %v882_v63 = vsel %vm837_vm3, %v821_v55, %v866_v61 }
 0x113   : > { %940 = vst.msk [vmem:[%s1364_s12 + $0x30] sm:$0xff] %vm1357_vm6, %v1099_v60  ;;  %vm838_vm4 = vcmp.gt.f32.partialorder %v822_v50, 0.0  ;;  %v867_v58 = vmul.f32 %v1349_v5, %v822_v50 }
 0x115   : > { %v883_v1 = vsel %vm838_vm4, %v822_v50, %v867_v58 }
 0x116   : > { %v1100_v2 = vpack.c.bf16 %v883_v1, %v882_v63 }
 0x118   : > { %941 = vst.msk [vmem:[%s1364_s12 + $0x38] sm:$0xff] %vm1357_vm6, %v1100_v2 }
 0x119 PF: > { %s17_s24 = sadd.s32 1, %s1162_s24  }
 0x11a   : > { %p14_p4 = scmp.ge.s32.totalorder %s17_s24, 4  }
 0x11c   :  { %16 = sbr.rel (!%p14_p4) target bundleno = 1 (0x1), region = 85 }

// kernel: _lambda_.41
= control target key start
LH: loop header
LB: loop body
LE: loop exit
PB: predicated region body
PF: predicated region fallthrough
CT: control target
= control target key end

     0   :  { %s475_s12 = smov 0   ;;  %s525_s0 = inlined_call_operand.vmem [shape: bf16[32,128], index: 0, kind: input, shape index: {}]   ;;  %s526_s1 = inlined_call_operand.vmem [shape: bf16[128,25], index: 1, kind: input, shape index: {}]   ;;  %s527_s2 = inlined_call_operand.vmem [shape: f32[2,25], index: 2, kind: input, shape index: {}]   ;;  %s528_s3 = inlined_call_operand.vmem [shape: bf16[32,25], index: 3, kind: output, shape index: {}]  }
   0x1 LB: > { %s371_s13 = sadd.s32 4294967295, %s451_s12   ;;  %p375_p0 = scmp.ge.s32.totalorder %s451_s12, 1  ;;  %s451_s12 = sphi %s475_s12, %s13_s12  }
   0x2   : > { %p138_p1 = scmp.lt.s32.totalorder %s451_s12, 3 }
   0x4   : > { %p139_p2 = pnand %p375_p0, %p138_p1 }
   0x5   : > { %s376_s18 = sshll.u32 (!%p139_p2), %s371_s13, 1 }
   0x6   : > { %142 = sbr.rel (%p139_p2) target bundleno = 249 (0xf9), region = 32  ;;  %p163_p3 = scmp.lt.s32.totalorder (!%p139_p2), %s376_s18, 3 }
   0xb   : > { %v436_v0 = vld [vmem:[%s526_s1 + $0x38] sm:$0xff]   ;;  %v453_v1 = vmov 0.0   ;;  %v437_v2 = vld [vmem:[%s526_s1 + $0x30] sm:$0xff]   ;;  %vm454_vm0 = vmmov 0   ;;  %s530_s18 = smov (!%p163_p3, %s376_s18), 3  ;;  %v438_v3 = vld [vmem:[%s526_s1 + $0x28] sm:$0xff]  }
   0xc   : > { %406 = vmatprep.subr.bf16.mxu0 %v453_v1  ;;  %422 = vmatprep.mubr.msk.bf16.mxu0 %vm454_vm0, %v453_v1  ;;  %s377_s21 = sshll.u32 %s530_s18, 2  ;;  %v439_v4 = vld [vmem:[%s526_s1 + $0x20] sm:$0xff]   ;;  %v440_v5 = vld [vmem:[%s526_s1 + $0x18] sm:$0xff]   ;;  %v441_v6 = vld [vmem:[%s526_s1 + $0x10] sm:$0xff]   ;;  %vm312_vm2 = vcmask 199680  }
   0xd   : > { %407 = vmatpush3.bf16.msra.mxu0 %v436_v0  ;;  %s166_s24 = scalar_lea.vmem %s525_s0, %s377_s21  ;;  %v442_v7 = vld [vmem:[%s526_s1 + $0x8] sm:$0xff]   ;;  %v443_v8 = vld [vmem:[%s526_s1] sm:$0xff]   ;;  %s172_s15 = scalar_lea.vmem %s528_s3, %s377_s21 }
   0xe   : > { %408 = vmatprep.subr.bf16.mxu0 %v453_v1  ;;  %v444_v9 = vld [vmem:[%s166_s24] sm:$0xff]  }
   0xf   : > { %v380_v10 = vld [vmem:[%s527_s2] ss:$0 sm:$0xff]  ;;  %v390_v12 = vld [vmem:[%s527_s2 + $0x1] ss:$0 sm:$0xff] }
  0x11   : > { %409 = vmatpush3.bf16.msra.mxu0 %v437_v2 }
  0x12   : > { %410 = vmatprep.subr.bf16.mxu0 %v453_v1 }
  0x15   : > { %411 = vmatpush3.bf16.msra.mxu0 %v438_v3 }
  0x16   : > { %412 = vmatprep.subr.bf16.mxu0 %v453_v1 }
  0x19   : > { %413 = vmatpush3.bf16.msra.mxu0 %v439_v4 }
  0x1a   : > { %414 = vmatprep.subr.bf16.mxu0 %v453_v1 }
  0x1d   : > { %415 = vmatpush3.bf16.msra.mxu0 %v440_v5 }
  0x1e   : > { %416 = vmatprep.subr.bf16.mxu0 %v453_v1 }
  0x21   : > { %417 = vmatpush3.bf16.msra.mxu0 %v441_v6 }
  0x22   : > { %418 = vmatprep.subr.bf16.mxu0 %v453_v1 }
  0x25   : > { %419 = vmatpush3.bf16.msra.mxu0 %v442_v7 }
  0x26   : > { %420 = vmatprep.subr.bf16.mxu0 %v453_v1 }
  0x29   : > { %421 = vmatpush3.bf16.msra.mxu0 %v443_v8 }
  0x2c   : > { %423 = vmatmul.mubr.bf16.vlgmr.msra.gmra.mxu0 %v444_v9 }
  0xec   : > { %v286_v11 = vpop.f32.mrf.mxu0 }
  0xed   : > { %v287_v13 = vadd.f32 %v380_v10, %v286_v11 }
  0xee   : > { %v424_v14 = vpop.f32.mrf.mxu0 }
  0xef   : > { %vm293_vm1 = vcmp.gt.f32.partialorder %v287_v13, 0.0  ;;  %v300_v15 = vmul.f32 %v390_v12, %v287_v13 }
  0xf0   : > { %v289_v16 = vpop.f32.mrf.mxu0 }
  0xf1   : > { %v302_v17 = vsel %vm293_vm1, %v287_v13, %v300_v15  ;;  %v290_v18 = vadd.f32 %v380_v10, %v289_v16 }
  0xf2   : > { %v395_v19 = vpack.c.bf16 %v302_v17, %v302_v17  ;;  %v425_v20 = vpop.f32.mrf.mxu0 }
  0xf3   : > { %vm294_vm3 = vcmp.gt.f32.partialorder %v290_v18, 0.0  ;;  %v301_v21 = vmul.f32 %v390_v12, %v290_v18 }
  0xf4   : > { %313 = vst.msk [vmem:[%s172_s15] sm:$0xf] %vm312_vm2, %v395_v19 }
  0xf5   : > { %v303_v22 = vsel %vm294_vm3, %v290_v18, %v301_v21 }
  0xf6   : > { %v396_v23 = vpack.c.bf16 %v303_v22, %v303_v22 }
  0xf8   : > { %314 = vst.msk [vmem:[%s172_s15 + $0x4] sm:$0xf] %vm312_vm2, %v396_v23 }
  0xf9 PF: > { %s13_s12 = sadd.s32 1, %s451_s12  }
  0xfa   : > { %p10_p4 = scmp.ge.s32.totalorder %s13_s12, 4  }
  0xfc   :  { %12 = sbr.rel (!%p10_p4) target bundleno = 1 (0x1), region = 62 }

// kernel: _lambda_.39
= control target key start
LH: loop header
LB: loop body
LE: loop exit
PB: predicated region body
PF: predicated region fallthrough
CT: control target
= control target key end

     0   :  { %s1447_s12 = smov 0   ;;  %s1718_s0 = inlined_call_operand.vmem [shape: bf16[32,1179], index: 0, kind: input, shape index: {}]   ;;  %s1719_s1 = inlined_call_operand.vmem [shape: bf16[1179,25], index: 1, kind: input, shape index: {}]   ;;  %s1720_s2 = inlined_call_operand.vmem [shape: f32[2,25], index: 2, kind: input, shape index: {}]   ;;  %s1721_s3 = inlined_call_operand.vmem [shape: bf16[32,25], index: 3, kind: output, shape index: {}]  }
   0x1 LB: > { %s1127_s13 = sadd.s32 4294967295, %s1423_s12   ;;  %p1131_p0 = scmp.ge.s32.totalorder %s1423_s12, 1  ;;  %s1423_s12 = sphi %s1447_s12, %s13_s12  }
   0x2   : > { %p139_p1 = scmp.lt.s32.totalorder %s1423_s12, 3 }
   0x4   : > { %p140_p2 = pnand %p1131_p0, %p139_p1 }
   0x5   : > { %s1132_s22 = sshll.u32 (!%p140_p2), %s1127_s13, 1 }
   0x6   : > { %143 = sbr.rel (%p140_p2) target bundleno = 319 (0x13f), region = 32  ;;  %p165_p3 = scmp.lt.s32.totalorder (!%p140_p2), %s1132_s22, 3 }
   0xb   : > { %v1328_v0 = vld [vmem:[%s1719_s1 + $0x78] sm:$0xff]   ;;  %v1330_v2 = vld [vmem:[%s1719_s1 + $0x70] sm:$0xff]   ;;  %v1332_v4 = vld [vmem:[%s1719_s1 + $0x68] sm:$0xff]   ;;  %s1723_s22 = smov (!%p165_p3, %s1132_s22), 3  ;;  %v1425_v47 = vmov 0   ;;  %vm837_vm0 = vcmask 1044480  }
   0xc   : > { %v1329_v1 = vld [vmem:[%s1719_s1 + $0x38] sm:$0xff]   ;;  %1229 = vmatprep.subr.bf16.mxu1 %v1328_v0  ;;  %v1331_v3 = vld [vmem:[%s1719_s1 + $0x30] sm:$0xff]   ;;  %v1333_v5 = vld [vmem:[%s1719_s1 + $0x28] sm:$0xff]   ;;  %s1317_s10 = smul.u32 40, %s1723_s22  ;;  %vm838_vm1 = vcmask 1045504   ;;  %vm833_vm2 = vcmask 220160  }
   0xd   : > { %1230 = vmatpush3.bf16.msra.mxu1 %v1329_v1  ;;  %v1334_v6 = vld [vmem:[%s1719_s1 + $0x60] sm:$0xff]   ;;  %v1336_v8 = vld [vmem:[%s1719_s1 + $0x58] sm:$0xff]   ;;  %v1338_v12 = vld [vmem:[%s1719_s1 + $0x50] sm:$0xff]   ;;  %s1135_s25 = sshll.u32 %s1723_s22, 2  ;;  %vm1068_vm4 = vcmask 199680  }
   0xe   : > { %1231 = vmatprep.subr.bf16.mxu1 %v1330_v2  ;;  %v1335_v7 = vld [vmem:[%s1719_s1 + $0x20] sm:$0xff]   ;;  %v1341_v9 = vld [vmem:[%s1719_s1 + $0x178] sm:$0xff]   ;;  %v1345_v13 = vld [vmem:[%s1719_s1 + $0x170] sm:$0xff]   ;;  %s1506_s23 = scalar_lea.vmem %s1718_s0, %s1317_s10  ;;  %s175_s28 = scalar_lea.vmem %s1721_s3, %s1135_s25 }
   0xf   : > { %v1337_v10 = vld [vmem:[%s1719_s1 + $0x18] sm:$0xff]   ;;  %1273 = vmatprep.subr.bf16.mxu0 %v1341_v9  ;;  %v1339_v14 = vld [vmem:[%s1719_s1 + $0x10] sm:$0xff]   ;;  %v1340_v16 = vld [vmem:[%s1719_s1 + $0x48] sm:$0xff]  }
  0x10   : > { %v1343_v11 = vld [vmem:[%s1719_s1 + $0x138] sm:$0xff]   ;;  %v1347_v15 = vld [vmem:[%s1719_s1 + $0x130] sm:$0xff]   ;;  %v1350_v17 = vld [vmem:[%s1506_s23 + $0x4] ss:$40 sps:$4 sm:$0xff]  }
  0x11   : > { %1232 = vmatpush3.bf16.msra.mxu1 %v1331_v3  ;;  %1274 = vmatpush3.bf16.msra.mxu0 %v1343_v11  ;;  %v1342_v18 = vld [vmem:[%s1719_s1 + $0x8] sm:$0xff]   ;;  %v1344_v20 = vld [vmem:[%s1719_s1 + $0x40] sm:$0xff]   ;;  %v1351_v25 = vld [vmem:[%s1719_s1 + $0xf8] sm:$0xff]  }
  0x12   : > { %1233 = vmatprep.subr.bf16.mxu1 %v1332_v4  ;;  %1275 = vmatprep.subr.bf16.mxu0 %v1345_v13  ;;  %v1352_v19 = vld [vmem:[%s1719_s1 + $0x168] sm:$0xff]   ;;  %v1346_v22 = vld [vmem:[%s1719_s1] sm:$0xff]   ;;  %v1353_v27 = vld [vmem:[%s1719_s1 + $0xb8] sm:$0xff]  }
  0x13   : > { %876 = vmatprep.mubr.bf16.mxu1 %v1350_v17  ;;  %v1354_v21 = vld [vmem:[%s1719_s1 + $0x128] sm:$0xff]   ;;  %v1356_v23 = vld [vmem:[%s1719_s1 + $0x160] sm:$0xff]   ;;  %v1360_v28 = vld [vmem:[%s1719_s1 + $0x158] sm:$0xff]  }
  0x14   : > { %v1348_v24 = vld [vmem:[%s1506_s23] ss:$40 sps:$4 sm:$0xff]   ;;  %v1355_v29 = vld [vmem:[%s1719_s1 + $0xf0] sm:$0xff]   ;;  %v1362_v30 = vld [vmem:[%s1719_s1 + $0x118] sm:$0xff]  }
  0x15   : > { %1234 = vmatpush3.bf16.msra.mxu1 %v1333_v5  ;;  %1276 = vmatpush3.bf16.msra.mxu0 %v1347_v15  ;;  %v1358_v26 = vld [vmem:[%s1719_s1 + $0x120] sm:$0xff]   ;;  %v1357_v31 = vld [vmem:[%s1719_s1 + $0xb0] sm:$0xff]   ;;  %v1359_v33 = vld [vmem:[%s1719_s1 + $0xe8] sm:$0xff]  }
  0x16   : > { %1235 = vmatprep.subr.bf16.mxu1 %v1334_v6  ;;  %1277 = vmatprep.subr.bf16.mxu0 %v1352_v19  ;;  %v1364_v32 = vld [vmem:[%s1719_s1 + $0x150] sm:$0xff]   ;;  %v1361_v35 = vld [vmem:[%s1719_s1 + $0xa8] sm:$0xff]   ;;  %v1363_v37 = vld [vmem:[%s1719_s1 + $0xe0] sm:$0xff]   ;;  %v1426_v6 = vmov 65535  }
  0x17   : > { %v1366_v34 = vld [vmem:[%s1719_s1 + $0x110] sm:$0xff]   ;;  %v1368_v36 = vld [vmem:[%s1719_s1 + $0x148] sm:$0xff]   ;;  %v1365_v39 = vld [vmem:[%s1719_s1 + $0xa0] sm:$0xff]  }
  0x18   : > { %v1370_v38 = vld [vmem:[%s1719_s1 + $0x108] sm:$0xff]   ;;  %v1372_v40 = vld [vmem:[%s1719_s1 + $0x140] sm:$0xff]   ;;  %v1367_v41 = vld [vmem:[%s1719_s1 + $0xd8] sm:$0xff]  }
  0x19   : > { %1236 = vmatpush3.bf16.msra.mxu1 %v1335_v7  ;;  %1278 = vmatpush3.bf16.msra.mxu0 %v1354_v21  ;;  %v1374_v42 = vld [vmem:[%s1719_s1 + $0x100] sm:$0xff]   ;;  %v1369_v43 = vld [vmem:[%s1719_s1 + $0x98] sm:$0xff]   ;;  %v1371_v46 = vld [vmem:[%s1719_s1 + $0xd0] sm:$0xff]   ;;  %v839_v7 = vsel %vm837_vm0, 4294967295, %v1426_v6 }
  0x1a   : > { %1237 = vmatprep.subr.bf16.mxu1 %v1336_v8  ;;  %1279 = vmatprep.subr.bf16.mxu0 %v1356_v23  ;;  %v1376_v44 = vld [vmem:[%s1506_s23 + $0x10] ss:$40 sps:$4 sm:$0xff]   ;;  %v1378_v45 = vld [vmem:[%s1506_s23 + $0x14] ss:$40 sps:$4 sm:$0xff]   ;;  %v1375_v50 = vld [vmem:[%s1719_s1 + $0xc8] sm:$0xff]   ;;  %v840_v11 = vsel %vm838_vm1, %v839_v7, 0 }
  0x1b   : > { %958 = vmatprep.mubr.bf16.mxu0 %v1378_v45  ;;  %v1380_v48 = vld [vmem:[%s1719_s1 + $0x238] sm:$0xff]   ;;  %v1373_v49 = vld [vmem:[%s1719_s1 + $0x90] sm:$0xff]   ;;  %v1379_v53 = vld [vmem:[%s1719_s1 + $0x88] sm:$0xff]  }
  0x1c   : > { %v1383_v51 = vld [vmem:[%s1719_s1 + $0x230] sm:$0xff]   ;;  %v1381_v54 = vld [vmem:[%s1719_s1 + $0xc0] sm:$0xff]   ;;  %v1389_v55 = vld [vmem:[%s1719_s1 + $0x228] sm:$0xff]  }
  0x1d   : > { %1238 = vmatpush3.bf16.msra.mxu1 %v1337_v10  ;;  %1280 = vmatpush3.bf16.msra.mxu0 %v1358_v26  ;;  %v1386_v52 = vld [vmem:[%s1506_s23 + $0xc] ss:$40 sps:$4 sm:$0xff]   ;;  %v1382_v56 = vld [vmem:[%s1719_s1 + $0x80] sm:$0xff]   ;;  %v1387_v58 = vld [vmem:[%s1719_s1 + $0x1f8] sm:$0xff]  }
  0x1e   : > { %1239 = vmatprep.subr.bf16.mxu1 %v1338_v12  ;;  %1281 = vmatprep.subr.bf16.mxu0 %v1360_v28  ;;  %v1392_v57 = vld [vmem:[%s1719_s1 + $0x220] sm:$0xff]   ;;  %v1384_v59 = vld [vmem:[%s1506_s23 + $0x8] ss:$40 sps:$4 sm:$0xff]   ;;  %v1388_v60 = vld [vmem:[%s1719_s1 + $0x1b8] sm:$0xff]  }
  0x1f   : > { %v1395_v61 = vld [vmem:[%s1719_s1 + $0x218] sm:$0xff]   ;;  %v1390_v62 = vld [vmem:[%s1719_s1 + $0x1f0] sm:$0xff]   ;;  %v1393_v1 = vld [vmem:[%s1719_s1 + $0x1e8] sm:$0xff]  }
  0x20   : > { %v1391_v63 = vld [vmem:[%s1719_s1 + $0x1b0] sm:$0xff]   ;;  %v1394_v2 = vld [vmem:[%s1719_s1 + $0x1a8] sm:$0xff]   ;;  %v1396_v4 = vld [vmem:[%s1719_s1 + $0x1e0] sm:$0xff]  }
  0x21   : > { %1240 = vmatpush3.bf16.msra.mxu1 %v1339_v14  ;;  %1282 = vmatpush3.bf16.msra.mxu0 %v1362_v30  ;;  %v1398_v0 = vld [vmem:[%s1719_s1 + $0x210] sm:$0xff]   ;;  %v1401_v3 = vld [vmem:[%s1719_s1 + $0x208] sm:$0xff]   ;;  %v1397_v5 = vld [vmem:[%s1719_s1 + $0x1a0] sm:$0xff]  }
  0x22   : > { %1241 = vmatprep.subr.bf16.mxu1 %v1340_v16  ;;  %1283 = vmatprep.subr.bf16.mxu0 %v1364_v32  ;;  %v1404_v8 = vld [vmem:[%s1719_s1 + $0x200] sm:$0xff]   ;;  %v1407_v9 = vld [vmem:[%s1719_s1 + $0x248] sm:$0x3f]   ;;  %v1399_v10 = vld [vmem:[%s1719_s1 + $0x1d8] sm:$0xff]  }
  0x23   : > { %v1400_v12 = vld [vmem:[%s1719_s1 + $0x198] sm:$0xff]   ;;  %v842_v13 = vand.u32 %v1407_v9, %v840_v11  ;;  %v1402_v15 = vld [vmem:[%s1719_s1 + $0x1d0] sm:$0xff]   ;;  %v1414_v16 = vld [vmem:[%s1506_s23 + $0x24] ss:$40 sps:$4 sm:$0xff]  }
  0x24   : > { %v1413_v14 = vld [vmem:[%s1506_s23 + $0x1c] ss:$40 sps:$4 sm:$0xff]   ;;  %v1403_v17 = vld [vmem:[%s1719_s1 + $0x190] sm:$0xff]   ;;  %v1405_v19 = vld [vmem:[%s1719_s1 + $0x1c8] sm:$0xff]  }
  0x25   : > { %1242 = vmatpush3.bf16.msra.mxu1 %v1342_v18  ;;  %1284 = vmatpush3.bf16.msra.mxu0 %v1366_v34  ;;  %v1410_v18 = vld [vmem:[%s1719_s1 + $0x240] sm:$0xff]   ;;  %v1406_v21 = vld [vmem:[%s1719_s1 + $0x188] sm:$0xff]  }
  0x26   : > { %1243 = vmatprep.subr.bf16.mxu1 %v1344_v20  ;;  %1285 = vmatprep.subr.bf16.mxu0 %v1368_v36  ;;  %v1416_v20 = vld [vmem:[%s1506_s23 + $0x20] ss:$40 sps:$4 sm:$0xff]  }
  0x27   : > { %v1409_v23 = vld [vmem:[%s1719_s1 + $0x180] sm:$0xff]  }
  0x29   : > { %1244 = vmatpush3.bf16.msra.mxu1 %v1346_v22  ;;  %1286 = vmatpush3.bf16.msra.mxu0 %v1370_v38  ;;  %v1408_v22 = vld [vmem:[%s1719_s1 + $0x1c0] sm:$0xff]  }
  0x2a   : > { %1251 = vmatprep.subr.bf16.mxu1 %v1351_v25  ;;  %1287 = vmatprep.subr.bf16.mxu0 %v1372_v40  ;;  %v1136_v38 = vld [vmem:[%s1720_s2] ss:$0 sm:$0xff] }
  0x2c   : > { %877 = vmatmul.mubr.bf16.vlgmr.msra.gmra.mxu1 %v1348_v24  ;;  %v1411_v24 = vld [vmem:[%s1506_s23 + $0x18] ss:$40 sps:$4 sm:$0xff]  }
  0x2d   : > { %1252 = vmatpush3.bf16.msra.mxu1 %v1353_v27  ;;  %1288 = vmatpush3.bf16.msra.mxu0 %v1374_v42 }
  0x2e   : > { %1253 = vmatprep.subr.bf16.mxu1 %v1355_v29  ;;  %1008 = vmatprep.subr.bf16.mxu0 %v1425_v47 }
  0x2f   : > { %917 = vmatprep.mubr.bf16.mxu1 %v1386_v52 }
  0x30   : > { %959 = vmatmul.mubr.bf16.vlgmr.msra.gmra.mxu0 %v1376_v44 }
  0x31   : > { %1254 = vmatpush3.bf16.msra.mxu1 %v1357_v31  ;;  %1009 = vmatpush1.bf16.msra.mxu0 %v1380_v48 }
  0x32   : > { %1255 = vmatprep.subr.bf16.mxu1 %v1359_v33  ;;  %1010 = vmatprep.subr.bf16.mxu0 %v1425_v47 }
  0x33   : > { %1221 = vmatprep.mubr.msk.bf16.mxu0 %vm833_vm2, %v1414_v16 }
  0x35   : > { %1256 = vmatpush3.bf16.msra.mxu1 %v1361_v35  ;;  %1011 = vmatpush1.bf16.msra.mxu0 %v1383_v51 }
  0x36   : > { %1257 = vmatprep.subr.bf16.mxu1 %v1363_v37  ;;  %1012 = vmatprep.subr.bf16.mxu0 %v1425_v47 }
  0x39   : > { %1258 = vmatpush3.bf16.msra.mxu1 %v1365_v39  ;;  %1013 = vmatpush1.bf16.msra.mxu0 %v1389_v55 }
  0x3a   : > { %1259 = vmatprep.subr.bf16.mxu1 %v1367_v41  ;;  %1014 = vmatprep.subr.bf16.mxu0 %v1425_v47 }
  0x3d   : > { %1260 = vmatpush3.bf16.msra.mxu1 %v1369_v43  ;;  %1015 = vmatpush1.bf16.msra.mxu0 %v1392_v57 }
  0x3e   : > { %1261 = vmatprep.subr.bf16.mxu1 %v1371_v46  ;;  %1016 = vmatprep.subr.bf16.mxu0 %v1425_v47 }
  0x41   : > { %1262 = vmatpush3.bf16.msra.mxu1 %v1373_v49  ;;  %1017 = vmatpush1.bf16.msra.mxu0 %v1395_v61 }
  0x42   : > { %1263 = vmatprep.subr.bf16.mxu1 %v1375_v50  ;;  %1018 = vmatprep.subr.bf16.mxu0 %v1425_v47 }
  0x45   : > { %1264 = vmatpush3.bf16.msra.mxu1 %v1379_v53  ;;  %1019 = vmatpush1.bf16.msra.mxu0 %v1398_v0 }
  0x46   : > { %1265 = vmatprep.subr.bf16.mxu1 %v1381_v54  ;;  %1020 = vmatprep.subr.bf16.mxu0 %v1425_v47 }
  0x49   : > { %1266 = vmatpush3.bf16.msra.mxu1 %v1382_v56  ;;  %1021 = vmatpush1.bf16.msra.mxu0 %v1401_v3 }
  0x4a   : > { %1295 = vmatprep.subr.bf16.mxu1 %v1387_v58  ;;  %1022 = vmatprep.subr.bf16.mxu0 %v1425_v47  ;;  %v1222_v58 = vld [vmem:[%s1720_s2 + $0x1] ss:$0 sm:$0xff] }
  0x4c   : > { %918 = vmatmul.mubr.bf16.vlgmr.msra.gmra.mxu1 %v1384_v59 }
  0x4d   : > { %1296 = vmatpush3.bf16.msra.mxu1 %v1388_v60  ;;  %1023 = vmatpush1.bf16.msra.mxu0 %v1404_v8 }
  0x4e   : > { %1297 = vmatprep.subr.bf16.mxu1 %v1390_v62  ;;  %1036 = vmatprep.subr.bf16.mxu0 %v1425_v47 }
  0x4f   : > { %999 = vmatprep.mubr.bf16.mxu1 %v1413_v14 }
  0x51   : > { %1298 = vmatpush3.bf16.msra.mxu1 %v1391_v63  ;;  %1037 = vmatpush2.bf16.msra.mxu0 %v842_v13 }
  0x52   : > { %1299 = vmatprep.subr.bf16.mxu1 %v1393_v1  ;;  %1038 = vmatprep.subr.bf16.mxu0 %v1425_v47 }
  0x55   : > { %1300 = vmatpush3.bf16.msra.mxu1 %v1394_v2  ;;  %1039 = vmatpush2.bf16.msra.mxu0 %v1410_v18 }
  0x56   : > { %1301 = vmatprep.subr.bf16.mxu1 %v1396_v4 }
  0x58   : > { %1041 = vmatmul.mubr.bf16.vlgmr.msra.gmra.mxu0 %v1416_v20 }
  0x59   : > { %1302 = vmatpush3.bf16.msra.mxu1 %v1397_v5 }
  0x5a   : > { %1303 = vmatprep.subr.bf16.mxu1 %v1399_v10 }
  0x5d   : > { %1304 = vmatpush3.bf16.msra.mxu1 %v1400_v12 }
  0x5e   : > { %1305 = vmatprep.subr.bf16.mxu1 %v1402_v15 }
  0x61   : > { %1306 = vmatpush3.bf16.msra.mxu1 %v1403_v17 }
  0x62   : > { %1307 = vmatprep.subr.bf16.mxu1 %v1405_v19 }
  0x65   : > { %1308 = vmatpush3.bf16.msra.mxu1 %v1406_v21 }
  0x66   : > { %1309 = vmatprep.subr.bf16.mxu1 %v1408_v22 }
  0x69   : > { %1310 = vmatpush3.bf16.msra.mxu1 %v1409_v23 }
  0x6c   : > { %1000 = vmatmul.mubr.bf16.vlgmr.msra.gmra.mxu1 %v1411_v24 }
  0xec   : > { %v1245_v25 = vpop.f32.mrf.mxu1 }
  0xee   : > { %v1246_v26 = vpop.f32.mrf.mxu1 }
  0xef   : > { %v1247_v37 = vadd.f32 %v1246_v26, %v1245_v25 }
  0xf0   : > { %v1248_v27 = vpop.f32.mrf.mxu1  ;;  %v1289_v28 = vpop.f32.mrf.mxu0 }
  0xf1   : > { %v879_v43 = vadd.f32 %v1247_v37, %v1136_v38 }
  0xf2   : > { %v1249_v29 = vpop.f32.mrf.mxu1  ;;  %v1290_v30 = vpop.f32.mrf.mxu0 }
  0xf3   : > { %v1250_v44 = vadd.f32 %v1249_v29, %v1248_v27  ;;  %v1291_v50 = vadd.f32 %v1290_v30, %v1289_v28 }
  0xf4   : > { %v1292_v32 = vpop.f32.mrf.mxu0 }
  0xf5   : > { %v882_v49 = vadd.f32 %v1250_v44, %v1136_v38 }
  0xf6   : > { %v1293_v34 = vpop.f32.mrf.mxu0 }
  0xf7   : > { %v1294_v56 = vadd.f32 %v1293_v34, %v1292_v32 }
 0x10c   : > { %v1267_v31 = vpop.f32.mrf.mxu1 }
 0x10e   : > { %v1268_v33 = vpop.f32.mrf.mxu1 }
 0x10f   : > { %v1269_v40 = vadd.f32 %v1268_v33, %v1267_v31 }
 0x110   : > { %v1270_v35 = vpop.f32.mrf.mxu1 }
 0x111   : > { %v920_v46 = vadd.f32 %v1269_v40, %v879_v43 }
 0x112   : > { %v1271_v41 = vpop.f32.mrf.mxu1 }
 0x113   : > { %v1272_v47 = vadd.f32 %v1271_v41, %v1270_v35  ;;  %v961_v53 = vadd.f32 %v1291_v50, %v920_v46 }
 0x115   : > { %v923_v52 = vadd.f32 %v1272_v47, %v882_v49 }
 0x117   : > { %v964_v61 = vadd.f32 %v1294_v56, %v923_v52 }
 0x118   : > { %v1042_v36 = vpop.f32.mrf.mxu0 }
 0x11a   : > { %v1044_v39 = vpop.f32.mrf.mxu0 }
 0x11c   : > { %v1045_v42 = vpop.f32.mrf.mxu0 }
 0x11e   : > { %v1047_v45 = vpop.f32.mrf.mxu0 }
 0x12c   : > { %v1311_v48 = vpop.f32.mrf.mxu1 }
 0x12e   : > { %v1312_v51 = vpop.f32.mrf.mxu1 }
 0x12f   : > { %v1313_v54 = vadd.f32 %v1312_v51, %v1311_v48 }
 0x130   : > { %v1314_v55 = vpop.f32.mrf.mxu1 }
 0x131   : > { %v1002_v57 = vadd.f32 %v1313_v54, %v961_v53 }
 0x132   : > { %v1315_v59 = vpop.f32.mrf.mxu1 }
 0x133   : > { %v1043_v60 = vadd.f32 %v1042_v36, %v1002_v57  ;;  %v1316_v62 = vadd.f32 %v1315_v59, %v1314_v55 }
 0x135   : > { %vm1049_vm3 = vcmp.gt.f32.partialorder %v1043_v60, 0.0  ;;  %v1056_v63 = vmul.f32 %v1222_v58, %v1043_v60  ;;  %v1005_v0 = vadd.f32 %v1316_v62, %v964_v61 }
 0x137   : > { %v1058_v1 = vsel %vm1049_vm3, %v1043_v60, %v1056_v63  ;;  %v1046_v2 = vadd.f32 %v1045_v42, %v1005_v0 }
 0x138   : > { %v1227_v3 = vpack.c.bf16 %v1058_v1, %v1058_v1 }
 0x139   : > { %vm1050_vm5 = vcmp.gt.f32.partialorder %v1046_v2, 0.0  ;;  %v1057_v4 = vmul.f32 %v1222_v58, %v1046_v2 }
 0x13a   : > { %1069 = vst.msk [vmem:[%s175_s28] sm:$0xf] %vm1068_vm4, %v1227_v3 }
 0x13b   : > { %v1059_v5 = vsel %vm1050_vm5, %v1046_v2, %v1057_v4 }
 0x13c   : > { %v1228_v6 = vpack.c.bf16 %v1059_v5, %v1059_v5 }
 0x13e   : > { %1070 = vst.msk [vmem:[%s175_s28 + $0x4] sm:$0xf] %vm1068_vm4, %v1228_v6 }
 0x13f PF: > { %s13_s12 = sadd.s32 1, %s1423_s12  }
 0x140   : > { %p10_p4 = scmp.ge.s32.totalorder %s13_s12, 4  }
 0x142   :  { %12 = sbr.rel (!%p10_p4) target bundleno = 1 (0x1), region = 62 }

// kernel: _lambda_.40
= control target key start
LH: loop header
LB: loop body
LE: loop exit
PB: predicated region body
PF: predicated region fallthrough
CT: control target
= control target key end

     0   :  { %s1360_s12 = smov 0   ;;  %s1595_s0 = inlined_call_operand.vmem [shape: bf16[32,1025], index: 0, kind: input, shape index: {}]   ;;  %s1596_s1 = inlined_call_operand.vmem [shape: bf16[1025,128], index: 1, kind: input, shape index: {}]   ;;  %s1597_s2 = inlined_call_operand.vmem [shape: f32[2,128], index: 2, kind: input, shape index: {}]   ;;  %s1598_s3 = inlined_call_operand.vmem [shape: bf16[32,128], index: 3, kind: output, shape index: {}]  }
   0x1 LB: > { %s1046_s13 = sadd.s32 4294967295, %s1335_s12   ;;  %p1050_p0 = scmp.ge.s32.totalorder %s1335_s12, 1  ;;  %s1335_s12 = sphi %s1360_s12, %s13_s12  }
   0x2   : > { %p139_p1 = scmp.lt.s32.totalorder %s1335_s12, 3 }
   0x4   : > { %p140_p2 = pnand %p1050_p0, %p139_p1 }
   0x5   : > { %s1051_s19 = sshll.u32 (!%p140_p2), %s1046_s13, 1 }
   0x6   : > { %143 = sbr.rel (%p140_p2) target bundleno = 290 (0x122), region = 32  ;;  %p165_p3 = scmp.lt.s32.totalorder (!%p140_p2), %s1051_s19, 3 }
   0xb   : > { %v1251_v0 = vld [vmem:[%s1596_s1 + $0x78] sm:$0xff]   ;;  %v1255_v4 = vld [vmem:[%s1596_s1 + $0x70] sm:$0xff]   ;;  %v1259_v8 = vld [vmem:[%s1596_s1 + $0x68] sm:$0xff]   ;;  %s1600_s19 = smov (!%p165_p3, %s1051_s19), 3  ;;  %vm758_vm0 = vcmask 1040384   ;;  %vm1339_vm1 = vmmov 0  }
   0xc   : > { %v1252_v1 = vld [vmem:[%s1596_s1 + $0xf8] sm:$0xff]   ;;  %1143 = vmatprep.subr.bf16.mxu0 %v1251_v0  ;;  %v1256_v5 = vld [vmem:[%s1596_s1 + $0xf0] sm:$0xff]   ;;  %v1260_v9 = vld [vmem:[%s1596_s1 + $0xe8] sm:$0xff]   ;;  %s1239_s16 = smul.u32 36, %s1600_s19  ;;  %vm754_vm2 = vcmask 7168   ;;  %s1054_s29 = sshll.u32 %s1600_s19, 2 }
   0xd   : > { %v1253_v2 = vld [vmem:[%s1596_s1 + $0x38] sm:$0xff]   ;;  %1165 = vmatprep.subr.bf16.mxu1 %v1252_v1  ;;  %v1257_v6 = vld [vmem:[%s1596_s1 + $0x30] sm:$0xff]   ;;  %v1261_v10 = vld [vmem:[%s1596_s1 + $0x28] sm:$0xff]   ;;  %s175_s5 = scalar_lea.vmem %s1598_s3, %s1054_s29 }
   0xe   : > { %v1254_v3 = vld [vmem:[%s1596_s1 + $0xb8] sm:$0xff]   ;;  %1144 = vmatpush3.bf16.msra.mxu0 %v1253_v2  ;;  %v1258_v7 = vld [vmem:[%s1596_s1 + $0xb0] sm:$0xff]   ;;  %v1262_v11 = vld [vmem:[%s1596_s1 + $0xa8] sm:$0xff]   ;;  %s1466_s13 = scalar_lea.vmem %s1595_s0, %s1239_s16 }
   0xf   : > { %1166 = vmatpush3.bf16.msra.mxu1 %v1254_v3  ;;  %1145 = vmatprep.subr.bf16.mxu0 %v1255_v4  ;;  %v1263_v12 = vld [vmem:[%s1596_s1 + $0x60] sm:$0xff]   ;;  %v1267_v16 = vld [vmem:[%s1596_s1 + $0x58] sm:$0xff]   ;;  %v1271_v20 = vld [vmem:[%s1596_s1 + $0x50] sm:$0xff]  }
  0x10   : > { %1167 = vmatprep.subr.bf16.mxu1 %v1256_v5  ;;  %v1264_v13 = vld [vmem:[%s1596_s1 + $0xe0] sm:$0xff]   ;;  %v1268_v17 = vld [vmem:[%s1596_s1 + $0xd8] sm:$0xff]   ;;  %v1272_v21 = vld [vmem:[%s1596_s1 + $0xd0] sm:$0xff]  }
  0x11   : > { %v1265_v14 = vld [vmem:[%s1596_s1 + $0x20] sm:$0xff]   ;;  %v1269_v18 = vld [vmem:[%s1596_s1 + $0x18] sm:$0xff]   ;;  %v1273_v22 = vld [vmem:[%s1596_s1 + $0x10] sm:$0xff]  }
  0x12   : > { %1146 = vmatpush3.bf16.msra.mxu0 %v1257_v6  ;;  %v1266_v15 = vld [vmem:[%s1596_s1 + $0xa0] sm:$0xff]   ;;  %v1270_v19 = vld [vmem:[%s1596_s1 + $0x98] sm:$0xff]   ;;  %v1274_v23 = vld [vmem:[%s1596_s1 + $0x90] sm:$0xff]  }
  0x13   : > { %1168 = vmatpush3.bf16.msra.mxu1 %v1258_v7  ;;  %1147 = vmatprep.subr.bf16.mxu0 %v1259_v8  ;;  %v1275_v24 = vld [vmem:[%s1596_s1 + $0x48] sm:$0xff]   ;;  %v1279_v28 = vld [vmem:[%s1596_s1 + $0x40] sm:$0xff]   ;;  %v1289_v36 = vld [vmem:[%s1596_s1 + $0x178] sm:$0xff]   ;;  %v1337_v7 = vmov 0.0   ;;  %v1338_v8 = vmov 0  }
  0x14   : > { %1169 = vmatprep.subr.bf16.mxu1 %v1260_v9  ;;  %v1276_v25 = vld [vmem:[%s1596_s1 + $0xc8] sm:$0xff]   ;;  %v1280_v29 = vld [vmem:[%s1596_s1 + $0xc0] sm:$0xff]   ;;  %v1290_v37 = vld [vmem:[%s1596_s1 + $0x1f8] sm:$0xff]   ;;  %v760_v9 = vsel %vm758_vm0, 65535, %v1338_v8 }
  0x15   : > { %v1277_v26 = vld [vmem:[%s1596_s1 + $0x8] sm:$0xff]   ;;  %v1281_v30 = vld [vmem:[%s1596_s1] sm:$0xff]   ;;  %v1291_v38 = vld [vmem:[%s1596_s1 + $0x138] sm:$0xff]  }
  0x16   : > { %1148 = vmatpush3.bf16.msra.mxu0 %v1261_v10  ;;  %v1278_v27 = vld [vmem:[%s1596_s1 + $0x88] sm:$0xff]   ;;  %v1282_v31 = vld [vmem:[%s1596_s1 + $0x80] sm:$0xff]   ;;  %v1292_v39 = vld [vmem:[%s1596_s1 + $0x1b8] sm:$0xff]  }
  0x17   : > { %1170 = vmatpush3.bf16.msra.mxu1 %v1262_v11  ;;  %1149 = vmatprep.subr.bf16.mxu0 %v1263_v12  ;;  %v1283_v32 = vld [vmem:[%s1466_s13] ss:$36 sps:$4 sm:$0xff]   ;;  %v1286_v34 = vld [vmem:[%s1466_s13 + $0x8] ss:$36 sps:$4 sm:$0xff]   ;;  %v1293_v40 = vld [vmem:[%s1596_s1 + $0x170] sm:$0xff]  }
  0x18   : > { %1171 = vmatprep.subr.bf16.mxu1 %v1264_v13  ;;  %v1285_v33 = vld [vmem:[%s1466_s13 + $0x4] ss:$36 sps:$4 sm:$0xff]   ;;  %v1288_v35 = vld [vmem:[%s1466_s13 + $0xc] ss:$36 sps:$4 sm:$0xff]   ;;  %v1305_v52 = vld [vmem:[%s1596_s1 + $0x158] sm:$0xff]  }
  0x19   : > { %796 = vmatprep.mubr.bf16.mxu0 %v1285_v33  ;;  %837 = vmatprep.mubr.bf16.mxu1 %v1288_v35  ;;  %v1294_v41 = vld [vmem:[%s1596_s1 + $0x1f0] sm:$0xff]   ;;  %v1297_v44 = vld [vmem:[%s1596_s1 + $0x168] sm:$0xff]   ;;  %v1301_v48 = vld [vmem:[%s1596_s1 + $0x160] sm:$0xff]  }
  0x1a   : > { %1150 = vmatpush3.bf16.msra.mxu0 %v1265_v14  ;;  %v1295_v42 = vld [vmem:[%s1596_s1 + $0x130] sm:$0xff]   ;;  %v1298_v45 = vld [vmem:[%s1596_s1 + $0x1e8] sm:$0xff]   ;;  %v1302_v49 = vld [vmem:[%s1596_s1 + $0x1e0] sm:$0xff]  }
  0x1b   : > { %1172 = vmatpush3.bf16.msra.mxu1 %v1266_v15  ;;  %1151 = vmatprep.subr.bf16.mxu0 %v1267_v16  ;;  %v1296_v43 = vld [vmem:[%s1596_s1 + $0x1b0] sm:$0xff]   ;;  %v1299_v46 = vld [vmem:[%s1596_s1 + $0x128] sm:$0xff]   ;;  %v1303_v50 = vld [vmem:[%s1596_s1 + $0x120] sm:$0xff]  }
  0x1c   : > { %1173 = vmatprep.subr.bf16.mxu1 %v1268_v17  ;;  %v1300_v47 = vld [vmem:[%s1596_s1 + $0x1a8] sm:$0xff]   ;;  %v1304_v51 = vld [vmem:[%s1596_s1 + $0x1a0] sm:$0xff]   ;;  %v1306_v53 = vld [vmem:[%s1596_s1 + $0x1d8] sm:$0xff]  }
  0x1d   : > { %v1307_v54 = vld [vmem:[%s1596_s1 + $0x118] sm:$0xff]   ;;  %v1309_v56 = vld [vmem:[%s1596_s1 + $0x150] sm:$0xff]   ;;  %v1313_v60 = vld [vmem:[%s1596_s1 + $0x148] sm:$0xff]  }
  0x1e   : > { %1152 = vmatpush3.bf16.msra.mxu0 %v1269_v18  ;;  %v1308_v55 = vld [vmem:[%s1596_s1 + $0x198] sm:$0xff]   ;;  %v1310_v57 = vld [vmem:[%s1596_s1 + $0x1d0] sm:$0xff]   ;;  %v1314_v61 = vld [vmem:[%s1596_s1 + $0x1c8] sm:$0xff]  }
  0x1f   : > { %1174 = vmatpush3.bf16.msra.mxu1 %v1270_v19  ;;  %1153 = vmatprep.subr.bf16.mxu0 %v1271_v20  ;;  %v1311_v58 = vld [vmem:[%s1596_s1 + $0x110] sm:$0xff]   ;;  %v1315_v62 = vld [vmem:[%s1596_s1 + $0x108] sm:$0xff]   ;;  %v1317_v0 = vld [vmem:[%s1596_s1 + $0x140] sm:$0xff]  }
  0x20   : > { %1175 = vmatprep.subr.bf16.mxu1 %v1272_v21  ;;  %v1312_v59 = vld [vmem:[%s1596_s1 + $0x190] sm:$0xff]   ;;  %v1316_v63 = vld [vmem:[%s1596_s1 + $0x188] sm:$0xff]   ;;  %v1318_v1 = vld [vmem:[%s1596_s1 + $0x1c0] sm:$0xff]  }
  0x21   : > { %v1319_v2 = vld [vmem:[%s1596_s1 + $0x100] sm:$0xff]   ;;  %v1321_v4 = vld [vmem:[%s1466_s13 + $0x10] ss:$36 sps:$4 sm:$0xff]   ;;  %v1324_v6 = vld [vmem:[%s1466_s13 + $0x18] ss:$36 sps:$4 sm:$0xff]  }
  0x22   : > { %1154 = vmatpush3.bf16.msra.mxu0 %v1273_v22  ;;  %v1320_v3 = vld [vmem:[%s1596_s1 + $0x180] sm:$0xff]   ;;  %v1323_v5 = vld [vmem:[%s1466_s13 + $0x14] ss:$36 sps:$4 sm:$0xff]  }
  0x23   : > { %1176 = vmatpush3.bf16.msra.mxu1 %v1274_v23  ;;  %1155 = vmatprep.subr.bf16.mxu0 %v1275_v24  ;;  %v1326_v10 = vld [vmem:[%s1466_s13 + $0x1c] ss:$36 sps:$4 sm:$0xff]  }
  0x24   : > { %1177 = vmatprep.subr.bf16.mxu1 %v1276_v25  ;;  %v1327_v11 = vld [vmem:[%s1596_s1 + $0x200] ss:$0 sps:$4 sm:$0x11]  }
  0x25   : > { %v762_v12 = vand.u32 %v1327_v11, %v760_v9  ;;  %v1328_v13 = vld [vmem:[%s1466_s13 + $0x20] ss:$36 sps:$4 sm:$0xff]  }
  0x26   : > { %1156 = vmatpush3.bf16.msra.mxu0 %v1277_v26  ;;  %v1055_v20 = vld [vmem:[%s1597_s2] ss:$0 sm:$0xff] }
  0x27   : > { %1178 = vmatpush3.bf16.msra.mxu1 %v1278_v27  ;;  %1157 = vmatprep.subr.bf16.mxu0 %v1279_v28 }
  0x28   : > { %1179 = vmatprep.subr.bf16.mxu1 %v1280_v29 }
  0x2a   : > { %1158 = vmatpush3.bf16.msra.mxu0 %v1281_v30 }
  0x2b   : > { %1180 = vmatpush3.bf16.msra.mxu1 %v1282_v31  ;;  %1187 = vmatprep.subr.bf16.mxu0 %v1289_v36 }
  0x2c   : > { %1209 = vmatprep.subr.bf16.mxu1 %v1290_v37 }
  0x2d   : > { %797 = vmatmul.mubr.bf16.vlgmr.msra.gmra.mxu0 %v1283_v32 }
  0x2e   : > { %838 = vmatmul.mubr.bf16.vlgmr.msra.gmra.mxu1 %v1286_v34  ;;  %1188 = vmatpush3.bf16.msra.mxu0 %v1291_v38 }
  0x2f   : > { %1210 = vmatpush3.bf16.msra.mxu1 %v1292_v39  ;;  %1189 = vmatprep.subr.bf16.mxu0 %v1293_v40 }
  0x30   : > { %1211 = vmatprep.subr.bf16.mxu1 %v1294_v41  ;;  %878 = vmatprep.mubr.bf16.mxu0 %v1323_v5 }
  0x31   : > { %919 = vmatprep.mubr.bf16.mxu1 %v1326_v10 }
  0x32   : > { %1190 = vmatpush3.bf16.msra.mxu0 %v1295_v42 }
  0x33   : > { %1212 = vmatpush3.bf16.msra.mxu1 %v1296_v43  ;;  %1191 = vmatprep.subr.bf16.mxu0 %v1297_v44 }
  0x34   : > { %1213 = vmatprep.subr.bf16.mxu1 %v1298_v45 }
  0x36   : > { %1192 = vmatpush3.bf16.msra.mxu0 %v1299_v46 }
  0x37   : > { %1214 = vmatpush3.bf16.msra.mxu1 %v1300_v47  ;;  %1193 = vmatprep.subr.bf16.mxu0 %v1301_v48  ;;  %v1131_v48 = vld [vmem:[%s1597_s2 + $0x1] ss:$0 sm:$0xff] }
  0x38   : > { %1215 = vmatprep.subr.bf16.mxu1 %v1302_v49 }
  0x3a   : > { %1194 = vmatpush3.bf16.msra.mxu0 %v1303_v50 }
  0x3b   : > { %1216 = vmatpush3.bf16.msra.mxu1 %v1304_v51  ;;  %1195 = vmatprep.subr.bf16.mxu0 %v1305_v52 }
  0x3c   : > { %1217 = vmatprep.subr.bf16.mxu1 %v1306_v53 }
  0x3e   : > { %1196 = vmatpush3.bf16.msra.mxu0 %v1307_v54 }
  0x3f   : > { %1218 = vmatpush3.bf16.msra.mxu1 %v1308_v55  ;;  %1197 = vmatprep.subr.bf16.mxu0 %v1309_v56 }
  0x40   : > { %1219 = vmatprep.subr.bf16.mxu1 %v1310_v57 }
  0x42   : > { %1198 = vmatpush3.bf16.msra.mxu0 %v1311_v58 }
  0x43   : > { %1220 = vmatpush3.bf16.msra.mxu1 %v1312_v59  ;;  %1199 = vmatprep.subr.bf16.mxu0 %v1313_v60 }
  0x44   : > { %1221 = vmatprep.subr.bf16.mxu1 %v1314_v61 }
  0x46   : > { %1200 = vmatpush3.bf16.msra.mxu0 %v1315_v62 }
  0x47   : > { %1222 = vmatpush3.bf16.msra.mxu1 %v1316_v63  ;;  %1201 = vmatprep.subr.bf16.mxu0 %v1317_v0 }
  0x48   : > { %1223 = vmatprep.subr.bf16.mxu1 %v1318_v1 }
  0x4a   : > { %1202 = vmatpush3.bf16.msra.mxu0 %v1319_v2 }
  0x4b   : > { %1224 = vmatpush3.bf16.msra.mxu1 %v1320_v3  ;;  %1233 = vmatprep.subr.bf16.mxu0 %v1337_v7 }
  0x4d   : > { %879 = vmatmul.mubr.bf16.vlgmr.msra.gmra.mxu0 %v1321_v4 }
  0x4e   : > { %1235 = vmatprep.mubr.msk.bf16.mxu0 %vm1339_vm1, %v1337_v7  ;;  %920 = vmatmul.mubr.bf16.vlgmr.msra.gmra.mxu1 %v1324_v6 }
  0x4f   : > { %1234 = vmatpush3.bf16.msra.mxu0 %v762_v12 }
  0x55   : > { %1236 = vmatmul.mubr.msk.bf16.vlgmr.msra.gmra.mxu0 %vm754_vm2, %v1328_v13 }
  0xed   : > { %v1159_v14 = vpop.f32.mrf.mxu0 }
  0xee   : > { %v1181_v15 = vpop.f32.mrf.mxu1 }
  0xef   : > { %v1160_v16 = vpop.f32.mrf.mxu0 }
  0xf0   : > { %v1182_v17 = vpop.f32.mrf.mxu1  ;;  %v1161_v19 = vadd.f32 %v1160_v16, %v1159_v14 }
  0xf1   : > { %v1162_v18 = vpop.f32.mrf.mxu0  ;;  %v1183_v24 = vadd.f32 %v1182_v17, %v1181_v15 }
  0xf2   : > { %v1184_v21 = vpop.f32.mrf.mxu1  ;;  %v799_v23 = vadd.f32 %v1161_v19, %v1055_v20 }
  0xf3   : > { %v1163_v22 = vpop.f32.mrf.mxu0 }
  0xf4   : > { %v1164_v25 = vadd.f32 %v1163_v22, %v1162_v18  ;;  %v1185_v26 = vpop.f32.mrf.mxu1  ;;  %v840_v30 = vadd.f32 %v1183_v24, %v799_v23 }
  0xf5   : > { %v1186_v35 = vadd.f32 %v1185_v26, %v1184_v21 }
  0xf6   : > { %v802_v31 = vadd.f32 %v1164_v25, %v1055_v20 }
  0xf8   : > { %v843_v40 = vadd.f32 %v1186_v35, %v802_v31 }
 0x10d   : > { %v1203_v27 = vpop.f32.mrf.mxu0 }
 0x10e   : > { %v1225_v28 = vpop.f32.mrf.mxu1 }
 0x10f   : > { %v1204_v29 = vpop.f32.mrf.mxu0 }
 0x110   : > { %v1205_v32 = vadd.f32 %v1204_v29, %v1203_v27  ;;  %v1226_v33 = vpop.f32.mrf.mxu1 }
 0x111   : > { %v1206_v34 = vpop.f32.mrf.mxu0  ;;  %v1227_v37 = vadd.f32 %v1226_v33, %v1225_v28 }
 0x112   : > { %v881_v36 = vadd.f32 %v1205_v32, %v840_v30  ;;  %v1228_v38 = vpop.f32.mrf.mxu1 }
 0x113   : > { %v1207_v39 = vpop.f32.mrf.mxu0 }
 0x114   : > { %v1208_v41 = vadd.f32 %v1207_v39, %v1206_v34  ;;  %v922_v42 = vadd.f32 %v1227_v37, %v881_v36  ;;  %v1229_v43 = vpop.f32.mrf.mxu1 }
 0x115   : > { %v962_v44 = vpop.f32.mrf.mxu0  ;;  %v1230_v46 = vadd.f32 %v1229_v43, %v1228_v38 }
 0x116   : > { %v884_v45 = vadd.f32 %v1208_v41, %v843_v40  ;;  %v963_v47 = vadd.f32 %v962_v44, %v922_v42 }
 0x117   : > { %v1237_v49 = vpop.f32.mrf.mxu0 }
 0x118   : > { %v925_v50 = vadd.f32 %v1230_v46, %v884_v45  ;;  %v976_v52 = vmul.f32 %v1131_v48, %v963_v47  ;;  %vm969_vm3 = vcmp.gt.f32.partialorder %v963_v47, 0.0 }
 0x119   : > { %v965_v51 = vpop.f32.mrf.mxu0 }
 0x11a   : > { %v966_v53 = vadd.f32 %v965_v51, %v925_v50  ;;  %v978_v56 = vsel %vm969_vm3, %v963_v47, %v976_v52 }
 0x11b   : > { %v1238_v54 = vpop.f32.mrf.mxu0 }
 0x11c   : > { %vm970_vm4 = vcmp.gt.f32.partialorder %v966_v53, 0.0  ;;  %v977_v55 = vmul.f32 %v1131_v48, %v966_v53 }
 0x11e   : > { %v979_v57 = vsel %vm970_vm4, %v966_v53, %v977_v55 }
 0x11f   : > { %v1141_v58 = vpack.c.bf16 %v979_v57, %v978_v56 }
 0x121   : > { %1142 = vst [vmem:[%s175_s5] sm:$0xff] %v1141_v58  }
 0x122 PF: > { %s13_s12 = sadd.s32 1, %s1335_s12  }
 0x123   : > { %p10_p4 = scmp.ge.s32.totalorder %s13_s12, 4  }
 0x125   :  { %12 = sbr.rel (!%p10_p4) target bundleno = 1 (0x1), region = 62 }

// kernel: _lambda_.42
= control target key start
LH: loop header
LB: loop body
LE: loop exit
PB: predicated region body
PF: predicated region fallthrough
CT: control target
= control target key end

     0   :  { %s1622_s18 = smov 0   ;;  %s1899_s0 = inlined_call_operand.vmem [shape: bf16[32,1025], index: 0, kind: input, shape index: {}]   ;;  %s1900_s1 = inlined_call_operand.vmem [shape: bf16[32,128], index: 1, kind: input, shape index: {}]   ;;  %s1901_s2 = inlined_call_operand.vmem [shape: bf16[1025,128], index: 2, kind: input, shape index: {}]   ;;  %s1902_s3 = inlined_call_operand.vmem [shape: bf16[128,128], index: 3, kind: input, shape index: {}]   ;;  %s1903_s4 = inlined_call_operand.vmem [shape: f32[2,128], index: 4, kind: input, shape index: {}]   ;;  %s1904_s5 = inlined_call_operand.vmem [shape: bf16[32,128], index: 5, kind: output, shape index: {}]  }
   0x1 LB: > { %s1249_s19 = sadd.s32 4294967295, %s1587_s18   ;;  %p1253_p0 = scmp.ge.s32.totalorder %s1587_s18, 1  ;;  %s1587_s18 = sphi %s1622_s18, %s15_s18  }
   0x2   : > { %p200_p1 = scmp.lt.s32.totalorder %s1587_s18, 3 }
   0x4   : > { %p201_p2 = pnand %p1253_p0, %p200_p1 }
   0x5   : > { %s1254_s13 = sshll.u32 (!%p201_p2), %s1249_s19, 1 }
   0x6   : > { %204 = sbr.rel (%p201_p2) target bundleno = 321 (0x141), region = 40  ;;  %p235_p3 = scmp.lt.s32.totalorder (!%p201_p2), %s1254_s13, 3 }
   0xb   : > { %v1494_v0 = vld [vmem:[%s1902_s3 + $0x38] sm:$0xff]   ;;  %v1589_v1 = vmov 0.0   ;;  %vm1590_vm0 = vmmov 0   ;;  %v1497_v4 = vld [vmem:[%s1902_s3 + $0x30] sm:$0xff]   ;;  %v1500_v7 = vld [vmem:[%s1902_s3 + $0x28] sm:$0xff]   ;;  %s1906_s13 = smov (!%p235_p3, %s1254_s13), 3 }
   0xc   : > { %1456 = vmatprep.subr.bf16.mxu0 %v1589_v1  ;;  %v1495_v2 = vld [vmem:[%s1901_s2 + $0x78] sm:$0xff]   ;;  %1472 = vmatprep.mubr.msk.bf16.mxu0 %vm1590_vm0, %v1589_v1  ;;  %v1498_v5 = vld [vmem:[%s1901_s2 + $0x70] sm:$0xff]   ;;  %v1501_v8 = vld [vmem:[%s1901_s2 + $0x68] sm:$0xff]   ;;  %s1482_s6 = smul.u32 36, %s1906_s13  ;;  %s1257_s9 = sshll.u32 %s1906_s13, 2  ;;  %vm942_vm1 = vcmask 1040384  }
   0xd   : > { %1457 = vmatpush3.bf16.msra.mxu0 %v1494_v0  ;;  %v1496_v3 = vld [vmem:[%s1901_s2 + $0x38] sm:$0xff]   ;;  %1366 = vmatprep.subr.bf16.mxu1 %v1495_v2  ;;  %v1499_v6 = vld [vmem:[%s1901_s2 + $0x30] sm:$0xff]   ;;  %v1502_v9 = vld [vmem:[%s1901_s2 + $0x28] sm:$0xff]   ;;  %s245_s23 = scalar_lea.vmem %s1900_s1, %s1257_s9  ;;  %vm938_vm2 = vcmask 7168   ;;  %s251_s28 = scalar_lea.vmem %s1904_s5, %s1257_s9 }
   0xe   : > { %1458 = vmatprep.subr.bf16.mxu0 %v1589_v1  ;;  %1367 = vmatpush3.bf16.msra.mxu1 %v1496_v3  ;;  %v1503_v10 = vld [vmem:[%s1902_s3 + $0x20] sm:$0xff]   ;;  %v1507_v13 = vld [vmem:[%s1901_s2 + $0x58] sm:$0xff]   ;;  %v1510_v16 = vld [vmem:[%s1901_s2 + $0x50] sm:$0xff]   ;;  %s1709_s21 = scalar_lea.vmem %s1899_s0, %s1482_s6 }
   0xf   : > { %1368 = vmatprep.subr.bf16.mxu1 %v1498_v5  ;;  %v1504_v11 = vld [vmem:[%s1901_s2 + $0x60] sm:$0xff]   ;;  %v1506_v14 = vld [vmem:[%s1902_s3 + $0x18] sm:$0xff]   ;;  %v1509_v17 = vld [vmem:[%s1902_s3 + $0x10] sm:$0xff]  }
  0x10   : > { %v1505_v12 = vld [vmem:[%s1901_s2 + $0x20] sm:$0xff]   ;;  %v1508_v15 = vld [vmem:[%s1901_s2 + $0x18] sm:$0xff]   ;;  %v1511_v18 = vld [vmem:[%s1901_s2 + $0x10] sm:$0xff]  }
  0x11   : > { %1459 = vmatpush3.bf16.msra.mxu0 %v1497_v4  ;;  %v1513_v19 = vld [vmem:[%s1901_s2 + $0x48] sm:$0xff]   ;;  %v1515_v22 = vld [vmem:[%s1902_s3] sm:$0xff]   ;;  %v1522_v26 = vld [vmem:[%s1901_s2 + $0xf8] sm:$0xff]  }
  0x12   : > { %1460 = vmatprep.subr.bf16.mxu0 %v1589_v1  ;;  %1369 = vmatpush3.bf16.msra.mxu1 %v1499_v6  ;;  %v1512_v20 = vld [vmem:[%s1902_s3 + $0x8] sm:$0xff]   ;;  %v1516_v23 = vld [vmem:[%s1901_s2 + $0x40] sm:$0xff]   ;;  %v1524_v29 = vld [vmem:[%s1901_s2 + $0x178] sm:$0xff]  }
  0x13   : > { %1370 = vmatprep.subr.bf16.mxu1 %v1501_v8  ;;  %v1514_v21 = vld [vmem:[%s1901_s2 + $0x8] sm:$0xff]   ;;  %v1517_v24 = vld [vmem:[%s1901_s2] sm:$0xff]   ;;  %v1523_v30 = vld [vmem:[%s1901_s2 + $0xb8] sm:$0xff]  }
  0x14   : > { %v1521_v25 = vld [vmem:[%s1709_s21 + $0x4] ss:$36 sps:$4 sm:$0xff]   ;;  %v1526_v31 = vld [vmem:[%s1901_s2 + $0xf0] sm:$0xff]   ;;  %v1525_v32 = vld [vmem:[%s1901_s2 + $0x138] sm:$0xff]  }
  0x15   : > { %1461 = vmatpush3.bf16.msra.mxu0 %v1500_v7  ;;  %v1518_v27 = vld [vmem:[%s245_s23] sm:$0xff]   ;;  %980 = vmatprep.mubr.bf16.mxu1 %v1521_v25  ;;  %v1528_v33 = vld [vmem:[%s1901_s2 + $0x170] sm:$0xff]   ;;  %v1530_v35 = vld [vmem:[%s1901_s2 + $0xe8] sm:$0xff]  }
  0x16   : > { %1462 = vmatprep.subr.bf16.mxu0 %v1589_v1  ;;  %1371 = vmatpush3.bf16.msra.mxu1 %v1502_v9  ;;  %v1519_v28 = vld [vmem:[%s1709_s21] ss:$36 sps:$4 sm:$0xff]   ;;  %v1527_v34 = vld [vmem:[%s1901_s2 + $0xb0] sm:$0xff]   ;;  %v1532_v37 = vld [vmem:[%s1901_s2 + $0x168] sm:$0xff]   ;;  %v1591_v9 = vmov 0  }
  0x17   : > { %1372 = vmatprep.subr.bf16.mxu1 %v1504_v11  ;;  %v1529_v36 = vld [vmem:[%s1901_s2 + $0x130] sm:$0xff]   ;;  %v1531_v38 = vld [vmem:[%s1901_s2 + $0xa8] sm:$0xff]   ;;  %v1534_v39 = vld [vmem:[%s1901_s2 + $0xe0] sm:$0xff]  }
  0x18   : > { %v1533_v40 = vld [vmem:[%s1901_s2 + $0x128] sm:$0xff]   ;;  %v1536_v41 = vld [vmem:[%s1901_s2 + $0x160] sm:$0xff]   ;;  %v1538_v43 = vld [vmem:[%s1901_s2 + $0xd8] sm:$0xff]  }
  0x19   : > { %1463 = vmatpush3.bf16.msra.mxu0 %v1503_v10  ;;  %v1535_v42 = vld [vmem:[%s1901_s2 + $0xa0] sm:$0xff]   ;;  %v1540_v45 = vld [vmem:[%s1901_s2 + $0x158] sm:$0xff]   ;;  %v1542_v47 = vld [vmem:[%s1901_s2 + $0xd0] sm:$0xff]   ;;  %v944_v10 = vsel %vm942_vm1, 65535, %v1591_v9 }
  0x1a   : > { %1464 = vmatprep.subr.bf16.mxu0 %v1589_v1  ;;  %1373 = vmatpush3.bf16.msra.mxu1 %v1505_v12  ;;  %v1537_v44 = vld [vmem:[%s1901_s2 + $0x120] sm:$0xff]   ;;  %v1539_v46 = vld [vmem:[%s1901_s2 + $0x98] sm:$0xff]   ;;  %v1544_v49 = vld [vmem:[%s1901_s2 + $0x150] sm:$0xff]  }
  0x1b   : > { %1374 = vmatprep.subr.bf16.mxu1 %v1507_v13  ;;  %v1541_v48 = vld [vmem:[%s1901_s2 + $0x118] sm:$0xff]   ;;  %v1543_v50 = vld [vmem:[%s1901_s2 + $0x90] sm:$0xff]   ;;  %v1546_v51 = vld [vmem:[%s1901_s2 + $0xc8] sm:$0xff]  }
  0x1c   : > { %v1545_v52 = vld [vmem:[%s1901_s2 + $0x110] sm:$0xff]   ;;  %v1548_v53 = vld [vmem:[%s1901_s2 + $0x148] sm:$0xff]   ;;  %v1550_v55 = vld [vmem:[%s1901_s2 + $0xc0] sm:$0xff]  }
  0x1d   : > { %1465 = vmatpush3.bf16.msra.mxu0 %v1506_v14  ;;  %v1547_v54 = vld [vmem:[%s1901_s2 + $0x88] sm:$0xff]   ;;  %v1552_v57 = vld [vmem:[%s1901_s2 + $0x140] sm:$0xff]   ;;  %v1557_v62 = vld [vmem:[%s1901_s2 + $0x1f8] sm:$0xff]  }
  0x1e   : > { %1466 = vmatprep.subr.bf16.mxu0 %v1589_v1  ;;  %1375 = vmatpush3.bf16.msra.mxu1 %v1508_v15  ;;  %v1549_v56 = vld [vmem:[%s1901_s2 + $0x108] sm:$0xff]   ;;  %v1551_v58 = vld [vmem:[%s1901_s2 + $0x80] sm:$0xff]   ;;  %v1558_v63 = vld [vmem:[%s1709_s21 + $0x10] ss:$36 sps:$4 sm:$0xff]  }
  0x1f   : > { %1376 = vmatprep.subr.bf16.mxu1 %v1510_v16  ;;  %v1555_v59 = vld [vmem:[%s1709_s21 + $0xc] ss:$36 sps:$4 sm:$0xff]   ;;  %v1556_v61 = vld [vmem:[%s1901_s2 + $0x100] sm:$0xff]   ;;  %v1560_v0 = vld [vmem:[%s1709_s21 + $0x14] ss:$36 sps:$4 sm:$0xff]  }
  0x20   : > { %v1553_v60 = vld [vmem:[%s1709_s21 + $0x8] ss:$36 sps:$4 sm:$0xff]   ;;  %v1561_v2 = vld [vmem:[%s1901_s2 + $0x1b8] sm:$0xff]   ;;  %v1562_v3 = vld [vmem:[%s1901_s2 + $0x1f0] sm:$0xff]  }
  0x21   : > { %1467 = vmatpush3.bf16.msra.mxu0 %v1509_v17  ;;  %v1563_v4 = vld [vmem:[%s1901_s2 + $0x1b0] sm:$0xff]   ;;  %v1564_v5 = vld [vmem:[%s1901_s2 + $0x1e8] sm:$0xff]   ;;  %v1566_v7 = vld [vmem:[%s1901_s2 + $0x1e0] sm:$0xff]  }
  0x22   : > { %1468 = vmatprep.subr.bf16.mxu0 %v1589_v1  ;;  %1377 = vmatpush3.bf16.msra.mxu1 %v1511_v18  ;;  %v1565_v6 = vld [vmem:[%s1901_s2 + $0x1a8] sm:$0xff]   ;;  %v1567_v8 = vld [vmem:[%s1901_s2 + $0x1a0] sm:$0xff]   ;;  %v1569_v12 = vld [vmem:[%s1901_s2 + $0x198] sm:$0xff]  }
  0x23   : > { %1378 = vmatprep.subr.bf16.mxu1 %v1513_v19  ;;  %v1576_v11 = vld [vmem:[%s1901_s2 + $0x200] ss:$0 sps:$4 sm:$0x11]   ;;  %v1570_v14 = vld [vmem:[%s1901_s2 + $0x1d0] sm:$0xff]   ;;  %v1572_v18 = vld [vmem:[%s1901_s2 + $0x1c8] sm:$0xff]  }
  0x24   : > { %v1579_v13 = vld [vmem:[%s1709_s21 + $0x1c] ss:$36 sps:$4 sm:$0xff]   ;;  %v946_v15 = vand.u32 %v1576_v11, %v944_v10  ;;  %v1571_v17 = vld [vmem:[%s1901_s2 + $0x190] sm:$0xff]   ;;  %v1573_v19 = vld [vmem:[%s1901_s2 + $0x188] sm:$0xff]  }
  0x25   : > { %1469 = vmatpush3.bf16.msra.mxu0 %v1512_v20  ;;  %v1580_v16 = vld [vmem:[%s1709_s21 + $0x20] ss:$36 sps:$4 sm:$0xff]  }
  0x26   : > { %1470 = vmatprep.subr.bf16.mxu0 %v1589_v1  ;;  %1379 = vmatpush3.bf16.msra.mxu1 %v1514_v21  ;;  %v1574_v20 = vld [vmem:[%s1901_s2 + $0x1c0] sm:$0xff]  }
  0x27   : > { %1380 = vmatprep.subr.bf16.mxu1 %v1516_v23  ;;  %v1575_v21 = vld [vmem:[%s1901_s2 + $0x180] sm:$0xff]  }
  0x29   : > { %1471 = vmatpush3.bf16.msra.mxu0 %v1515_v22  ;;  %v1577_v22 = vld [vmem:[%s1709_s21 + $0x18] ss:$36 sps:$4 sm:$0xff]  }
  0x2a   : > { %1388 = vmatprep.subr.bf16.mxu0 %v1522_v26  ;;  %1381 = vmatpush3.bf16.msra.mxu1 %v1517_v24 }
  0x2b   : > { %1410 = vmatprep.subr.bf16.mxu1 %v1524_v29 }
  0x2c   : > { %1473 = vmatmul.mubr.bf16.vlgmr.msra.gmra.mxu0 %v1518_v27 }
  0x2d   : > { %1389 = vmatpush3.bf16.msra.mxu0 %v1523_v30  ;;  %981 = vmatmul.mubr.bf16.vlgmr.msra.gmra.mxu1 %v1519_v28 }
  0x2e   : > { %1390 = vmatprep.subr.bf16.mxu0 %v1526_v31  ;;  %1411 = vmatpush3.bf16.msra.mxu1 %v1525_v32 }
  0x2f   : > { %1412 = vmatprep.subr.bf16.mxu1 %v1528_v33  ;;  %1021 = vmatprep.mubr.bf16.mxu0 %v1555_v59  ;;  %v1344_v59 = vld [vmem:[%s1903_s4] ss:$0 sm:$0xff] }
  0x30   : > { %1062 = vmatprep.mubr.bf16.mxu1 %v1560_v0 }
  0x31   : > { %1391 = vmatpush3.bf16.msra.mxu0 %v1527_v34 }
  0x32   : > { %1392 = vmatprep.subr.bf16.mxu0 %v1530_v35  ;;  %1413 = vmatpush3.bf16.msra.mxu1 %v1529_v36 }
  0x33   : > { %1414 = vmatprep.subr.bf16.mxu1 %v1532_v37 }
  0x35   : > { %1393 = vmatpush3.bf16.msra.mxu0 %v1531_v38 }
  0x36   : > { %1394 = vmatprep.subr.bf16.mxu0 %v1534_v39  ;;  %1415 = vmatpush3.bf16.msra.mxu1 %v1533_v40 }
  0x37   : > { %1416 = vmatprep.subr.bf16.mxu1 %v1536_v41 }
  0x39   : > { %1395 = vmatpush3.bf16.msra.mxu0 %v1535_v42 }
  0x3a   : > { %1396 = vmatprep.subr.bf16.mxu0 %v1538_v43  ;;  %1417 = vmatpush3.bf16.msra.mxu1 %v1537_v44 }
  0x3b   : > { %1418 = vmatprep.subr.bf16.mxu1 %v1540_v45 }
  0x3d   : > { %1397 = vmatpush3.bf16.msra.mxu0 %v1539_v46 }
  0x3e   : > { %1398 = vmatprep.subr.bf16.mxu0 %v1542_v47  ;;  %1419 = vmatpush3.bf16.msra.mxu1 %v1541_v48 }
  0x3f   : > { %1420 = vmatprep.subr.bf16.mxu1 %v1544_v49 }
  0x41   : > { %1399 = vmatpush3.bf16.msra.mxu0 %v1543_v50 }
  0x42   : > { %1400 = vmatprep.subr.bf16.mxu0 %v1546_v51  ;;  %1421 = vmatpush3.bf16.msra.mxu1 %v1545_v52 }
  0x43   : > { %1422 = vmatprep.subr.bf16.mxu1 %v1548_v53 }
  0x45   : > { %1401 = vmatpush3.bf16.msra.mxu0 %v1547_v54 }
  0x46   : > { %1402 = vmatprep.subr.bf16.mxu0 %v1550_v55  ;;  %1423 = vmatpush3.bf16.msra.mxu1 %v1549_v56 }
  0x47   : > { %1424 = vmatprep.subr.bf16.mxu1 %v1552_v57 }
  0x49   : > { %1403 = vmatpush3.bf16.msra.mxu0 %v1551_v58 }
  0x4a   : > { %1432 = vmatprep.subr.bf16.mxu0 %v1557_v62  ;;  %1425 = vmatpush3.bf16.msra.mxu1 %v1556_v61 }
  0x4b   : > { %1476 = vmatprep.subr.bf16.mxu1 %v1589_v1 }
  0x4c   : > { %1022 = vmatmul.mubr.bf16.vlgmr.msra.gmra.mxu0 %v1553_v60 }
  0x4d   : > { %1433 = vmatpush3.bf16.msra.mxu0 %v1561_v2  ;;  %1063 = vmatmul.mubr.bf16.vlgmr.msra.gmra.mxu1 %v1558_v63 }
  0x4e   : > { %1434 = vmatprep.subr.bf16.mxu0 %v1562_v3  ;;  %1478 = vmatprep.mubr.msk.bf16.mxu1 %vm1590_vm0, %v1589_v1  ;;  %v1568_v1 = vld [vmem:[%s1901_s2 + $0x1d8] sm:$0xff]   ;;  %v1345_v3 = vld [vmem:[%s1903_s4 + $0x1] ss:$0 sm:$0xff] }
  0x4f   : > { %1103 = vmatprep.mubr.bf16.mxu0 %v1579_v13  ;;  %1477 = vmatpush3.bf16.msra.mxu1 %v946_v15 }
  0x51   : > { %1435 = vmatpush3.bf16.msra.mxu0 %v1563_v4 }
  0x52   : > { %1436 = vmatprep.subr.bf16.mxu0 %v1564_v5 }
  0x55   : > { %1437 = vmatpush3.bf16.msra.mxu0 %v1565_v6  ;;  %1479 = vmatmul.mubr.msk.bf16.vlgmr.msra.gmra.mxu1 %vm938_vm2, %v1580_v16 }
  0x56   : > { %1438 = vmatprep.subr.bf16.mxu0 %v1566_v7 }
  0x59   : > { %1439 = vmatpush3.bf16.msra.mxu0 %v1567_v8 }
  0x5a   : > { %1440 = vmatprep.subr.bf16.mxu0 %v1568_v1 }
  0x5d   : > { %1441 = vmatpush3.bf16.msra.mxu0 %v1569_v12 }
  0x5e   : > { %1442 = vmatprep.subr.bf16.mxu0 %v1570_v14 }
  0x61   : > { %1443 = vmatpush3.bf16.msra.mxu0 %v1571_v17 }
  0x62   : > { %1444 = vmatprep.subr.bf16.mxu0 %v1572_v18 }
  0x65   : > { %1445 = vmatpush3.bf16.msra.mxu0 %v1573_v19 }
  0x66   : > { %1446 = vmatprep.subr.bf16.mxu0 %v1574_v20 }
  0x69   : > { %1447 = vmatpush3.bf16.msra.mxu0 %v1575_v21 }
  0x6c   : > { %1104 = vmatmul.mubr.bf16.vlgmr.msra.gmra.mxu0 %v1577_v22 }
  0xec   : > { %v499_v23 = vpop.f32.mrf.mxu0 }
  0xed   : > { %v1382_v27 = vpop.f32.mrf.mxu1 }
  0xee   : > { %v1474_v24 = vpop.f32.mrf.mxu0 }
  0xef   : > { %v1383_v28 = vpop.f32.mrf.mxu1 }
  0xf0   : > { %v502_v25 = vpop.f32.mrf.mxu0  ;;  %v1384_v41 = vadd.f32 %v1383_v28, %v1382_v27 }
  0xf1   : > { %v1385_v29 = vpop.f32.mrf.mxu1 }
  0xf2   : > { %v1475_v26 = vpop.f32.mrf.mxu0  ;;  %v983_v45 = vadd.f32 %v1384_v41, %v499_v23 }
  0xf3   : > { %v1386_v30 = vpop.f32.mrf.mxu1 }
  0xf4   : > { %v1387_v46 = vadd.f32 %v1386_v30, %v1385_v29 }
  0xf6   : > { %v986_v51 = vadd.f32 %v1387_v46, %v502_v25 }
 0x10c   : > { %v1404_v34 = vpop.f32.mrf.mxu0 }
 0x10d   : > { %v1426_v31 = vpop.f32.mrf.mxu1 }
 0x10e   : > { %v1405_v37 = vpop.f32.mrf.mxu0 }
 0x10f   : > { %v1427_v32 = vpop.f32.mrf.mxu1  ;;  %v1406_v43 = vadd.f32 %v1405_v37, %v1404_v34 }
 0x110   : > { %v1407_v40 = vpop.f32.mrf.mxu0  ;;  %v1428_v48 = vadd.f32 %v1427_v32, %v1426_v31 }
 0x111   : > { %v1429_v33 = vpop.f32.mrf.mxu1  ;;  %v1024_v47 = vadd.f32 %v1406_v43, %v983_v45 }
 0x112   : > { %v1408_v44 = vpop.f32.mrf.mxu0 }
 0x113   : > { %v1430_v35 = vpop.f32.mrf.mxu1  ;;  %v1409_v49 = vadd.f32 %v1408_v44, %v1407_v40  ;;  %v1065_v53 = vadd.f32 %v1428_v48, %v1024_v47 }
 0x114   : > { %v1431_v55 = vadd.f32 %v1430_v35, %v1429_v33 }
 0x115   : > { %v1146_v36 = vpop.f32.mrf.mxu1  ;;  %v1027_v54 = vadd.f32 %v1409_v49, %v986_v51 }
 0x117   : > { %v1480_v38 = vpop.f32.mrf.mxu1  ;;  %v1068_v61 = vadd.f32 %v1431_v55, %v1027_v54 }
 0x119   : > { %v1149_v39 = vpop.f32.mrf.mxu1 }
 0x11b   : > { %v1481_v42 = vpop.f32.mrf.mxu1 }
 0x12c   : > { %v1448_v50 = vpop.f32.mrf.mxu0 }
 0x12e   : > { %v1449_v52 = vpop.f32.mrf.mxu0 }
 0x12f   : > { %v1450_v56 = vadd.f32 %v1449_v52, %v1448_v50 }
 0x130   : > { %v1451_v57 = vpop.f32.mrf.mxu0 }
 0x131   : > { %v1106_v58 = vadd.f32 %v1450_v56, %v1065_v53 }
 0x132   : > { %v1452_v60 = vpop.f32.mrf.mxu0 }
 0x133   : > { %v1147_v62 = vadd.f32 %v1146_v36, %v1106_v58  ;;  %v1453_v63 = vadd.f32 %v1452_v60, %v1451_v57 }
 0x135   : > { %v1158_v0 = vadd.f32 %v1344_v59, %v1147_v62  ;;  %v1109_v2 = vadd.f32 %v1453_v63, %v1068_v61 }
 0x137   : > { %v1150_v4 = vadd.f32 %v1149_v39, %v1109_v2  ;;  %v1167_v5 = vmul.f32 %v1345_v3, %v1158_v0  ;;  %vm1160_vm3 = vcmp.gt.f32.partialorder %v1158_v0, 0.0 }
 0x139   : > { %v1159_v6 = vadd.f32 %v1344_v59, %v1150_v4  ;;  %v1169_v8 = vsel %vm1160_vm3, %v1158_v0, %v1167_v5 }
 0x13b   : > { %vm1161_vm4 = vcmp.gt.f32.partialorder %v1159_v6, 0.0  ;;  %v1168_v7 = vmul.f32 %v1345_v3, %v1159_v6 }
 0x13d   : > { %v1170_v1 = vsel %vm1161_vm4, %v1159_v6, %v1168_v7 }
 0x13e   : > { %v1355_v9 = vpack.c.bf16 %v1170_v1, %v1169_v8 }
 0x140   : > { %1356 = vst [vmem:[%s251_s28] sm:$0xff] %v1355_v9  }
 0x141 PF: > { %s15_s18 = sadd.s32 1, %s1587_s18  }
 0x142   : > { %p12_p4 = scmp.ge.s32.totalorder %s15_s18, 4  }
 0x144   :  { %14 = sbr.rel (!%p12_p4) target bundleno = 1 (0x1), region = 73 }

// kernel: _lambda_.47
= control target key start
LH: loop header
LB: loop body
LE: loop exit
PB: predicated region body
PF: predicated region fallthrough
CT: control target
= control target key end

     0   :  { %11 = vsyncpa [#allocation3], 0  ;;  %s1424_s0 = inlined_call_operand.vmem [shape: bf16[32,128], index: 0, kind: input, shape index: {}]   ;;  %s1425_s1 = inlined_call_operand.vmem [shape: bf16[32,128], index: 1, kind: input, shape index: {}]   ;;  %s1426_s2 = inlined_call_operand.vmem [shape: bf16[128,256], index: 2, kind: input, shape index: {}]   ;;  %s1427_s3 = inlined_call_operand.vmem [shape: bf16[128,256], index: 3, kind: input, shape index: {}]   ;;  %s1428_s4 = inlined_call_operand.vmem [shape: f32[2,256], index: 4, kind: input, shape index: {}]   ;;  %s1429_s5 = inlined_call_operand.vmem [shape: bf16[256,20], index: 5, kind: input, shape index: {}]   ;;  %s1430_s6 = inlined_call_operand.hbm [shape: f32[32,20], index: 6, kind: output, shape index: {}]  }
   0x1   :  { %13 = vsyncpa [#allocation3 + $0x1], 0  ;;  %s1170_s21 = smov 0   ;;  %s1172_s22 = smov 0  }
   0x2   :  { %s1174_s23 = smov 0   ;;  %s1176_s24 = smov 0  }
   0x3 LB: > { %s1191_s25 = sadd.s32 4294967295, %s1129_s24   ;;  %s873_s26 = sadd.s32 4294967294, %s1129_s24   ;;  %s1129_s24 = sphi %s1176_s24, %s1436_s24   ;;  %s1125_s23 = sphi %s1174_s23, %s1435_s23   ;;  %s1121_s22 = sphi %s1172_s22, %s1434_s22   ;;  %s1117_s21 = sphi %s1170_s21, %s1433_s21  }
   0x4   : > { %s1195_s27 = sadd.s32 1, %s1129_s24   ;;  %s162_s28 = sadd.s32 1, %s1125_s23 }
   0x5   : > { %s159_s29 = ssub.s32 %s1129_s24, %s1195_s27  ;;  %p172_p0 = scmp.ne.s32.totalorder %s1125_s23, %s1121_s22 }
   0x6   : > { %p160_p1 = scmp.eq.s32.totalorder %s159_s29, 0  ;;  %p173_p2 = scmp.eq.s32.totalorder %s1191_s25, 1 }
   0x7   : > { %p178_p3 = scmp.ne.s32.totalorder %s1121_s22, %s1117_s21  ;;  %p179_p4 = scmp.eq.s32.totalorder %s873_s26, 1 }
   0x8   : > { %s1206_s30 = scalar_select %p160_p1, %s1125_s23, %s162_s28  }
   0x9   : > { %p1208_p5 = por %p173_p2, %p172_p0  ;;  %p1212_p6 = por %p179_p4, %p178_p3 }
   0xa   : > { %p876_p7 = scmp.ge.s32.totalorder %s1129_s24, 1  ;;  %p227_p8 = scmp.lt.s32.totalorder %s1129_s24, 3 }
   0xc   : > { %p228_p9 = pnand %p876_p7, %p227_p8 }
   0xd   : > { %s878_s12 = sshll.u32 (!%p228_p9), %s1191_s25, 1  ;;  %s938_s19 = sshll.u32 (!%p228_p9), %s1191_s25, 8 }
   0xe   : > { %231 = sbr.rel (%p228_p9) target bundleno = 477 (0x1dd), region = 44  ;;  %p263_p10 = scmp.lt.s32.totalorder (!%p228_p9), %s878_s12, 3 }
   0xf   : > { %s1382_s26 = scalar_lea.hbm (!%p228_p9), %s1430_s6, %s938_s19  ;;  %s1132_s25 = smov (!%p228_p9), [#allocation2]  }
  0x10   : > { %s1073_s11 = sshll.u32 (!%p228_p9), %s1132_s25, 4  ;;  %s1074_s11 = int_to_ptr.vmem [resolvable:$false] %s1073_s11 }
  0x11   : > { %s1075_s13 = scalar_lea.vmem (!%p228_p9), %s1074_s11, 512 }
  0x13   : > { %v1003_v0 = vld [vmem:[%s1427_s3 + $0x74] ss:$8 sps:$4 sm:$0xff]   ;;  %v1131_v2 = vmov 0   ;;  %v1007_v3 = vld [vmem:[%s1427_s3 + $0x70] ss:$8 sps:$4 sm:$0xff]   ;;  %s1438_s12 = smov (!%p263_p10, %s878_s12), 3  ;;  %v572_v51 = vlaneseq }
  0x14   : > { %v1005_v1 = vld [vmem:[%s1426_s2 + $0x74] ss:$8 sps:$4 sm:$0xff]   ;;  %430 = vmatprep.mubr.bf16.mxu0 %v1131_v2  ;;  %559 = vmatprep.mubr.bf16.mxu1 %v1131_v2  ;;  %v1008_v4 = vld [vmem:[%s1426_s2 + $0x70] ss:$8 sps:$4 sm:$0xff]   ;;  %v1009_v5 = vld [vmem:[%s1427_s3 + $0x64] ss:$8 sps:$4 sm:$0xff]  }
  0x15   : > { %398 = vmatprep.subr.bf16.mxu0 %v1003_v0  ;;  %527 = vmatprep.subr.bf16.mxu1 %v1005_v1  ;;  %v1011_v6 = vld [vmem:[%s1426_s2 + $0x64] ss:$8 sps:$4 sm:$0xff]   ;;  %v1013_v7 = vld [vmem:[%s1427_s3 + $0x60] ss:$8 sps:$4 sm:$0xff]   ;;  %v1015_v9 = vld [vmem:[%s1427_s3 + $0x54] ss:$8 sps:$4 sm:$0xff]  }
  0x16   : > { %399 = vmatpush1.bf16.msra.mxu0 %v1007_v3  ;;  %528 = vmatpush1.bf16.msra.mxu1 %v1008_v4  ;;  %v1014_v8 = vld [vmem:[%s1426_s2 + $0x60] ss:$8 sps:$4 sm:$0xff]   ;;  %v1017_v10 = vld [vmem:[%s1426_s2 + $0x54] ss:$8 sps:$4 sm:$0xff]   ;;  %v1019_v11 = vld [vmem:[%s1427_s3 + $0x50] ss:$8 sps:$4 sm:$0xff]  }
  0x17   : > { %400 = vmatprep.subr.bf16.mxu0 %v1009_v5  ;;  %529 = vmatprep.subr.bf16.mxu1 %v1011_v6  ;;  %v1020_v12 = vld [vmem:[%s1426_s2 + $0x50] ss:$8 sps:$4 sm:$0xff]   ;;  %v1021_v13 = vld [vmem:[%s1427_s3 + $0x44] ss:$8 sps:$4 sm:$0xff]   ;;  %v1025_v15 = vld [vmem:[%s1427_s3 + $0x40] ss:$8 sps:$4 sm:$0xff]  }
  0x18   : > { %v1023_v14 = vld [vmem:[%s1426_s2 + $0x44] ss:$8 sps:$4 sm:$0xff]   ;;  %v1026_v16 = vld [vmem:[%s1426_s2 + $0x40] ss:$8 sps:$4 sm:$0xff]   ;;  %v1027_v17 = vld [vmem:[%s1427_s3 + $0x34] ss:$8 sps:$4 sm:$0xff]  }
  0x19   : > { %v1029_v18 = vld [vmem:[%s1426_s2 + $0x34] ss:$8 sps:$4 sm:$0xff]   ;;  %v1031_v19 = vld [vmem:[%s1427_s3 + $0x30] ss:$8 sps:$4 sm:$0xff]   ;;  %v1033_v21 = vld [vmem:[%s1427_s3 + $0x24] ss:$8 sps:$4 sm:$0xff]  }
  0x1a   : > { %401 = vmatpush1.bf16.msra.mxu0 %v1013_v7  ;;  %530 = vmatpush1.bf16.msra.mxu1 %v1014_v8  ;;  %v1032_v20 = vld [vmem:[%s1426_s2 + $0x30] ss:$8 sps:$4 sm:$0xff]   ;;  %v1035_v22 = vld [vmem:[%s1426_s2 + $0x24] ss:$8 sps:$4 sm:$0xff]   ;;  %s879_s10 = sshll.u32 %s1438_s12, 2  ;;  %v573_v52 = vshrl.u32 %v572_v51, 7 }
  0x1b   : > { %402 = vmatprep.subr.bf16.mxu0 %v1015_v9  ;;  %531 = vmatprep.subr.bf16.mxu1 %v1017_v10  ;;  %v1037_v23 = vld [vmem:[%s1427_s3 + $0x20] ss:$8 sps:$4 sm:$0xff]   ;;  %v1039_v25 = vld [vmem:[%s1427_s3 + $0x14] ss:$8 sps:$4 sm:$0xff]   ;;  %s272_s20 = scalar_lea.vmem %s1425_s1, %s879_s10  ;;  %s266_s9 = scalar_lea.vmem %s1424_s0, %s879_s10  ;;  %v1043_v27 = vld [vmem:[%s1427_s3 + $0x10] ss:$8 sps:$4 sm:$0xff]  }
  0x1c   : > { %v1038_v24 = vld [vmem:[%s1426_s2 + $0x20] ss:$8 sps:$4 sm:$0xff]   ;;  %v1041_v26 = vld [vmem:[%s1426_s2 + $0x14] ss:$8 sps:$4 sm:$0xff]   ;;  %v1044_v28 = vld [vmem:[%s1426_s2 + $0x10] ss:$8 sps:$4 sm:$0xff]  }
  0x1d   : > { %v1045_v29 = vld [vmem:[%s1427_s3 + $0x4] ss:$8 sps:$4 sm:$0xff]   ;;  %v1049_v31 = vld [vmem:[%s1427_s3] ss:$8 sps:$4 sm:$0xff]   ;;  %v1053_v35 = vld [vmem:[%s1429_s5 + $0x78] sm:$0xff]   ;;  %v578_v53 = vsub.s32 1, %v573_v52 }
  0x1e   : > { %403 = vmatpush1.bf16.msra.mxu0 %v1019_v11  ;;  %532 = vmatpush1.bf16.msra.mxu1 %v1020_v12  ;;  %v1047_v30 = vld [vmem:[%s1426_s2 + $0x4] ss:$8 sps:$4 sm:$0xff]   ;;  %v1050_v32 = vld [vmem:[%s1426_s2] ss:$8 sps:$4 sm:$0xff]   ;;  %v1054_v36 = vld [vmem:[%s1429_s5 + $0x38] sm:$0xff]   ;;  %v574_v54 = vsub.s32 0, %v573_v52 }
  0x1f   : > { %404 = vmatprep.subr.bf16.mxu0 %v1021_v13  ;;  %533 = vmatprep.subr.bf16.mxu1 %v1023_v14  ;;  %v1051_v33 = vld [vmem:[%s272_s20] sm:$0xff]   ;;  %v1055_v37 = vld [vmem:[%s1429_s5 + $0x70] sm:$0xff]   ;;  %v1057_v39 = vld [vmem:[%s1429_s5 + $0x68] sm:$0xff]   ;;  %s259_s20 = sand.u32 1, %s1121_s22   ;;  %vm782_vm4 = vcmask 162816  }
  0x20   : > { %v1052_v34 = vld [vmem:[%s266_s9] sm:$0xff]   ;;  %v1056_v38 = vld [vmem:[%s1429_s5 + $0x30] sm:$0xff]   ;;  %v1058_v40 = vld [vmem:[%s1429_s5 + $0x28] sm:$0xff]   ;;  %s877_s9 = sshll.u32 %s259_s20, 4  ;;  %s1384_s28 = scalar_lea.sflag [#allocation3], %s259_s20 }
  0x21   : > { %v1059_v41 = vld [vmem:[%s1429_s5 + $0x60] sm:$0xff]   ;;  %v1061_v43 = vld [vmem:[%s1429_s5 + $0x58] sm:$0xff]   ;;  %v1063_v45 = vld [vmem:[%s1429_s5 + $0x50] sm:$0xff]   ;;  %s261_s17 = scalar_lea.vmem [#allocation2], %s877_s9 }
  0x22   : > { %405 = vmatpush1.bf16.msra.mxu0 %v1025_v15  ;;  %534 = vmatpush1.bf16.msra.mxu1 %v1026_v16  ;;  %v1060_v42 = vld [vmem:[%s1429_s5 + $0x20] sm:$0xff]   ;;  %v1062_v44 = vld [vmem:[%s1429_s5 + $0x18] sm:$0xff]   ;;  %v1064_v46 = vld [vmem:[%s1429_s5 + $0x10] sm:$0xff]   ;;  %s799_s18 = sshll.u32 %s261_s17, 4  ;;  %s1377_s18 = int_to_ptr.vmem [resolvable:$true] %s799_s18 }
  0x23   : > { %406 = vmatprep.subr.bf16.mxu0 %v1027_v17  ;;  %535 = vmatprep.subr.bf16.mxu1 %v1029_v18  ;;  %v1065_v47 = vld [vmem:[%s1429_s5 + $0x48] sm:$0xff]   ;;  %v1067_v49 = vld [vmem:[%s1429_s5 + $0x40] sm:$0xff]   ;;  %s1069_s29 = scalar_lea.vmem %s1377_s18, 256  ;;  %p1076_p0 = scmp.lt.s32.totalorder %s1377_s18, %s1074_s11 }
  0x24   : > { %v1066_v48 = vld [vmem:[%s1429_s5 + $0x8] sm:$0xff]   ;;  %v1068_v50 = vld [vmem:[%s1429_s5] sm:$0xff]   ;;  %p1070_p11 = scmp.ne.s32.totalorder %s1377_s18, %s1069_s29  ;;  %p1077_p1 = scmp.lt.s32.totalorder %s1075_s13, %s1069_s29 }
  0x25   : > { %v570_v57 = vld [vmem:[%s1428_s4] ss:$2 sm:$0x3]  ;;  %v916_v0 = vld [vmem:[%s1428_s4 + $0x1] ss:$2 sm:$0x3] }
  0x26   : > { %407 = vmatpush1.bf16.msra.mxu0 %v1031_v19  ;;  %536 = vmatpush1.bf16.msra.mxu1 %v1032_v20  ;;  %v579_v60 = vrot.slane %v570_v57, %v578_v53  ;;  %v575_v62 = vrot.slane %v570_v57, %v574_v54  ;;  %v600_v5 = vrot.slane %v916_v0, %v578_v53  ;;  %p1071_p12 = pnand %p1070_p11, %p1208_p5  ;;  %p1078_p2 = por %p1077_p1, %p1076_p0 }
  0x27   : > { %408 = vmatprep.subr.bf16.mxu0 %v1033_v21  ;;  %537 = vmatprep.subr.bf16.mxu1 %v1035_v22  ;;  %v596_v9 = vrot.slane %v916_v0, %v574_v54 }
  0x28   : > { %p1072_p13 = pneg %p1071_p12 }
  0x2a   : > { %409 = vmatpush1.bf16.msra.mxu0 %v1037_v23  ;;  %538 = vmatpush1.bf16.msra.mxu1 %v1038_v24  ;;  %p1079_p3 = pnand %p1078_p2, %p1072_p13 }
  0x2b   : > { %410 = vmatprep.subr.bf16.mxu0 %v1039_v25  ;;  %539 = vmatprep.subr.bf16.mxu1 %v1041_v26 }
  0x2e   : > { %411 = vmatpush1.bf16.msra.mxu0 %v1043_v27  ;;  %540 = vmatpush1.bf16.msra.mxu1 %v1044_v28 }
  0x2f   : > { %412 = vmatprep.subr.bf16.mxu0 %v1045_v29  ;;  %541 = vmatprep.subr.bf16.mxu1 %v1047_v30 }
  0x32   : > { %413 = vmatpush1.bf16.msra.mxu0 %v1049_v31  ;;  %542 = vmatpush1.bf16.msra.mxu1 %v1050_v32 }
  0x33   : > { %939 = vmatprep.subr.bf16.mxu0 %v1053_v35 }
  0x35   : > { %431 = vmatmul.mubr.bf16.vlgmr.msra.gmra.mxu0 %v1051_v33  ;;  %560 = vmatmul.mubr.bf16.vlgmr.msra.gmra.mxu1 %v1052_v34 }
  0x36   : > { %940 = vmatpush3.bf16.msra.mxu0 %v1054_v36 }
  0x37   : > { %941 = vmatprep.subr.bf16.mxu0 %v1055_v37 }
  0x3a   : > { %942 = vmatpush3.bf16.msra.mxu0 %v1056_v38 }
  0x3b   : > { %943 = vmatprep.subr.bf16.mxu0 %v1057_v39 }
  0x3e   : > { %944 = vmatpush3.bf16.msra.mxu0 %v1058_v40 }
  0x3f   : > { %945 = vmatprep.subr.bf16.mxu0 %v1059_v41 }
  0x42   : > { %946 = vmatpush3.bf16.msra.mxu0 %v1060_v42 }
  0x43   : > { %947 = vmatprep.subr.bf16.mxu0 %v1061_v43 }
  0x46   : > { %948 = vmatpush3.bf16.msra.mxu0 %v1062_v44 }
  0x47   : > { %949 = vmatprep.subr.bf16.mxu0 %v1063_v45 }
  0x4a   : > { %950 = vmatpush3.bf16.msra.mxu0 %v1064_v46 }
  0x4b   : > { %951 = vmatprep.subr.bf16.mxu0 %v1065_v47 }
  0x4e   : > { %952 = vmatpush3.bf16.msra.mxu0 %v1066_v48 }
  0x4f   : > { %953 = vmatprep.subr.bf16.mxu0 %v1067_v49 }
  0x52   : > { %954 = vmatpush3.bf16.msra.mxu0 %v1068_v50 }
  0xf5   : > { %v432_v55 = vpop.f32.mrf.mxu0  ;;  %v561_v56 = vpop.f32.mrf.mxu1 }
  0xf6   : > { %v562_v61 = vadd.f32 %v561_v56, %v432_v55 }
  0xf7   : > { %v434_v58 = vpop.f32.mrf.mxu0  ;;  %v563_v59 = vpop.f32.mrf.mxu1 }
  0xf8   : > { %v564_v63 = vadd.f32 %v563_v59, %v434_v58  ;;  %v582_v8 = vadd.f32 %v575_v62, %v562_v61 }
  0xf9   : > { %v436_v1 = vpop.f32.mrf.mxu0  ;;  %v565_v2 = vpop.f32.mrf.mxu1 }
  0xfa   : > { %v566_v3 = vadd.f32 %v565_v2, %v436_v1  ;;  %v583_v4 = vadd.f32 %v579_v60, %v564_v63  ;;  %v603_v15 = vmul.f32 %v596_v9, %v582_v8  ;;  %vm586_vm2 = vcmp.gt.f32.partialorder %v582_v8, 0.0 }
  0xfb   : > { %v438_v6 = vpop.f32.mrf.mxu0  ;;  %v567_v7 = vpop.f32.mrf.mxu1 }
  0xfc   : > { %v584_v10 = vadd.f32 %v575_v62, %v566_v3  ;;  %v568_v11 = vadd.f32 %v567_v7, %v438_v6  ;;  %v604_v13 = vmul.f32 %v600_v5, %v583_v4  ;;  %vm587_vm1 = vcmp.gt.f32.partialorder %v583_v4, 0.0 }
  0xfd   : > { %v607_v20 = vsel %vm586_vm2, %v582_v8, %v603_v15 }
  0xfe   : > { %v605_v12 = vmul.f32 %v596_v9, %v584_v10  ;;  %vm588_vm0 = vcmp.gt.f32.partialorder %v584_v10, 0.0  ;;  %v585_v14 = vadd.f32 %v579_v60, %v568_v11  ;;  %v608_v18 = vsel %vm587_vm1, %v583_v4, %v604_v13 }
 0x100   : > { %vm589_vm3 = vcmp.gt.f32.partialorder %v585_v14, 0.0  ;;  %v606_v16 = vmul.f32 %v600_v5, %v585_v14  ;;  %v609_v17 = vsel %vm588_vm0, %v584_v10, %v605_v12 }
 0x101   : > { %v611_v22 = vpack.c.bf16 %v609_v17, %v607_v20 }
 0x102   : > { %v610_v19 = vsel %vm589_vm3, %v585_v14, %v606_v16 }
 0x103   : > { %v612_v21 = vpack.c.bf16 %v610_v19, %v608_v18 }
 0x105   : > { %773 = vmatprep.mubr.bf16.mxu0 %v612_v21 }
 0x106   : > { %774 = vmatmul.mubr.bf16.vlgmr.msra.gmra.mxu0 %v611_v22 }
 0x1c6   : > { %v955_v23 = vpop.f32.mrf.mxu0 }
 0x1c8   : > { %v956_v24 = vpop.f32.mrf.mxu0 }
 0x1c9   : > { %v957_v25 = vadd.f32 %v956_v24, %v955_v23 }
 0x1ca   : > { %v958_v26 = vpop.f32.mrf.mxu0 }
 0x1cb   : > { %783 = vst.msk [vmem:[%s261_s17] sm:$0xff] %vm782_vm4, %v957_v25 }
 0x1cc   : > { %v959_v27 = vpop.f32.mrf.mxu0 }
 0x1cd   : > { %v960_v28 = vadd.f32 %v959_v27, %v958_v26 }
 0x1cf   : > { %784 = vst.msk [vmem:[%s261_s17 + $0x8] sm:$0xff] %vm782_vm4, %v960_v28 }
 0x1d0   : > { %1082 = shalt.err (!%p1079_p3)
}
 0x1d1   : > { %s1083_s14 = scalar_lea.hbm %s1382_s26, 256  ;;  %s1087_s20 = scalar_lea.hbm %s1430_s6, 512 }
 0x1d2   : > { %p1084_p4 = scmp.ne.s32.totalorder %s1382_s26, %s1083_s14  ;;  %p1088_p9 = scmp.lt.s32.totalorder %s1382_s26, %s1430_s6 }
 0x1d3   : > { %p1089_p10 = scmp.lt.s32.totalorder %s1087_s20, %s1083_s14 }
 0x1d4   : > { %p1085_p7 = pnand %p1084_p4, %p1208_p5 }
 0x1d5   : > { %p1090_p11 = por %p1089_p10, %p1088_p9 }
 0x1d6   : > { %p1086_p8 = pneg %p1085_p7 }
 0x1d8   : > { %p1091_p12 = pnand %p1090_p11, %p1086_p8 }
 0x1da   : > { %1094 = shalt.err (!%p1091_p12)
}
 0x1db   : > { %s1133_s19 = smov 128   ;;  %s1134_s10 = smov 8  }
 0x1dc   : > { %961 = dma.vmem_to_hbm [thread:$0]  (%p1208_p5), %s1377_s18, 256, %s1382_s26, %s1384_s28, %s1133_s19, %s1133_s19, %s1134_s10  }
 0x1dd PF: > { %p967_p13 = scmp.ge.s32.totalorder %s1129_s24, 2  ;;  %s814_s12 = sand.u32 1, %s1117_s21  }
 0x1de   : > { %s815_s29 = scalar_lea.sflag [#allocation3], %s814_s12 }
 0x1df   : > { %p964_p0 = pnand %p967_p13, %p1212_p6 }
 0x1e1   : > { %p965_p1 = pneg %p964_p0 }
 0x1e3   : > { %1112 = dma.done.wait (%p965_p1), %s815_s29, 256  }
 0x1e4   : > { %1114 = vsyncadd (%p965_p1), %s815_s29, 4294967040  ;;  %p16_p2 = scmp.ge.s32.totalorder %s1195_s27, 4   ;;  %s1433_s21 = smov %s1121_s22 }
 0x1e5   : > { %s1434_s22 = smov %s1125_s23  ;;  %s1435_s23 = smov %s1206_s30 }
 0x1e6   : > { %s1436_s24 = smov %s1195_s27  ;;  %18 = sbr.rel (!%p16_p2) target bundleno = 3 (0x3), region = 83 }
 0x1eb   :  { %820 = vsyncpa [#allocation3], 1 }
 0x1ec   :  { %822 = vsyncpa [#allocation3 + $0x1], 1 }

</bundles_post_ra>
